<compile_context>
chip_gen: v5e
topology: v5e:2x2
jax: 0.10.0
libtpu: 0.0.40
codegen_flags: <defaults>
</compile_context>

<pallas_src>
import functools

import jax
import jax.numpy as jnp
from jax.experimental import pallas as pl
from jax.experimental.pallas import tpu as pltpu


def _resblock_kernel(x_ref, w1_ref, w2_ref, o_ref, mid_ref, *, H, W, Cp):
    # x_ref:   (H+2, W+2, Cp)  spatially zero-padded, channel-padded input (one batch elem)
    # w*_ref:  (3, 3, Cp, Cp)  HWIO weights (zero-padded channels)
    # o_ref:   (H*W, Cp)       lane/sublane-dense output tile
    # mid_ref: (H+2, W+2, Cp)  VMEM scratch: padded conv1 output

    # ---- conv1 + ReLU (9 shifted taps, f32 accumulate on the MXU) ----
    acc = None
    for kh in range(3):
        for kw in range(3):
            patch = x_ref[kh:kh + H, kw:kw + W, :].reshape(H * W, Cp)
            part = jnp.dot(patch, w1_ref[kh, kw],
                           preferred_element_type=jnp.float32)
            acc = part if acc is None else acc + part
    mid = jnp.maximum(acc, 0.0)  # (H*W, Cp) f32

    # ---- stage conv1 output into the padded scratch ----
    # Re-zero only the 1-pixel border (4 tiny stores) every step, then write the
    # interior. This is megacore-safe and avoids a full-scratch zero per step.
    zrow = jnp.zeros((1, W + 2, Cp), jnp.float32)
    mid_ref[0:1, :, :] = zrow
    mid_ref[H + 1:H + 2, :, :] = zrow
    zcol = jnp.zeros((H, 1, Cp), jnp.float32)
    mid_ref[1:H + 1, 0:1, :] = zcol
    mid_ref[1:H + 1, W + 1:W + 2, :] = zcol
    mid_ref[1:H + 1, 1:W + 1, :] = mid.reshape(H, W, Cp)

    # ---- conv2 (slice the scratch ref per tap; no full reload) ----
    acc2 = None
    for kh in range(3):
        for kw in range(3):
            patch = mid_ref[kh:kh + H, kw:kw + W, :].reshape(H * W, Cp)
            part = jnp.dot(patch, w2_ref[kh, kw],
                           preferred_element_type=jnp.float32)
            acc2 = part if acc2 is None else acc2 + part

    # ---- skip connection + final ReLU ----
    residual = x_ref[1:H + 1, 1:W + 1, :].reshape(H * W, Cp)
    o_ref[...] = jnp.maximum(acc2 + residual, 0.0).astype(o_ref.dtype)


def residual_block(x_nchw, w1_oihw, w2_oihw):
    """Pallas ResidualBlock forward. x_nchw: (B, C, H, W) f32. Returns NCHW."""
    B, C, H, W = x_nchw.shape
    Cp = ((C + 127) // 128) * 128  # lane-dense channel count (multiple of 128)

    # NCHW -> NHWC, then one pad: spatial halo (1,1) + channel pad to Cp.
    x = jnp.transpose(x_nchw, (0, 2, 3, 1)).astype(jnp.float32)
    x_pad = jnp.pad(x, ((0, 0), (1, 1), (1, 1), (0, Cp - C)))

    def prep_w(w_oihw):
        w = jnp.transpose(w_oihw, (2, 3, 1, 0)).astype(jnp.float32)  # HWIO
        return jnp.pad(w, ((0, 0), (0, 0), (0, Cp - C), (0, Cp - C)))

    w1 = prep_w(w1_oihw)
    w2 = prep_w(w2_oihw)

    kernel = functools.partial(_resblock_kernel, H=H, W=W, Cp=Cp)
    out = pl.pallas_call(
        kernel,
        out_shape=jax.ShapeDtypeStruct((B, H * W, Cp), jnp.float32),
        grid_spec=pltpu.PrefetchScalarGridSpec(
            num_scalar_prefetch=0,
            grid=(B,),
            in_specs=[
                pl.BlockSpec((None, H + 2, W + 2, Cp), lambda b: (b, 0, 0, 0)),
                pl.BlockSpec((3, 3, Cp, Cp), lambda b: (0, 0, 0, 0)),
                pl.BlockSpec((3, 3, Cp, Cp), lambda b: (0, 0, 0, 0)),
            ],
            out_specs=pl.BlockSpec((None, H * W, Cp), lambda b: (b, 0, 0)),
            scratch_shapes=[pltpu.VMEM((H + 2, W + 2, Cp), jnp.float32)],
        ),
        compiler_params=pltpu.CompilerParams(
            dimension_semantics=("parallel",)),
    )(x_pad, w1, w2)

    out = out.reshape(B, H, W, Cp)[..., :C]          # drop channel padding
    return jnp.transpose(out, (0, 3, 1, 2))          # back to NCHW


def _reference_forward(x, w1, w2):
    """Pure-JAX reference matching the PyTorch module (NCHW / OIHW)."""
    dn = jax.lax.conv_dimension_numbers(x.shape, w1.shape, ("NCHW", "OIHW", "NCHW"))
    out = jax.lax.conv_general_dilated(x, w1, (1, 1), "SAME", dimension_numbers=dn)
    out = jnp.maximum(out, 0.0)
    out = jax.lax.conv_general_dilated(out, w2, (1, 1), "SAME", dimension_numbers=dn)
    return jnp.maximum(out + x, 0.0)


if __name__ == "__main__":
    B, C, H, W = 2, 4, 16, 16
    key = jax.random.PRNGKey(0)
    kx, k1, k2 = jax.random.split(key, 3)

    x = jax.random.normal(kx, (B, C, H, W), dtype=jnp.float32)
    # Deterministic synthetic weights, PyTorch OIHW layout: (out_c, in_c, 3, 3)
    w1 = jax.random.normal(k1, (C, C, 3, 3), dtype=jnp.float32) * 0.1
    w2 = jax.random.normal(k2, (C, C, 3, 3), dtype=jnp.float32) * 0.1

    out = residual_block(x, w1, w2)
    out = jax.block_until_ready(out)

    ref = jax.block_until_ready(_reference_forward(x, w1, w2))
    assert out.shape == (B, C, H, W)
    assert jnp.allclose(out, ref, atol=1e-4, rtol=1e-4), "mismatch vs reference"

    print("KERNEL_OK")
</pallas_src>

<mosaic_0001>
module attributes {stable_mosaic.version = 11 : i64} {
  func.func @_resblock_kernel(%arg0: i32, %arg1: memref<1x18x18x128xf32, #tpu.memory_space<vmem>>, %arg2: memref<3x3x128x128xf32, #tpu.memory_space<vmem>>, %arg3: memref<3x3x128x128xf32, #tpu.memory_space<vmem>>, %arg4: memref<1x256x128xf32, #tpu.memory_space<vmem>>, %arg5: memref<18x18x128xf32, #tpu.memory_space<vmem>>) attributes {dimension_semantics = [#tpu.dimension_semantics<parallel>], iteration_bounds = array<i64: 2>, scalar_prefetch = 0 : i64, scratch_operands = 1 : i64, tpu.core_type = #tpu.core_type<tc>, window_params = [{transform_indices = @transform_0, window_bounds = array<i64: 1, 18, 18, 128>}, {pipeline_mode = #tpu.pipeline_mode<synchronous>, transform_indices = @transform_1, window_bounds = array<i64: 3, 3, 128, 128>}, {pipeline_mode = #tpu.pipeline_mode<synchronous>, transform_indices = @transform_2, window_bounds = array<i64: 3, 3, 128, 128>}, {transform_indices = @transform_3, window_bounds = array<i64: 1, 256, 128>}]} {
    %c0 = arith.constant 0 : index
    %c0_0 = arith.constant 0 : index
    %c0_1 = arith.constant 0 : index
    %c0_2 = arith.constant 0 : index
    %0 = vector.load %arg1[%c0, %c0_0, %c0_1, %c0_2] : memref<1x18x18x128xf32, #tpu.memory_space<vmem>>, vector<1x16x16x128xf32>
    %1 = vector.shape_cast %0 : vector<1x16x16x128xf32> to vector<16x16x128xf32>
    %2 = vector.shape_cast %1 : vector<16x16x128xf32> to vector<256x128xf32>
    %c0_3 = arith.constant 0 : index
    %c0_4 = arith.constant 0 : index
    %c0_5 = arith.constant 0 : index
    %c0_6 = arith.constant 0 : index
    %3 = vector.load %arg2[%c0_3, %c0_4, %c0_5, %c0_6] : memref<3x3x128x128xf32, #tpu.memory_space<vmem>>, vector<1x1x128x128xf32>
    %4 = vector.shape_cast %3 : vector<1x1x128x128xf32> to vector<128x128xf32>
    %cst = arith.constant dense<0.000000e+00> : vector<256x128xf32>
    %5 = tpu.matmul %2, %4, %cst {dimension_numbers = #tpu.dot_dimension_numbers<[1], [0], [0], [1], [0, 0, 1, 1], [], []>} : vector<256x128xf32>, vector<128x128xf32>, vector<256x128xf32> -> vector<256x128xf32>
    %c0_7 = arith.constant 0 : index
    %c0_8 = arith.constant 0 : index
    %c1 = arith.constant 1 : index
    %c0_9 = arith.constant 0 : index
    %6 = vector.load %arg1[%c0_7, %c0_8, %c1, %c0_9] : memref<1x18x18x128xf32, #tpu.memory_space<vmem>>, vector<1x16x16x128xf32>
    %7 = vector.shape_cast %6 : vector<1x16x16x128xf32> to vector<16x16x128xf32>
    %8 = vector.shape_cast %7 : vector<16x16x128xf32> to vector<256x128xf32>
    %c0_10 = arith.constant 0 : index
    %c1_11 = arith.constant 1 : index
    %c0_12 = arith.constant 0 : index
    %c0_13 = arith.constant 0 : index
    %9 = vector.load %arg2[%c0_10, %c1_11, %c0_12, %c0_13] : memref<3x3x128x128xf32, #tpu.memory_space<vmem>>, vector<1x1x128x128xf32>
    %10 = vector.shape_cast %9 : vector<1x1x128x128xf32> to vector<128x128xf32>
    %cst_14 = arith.constant dense<0.000000e+00> : vector<256x128xf32>
    %11 = tpu.matmul %8, %10, %cst_14 {dimension_numbers = #tpu.dot_dimension_numbers<[1], [0], [0], [1], [0, 0, 1, 1], [], []>} : vector<256x128xf32>, vector<128x128xf32>, vector<256x128xf32> -> vector<256x128xf32>
    %12 = arith.addf %5, %11 : vector<256x128xf32>
    %c0_15 = arith.constant 0 : index
    %c0_16 = arith.constant 0 : index
    %c2 = arith.constant 2 : index
    %c0_17 = arith.constant 0 : index
    %13 = vector.load %arg1[%c0_15, %c0_16, %c2, %c0_17] : memref<1x18x18x128xf32, #tpu.memory_space<vmem>>, vector<1x16x16x128xf32>
    %14 = vector.shape_cast %13 : vector<1x16x16x128xf32> to vector<16x16x128xf32>
    %15 = vector.shape_cast %14 : vector<16x16x128xf32> to vector<256x128xf32>
    %c0_18 = arith.constant 0 : index
    %c2_19 = arith.constant 2 : index
    %c0_20 = arith.constant 0 : index
    %c0_21 = arith.constant 0 : index
    %16 = vector.load %arg2[%c0_18, %c2_19, %c0_20, %c0_21] : memref<3x3x128x128xf32, #tpu.memory_space<vmem>>, vector<1x1x128x128xf32>
    %17 = vector.shape_cast %16 : vector<1x1x128x128xf32> to vector<128x128xf32>
    %cst_22 = arith.constant dense<0.000000e+00> : vector<256x128xf32>
    %18 = tpu.matmul %15, %17, %cst_22 {dimension_numbers = #tpu.dot_dimension_numbers<[1], [0], [0], [1], [0, 0, 1, 1], [], []>} : vector<256x128xf32>, vector<128x128xf32>, vector<256x128xf32> -> vector<256x128xf32>
    %19 = arith.addf %12, %18 : vector<256x128xf32>
    %c0_23 = arith.constant 0 : index
    %c1_24 = arith.constant 1 : index
    %c0_25 = arith.constant 0 : index
    %c0_26 = arith.constant 0 : index
    %20 = vector.load %arg1[%c0_23, %c1_24, %c0_25, %c0_26] : memref<1x18x18x128xf32, #tpu.memory_space<vmem>>, vector<1x16x16x128xf32>
    %21 = vector.shape_cast %20 : vector<1x16x16x128xf32> to vector<16x16x128xf32>
    %22 = vector.shape_cast %21 : vector<16x16x128xf32> to vector<256x128xf32>
    %c1_27 = arith.constant 1 : index
    %c0_28 = arith.constant 0 : index
    %c0_29 = arith.constant 0 : index
    %c0_30 = arith.constant 0 : index
    %23 = vector.load %arg2[%c1_27, %c0_28, %c0_29, %c0_30] : memref<3x3x128x128xf32, #tpu.memory_space<vmem>>, vector<1x1x128x128xf32>
    %24 = vector.shape_cast %23 : vector<1x1x128x128xf32> to vector<128x128xf32>
    %cst_31 = arith.constant dense<0.000000e+00> : vector<256x128xf32>
    %25 = tpu.matmul %22, %24, %cst_31 {dimension_numbers = #tpu.dot_dimension_numbers<[1], [0], [0], [1], [0, 0, 1, 1], [], []>} : vector<256x128xf32>, vector<128x128xf32>, vector<256x128xf32> -> vector<256x128xf32>
    %26 = arith.addf %19, %25 : vector<256x128xf32>
    %c0_32 = arith.constant 0 : index
    %c1_33 = arith.constant 1 : index
    %c1_34 = arith.constant 1 : index
    %c0_35 = arith.constant 0 : index
    %27 = vector.load %arg1[%c0_32, %c1_33, %c1_34, %c0_35] : memref<1x18x18x128xf32, #tpu.memory_space<vmem>>, vector<1x16x16x128xf32>
    %28 = vector.shape_cast %27 : vector<1x16x16x128xf32> to vector<16x16x128xf32>
    %29 = vector.shape_cast %28 : vector<16x16x128xf32> to vector<256x128xf32>
    %c1_36 = arith.constant 1 : index
    %c1_37 = arith.constant 1 : index
    %c0_38 = arith.constant 0 : index
    %c0_39 = arith.constant 0 : index
    %30 = vector.load %arg2[%c1_36, %c1_37, %c0_38, %c0_39] : memref<3x3x128x128xf32, #tpu.memory_space<vmem>>, vector<1x1x128x128xf32>
    %31 = vector.shape_cast %30 : vector<1x1x128x128xf32> to vector<128x128xf32>
    %cst_40 = arith.constant dense<0.000000e+00> : vector<256x128xf32>
    %32 = tpu.matmul %29, %31, %cst_40 {dimension_numbers = #tpu.dot_dimension_numbers<[1], [0], [0], [1], [0, 0, 1, 1], [], []>} : vector<256x128xf32>, vector<128x128xf32>, vector<256x128xf32> -> vector<256x128xf32>
    %33 = arith.addf %26, %32 : vector<256x128xf32>
    %c0_41 = arith.constant 0 : index
    %c1_42 = arith.constant 1 : index
    %c2_43 = arith.constant 2 : index
    %c0_44 = arith.constant 0 : index
    %34 = vector.load %arg1[%c0_41, %c1_42, %c2_43, %c0_44] : memref<1x18x18x128xf32, #tpu.memory_space<vmem>>, vector<1x16x16x128xf32>
    %35 = vector.shape_cast %34 : vector<1x16x16x128xf32> to vector<16x16x128xf32>
    %36 = vector.shape_cast %35 : vector<16x16x128xf32> to vector<256x128xf32>
    %c1_45 = arith.constant 1 : index
    %c2_46 = arith.constant 2 : index
    %c0_47 = arith.constant 0 : index
    %c0_48 = arith.constant 0 : index
    %37 = vector.load %arg2[%c1_45, %c2_46, %c0_47, %c0_48] : memref<3x3x128x128xf32, #tpu.memory_space<vmem>>, vector<1x1x128x128xf32>
    %38 = vector.shape_cast %37 : vector<1x1x128x128xf32> to vector<128x128xf32>
    %cst_49 = arith.constant dense<0.000000e+00> : vector<256x128xf32>
    %39 = tpu.matmul %36, %38, %cst_49 {dimension_numbers = #tpu.dot_dimension_numbers<[1], [0], [0], [1], [0, 0, 1, 1], [], []>} : vector<256x128xf32>, vector<128x128xf32>, vector<256x128xf32> -> vector<256x128xf32>
    %40 = arith.addf %33, %39 : vector<256x128xf32>
    %c0_50 = arith.constant 0 : index
    %c2_51 = arith.constant 2 : index
    %c0_52 = arith.constant 0 : index
    %c0_53 = arith.constant 0 : index
    %41 = vector.load %arg1[%c0_50, %c2_51, %c0_52, %c0_53] : memref<1x18x18x128xf32, #tpu.memory_space<vmem>>, vector<1x16x16x128xf32>
    %42 = vector.shape_cast %41 : vector<1x16x16x128xf32> to vector<16x16x128xf32>
    %43 = vector.shape_cast %42 : vector<16x16x128xf32> to vector<256x128xf32>
    %c2_54 = arith.constant 2 : index
    %c0_55 = arith.constant 0 : index
    %c0_56 = arith.constant 0 : index
    %c0_57 = arith.constant 0 : index
    %44 = vector.load %arg2[%c2_54, %c0_55, %c0_56, %c0_57] : memref<3x3x128x128xf32, #tpu.memory_space<vmem>>, vector<1x1x128x128xf32>
    %45 = vector.shape_cast %44 : vector<1x1x128x128xf32> to vector<128x128xf32>
    %cst_58 = arith.constant dense<0.000000e+00> : vector<256x128xf32>
    %46 = tpu.matmul %43, %45, %cst_58 {dimension_numbers = #tpu.dot_dimension_numbers<[1], [0], [0], [1], [0, 0, 1, 1], [], []>} : vector<256x128xf32>, vector<128x128xf32>, vector<256x128xf32> -> vector<256x128xf32>
    %47 = arith.addf %40, %46 : vector<256x128xf32>
    %c0_59 = arith.constant 0 : index
    %c2_60 = arith.constant 2 : index
    %c1_61 = arith.constant 1 : index
    %c0_62 = arith.constant 0 : index
    %48 = vector.load %arg1[%c0_59, %c2_60, %c1_61, %c0_62] : memref<1x18x18x128xf32, #tpu.memory_space<vmem>>, vector<1x16x16x128xf32>
    %49 = vector.shape_cast %48 : vector<1x16x16x128xf32> to vector<16x16x128xf32>
    %50 = vector.shape_cast %49 : vector<16x16x128xf32> to vector<256x128xf32>
    %c2_63 = arith.constant 2 : index
    %c1_64 = arith.constant 1 : index
    %c0_65 = arith.constant 0 : index
    %c0_66 = arith.constant 0 : index
    %51 = vector.load %arg2[%c2_63, %c1_64, %c0_65, %c0_66] : memref<3x3x128x128xf32, #tpu.memory_space<vmem>>, vector<1x1x128x128xf32>
    %52 = vector.shape_cast %51 : vector<1x1x128x128xf32> to vector<128x128xf32>
    %cst_67 = arith.constant dense<0.000000e+00> : vector<256x128xf32>
    %53 = tpu.matmul %50, %52, %cst_67 {dimension_numbers = #tpu.dot_dimension_numbers<[1], [0], [0], [1], [0, 0, 1, 1], [], []>} : vector<256x128xf32>, vector<128x128xf32>, vector<256x128xf32> -> vector<256x128xf32>
    %54 = arith.addf %47, %53 : vector<256x128xf32>
    %c0_68 = arith.constant 0 : index
    %c2_69 = arith.constant 2 : index
    %c2_70 = arith.constant 2 : index
    %c0_71 = arith.constant 0 : index
    %55 = vector.load %arg1[%c0_68, %c2_69, %c2_70, %c0_71] : memref<1x18x18x128xf32, #tpu.memory_space<vmem>>, vector<1x16x16x128xf32>
    %56 = vector.shape_cast %55 : vector<1x16x16x128xf32> to vector<16x16x128xf32>
    %57 = vector.shape_cast %56 : vector<16x16x128xf32> to vector<256x128xf32>
    %c2_72 = arith.constant 2 : index
    %c2_73 = arith.constant 2 : index
    %c0_74 = arith.constant 0 : index
    %c0_75 = arith.constant 0 : index
    %58 = vector.load %arg2[%c2_72, %c2_73, %c0_74, %c0_75] : memref<3x3x128x128xf32, #tpu.memory_space<vmem>>, vector<1x1x128x128xf32>
    %59 = vector.shape_cast %58 : vector<1x1x128x128xf32> to vector<128x128xf32>
    %cst_76 = arith.constant dense<0.000000e+00> : vector<256x128xf32>
    %60 = tpu.matmul %57, %59, %cst_76 {dimension_numbers = #tpu.dot_dimension_numbers<[1], [0], [0], [1], [0, 0, 1, 1], [], []>} : vector<256x128xf32>, vector<128x128xf32>, vector<256x128xf32> -> vector<256x128xf32>
    %61 = arith.addf %54, %60 : vector<256x128xf32>
    %cst_77 = arith.constant 0.000000e+00 : f32
    %62 = vector.broadcast %cst_77 : f32 to vector<256x128xf32>
    %63 = arith.maximumf %61, %62 : vector<256x128xf32>
    %cst_78 = arith.constant 0.000000e+00 : f32
    %64 = vector.broadcast %cst_78 : f32 to vector<1x18x128xf32>
    %c0_79 = arith.constant 0 : index
    %c0_80 = arith.constant 0 : index
    %c0_81 = arith.constant 0 : index
    %65 = vector.load %arg5[%c0_79, %c0_80, %c0_81] : memref<18x18x128xf32, #tpu.memory_space<vmem>>, vector<1x18x128xf32>
    tpu.vector_store %arg5[%c0_79, %c0_80, %c0_81], %64 {strides = array<i32>} : memref<18x18x128xf32, #tpu.memory_space<vmem>>, vector<1x18x128xf32>,
    %c17 = arith.constant 17 : index
    %c0_82 = arith.constant 0 : index
    %c0_83 = arith.constant 0 : index
    %66 = vector.load %arg5[%c17, %c0_82, %c0_83] : memref<18x18x128xf32, #tpu.memory_space<vmem>>, vector<1x18x128xf32>
    tpu.vector_store %arg5[%c17, %c0_82, %c0_83], %64 {strides = array<i32>} : memref<18x18x128xf32, #tpu.memory_space<vmem>>, vector<1x18x128xf32>,
    %cst_84 = arith.constant 0.000000e+00 : f32
    %67 = vector.broadcast %cst_84 : f32 to vector<16x1x128xf32>
    %c1_85 = arith.constant 1 : index
    %c0_86 = arith.constant 0 : index
    %c0_87 = arith.constant 0 : index
    %68 = vector.load %arg5[%c1_85, %c0_86, %c0_87] : memref<18x18x128xf32, #tpu.memory_space<vmem>>, vector<16x1x128xf32>
    tpu.vector_store %arg5[%c1_85, %c0_86, %c0_87], %67 {strides = array<i32>} : memref<18x18x128xf32, #tpu.memory_space<vmem>>, vector<16x1x128xf32>,
    %c1_88 = arith.constant 1 : index
    %c17_89 = arith.constant 17 : index
    %c0_90 = arith.constant 0 : index
    %69 = vector.load %arg5[%c1_88, %c17_89, %c0_90] : memref<18x18x128xf32, #tpu.memory_space<vmem>>, vector<16x1x128xf32>
    tpu.vector_store %arg5[%c1_88, %c17_89, %c0_90], %67 {strides = array<i32>} : memref<18x18x128xf32, #tpu.memory_space<vmem>>, vector<16x1x128xf32>,
    %70 = vector.shape_cast %63 : vector<256x128xf32> to vector<16x16x128xf32>
    %c1_91 = arith.constant 1 : index
    %c1_92 = arith.constant 1 : index
    %c0_93 = arith.constant 0 : index
    %71 = vector.load %arg5[%c1_91, %c1_92, %c0_93] : memref<18x18x128xf32, #tpu.memory_space<vmem>>, vector<16x16x128xf32>
    tpu.vector_store %arg5[%c1_91, %c1_92, %c0_93], %70 {strides = array<i32>} : memref<18x18x128xf32, #tpu.memory_space<vmem>>, vector<16x16x128xf32>,
    %c0_94 = arith.constant 0 : index
    %c0_95 = arith.constant 0 : index
    %c0_96 = arith.constant 0 : index
    %72 = vector.load %arg5[%c0_94, %c0_95, %c0_96] : memref<18x18x128xf32, #tpu.memory_space<vmem>>, vector<16x16x128xf32>
    %73 = vector.shape_cast %72 : vector<16x16x128xf32> to vector<256x128xf32>
    %c0_97 = arith.constant 0 : index
    %c0_98 = arith.constant 0 : index
    %c0_99 = arith.constant 0 : index
    %c0_100 = arith.constant 0 : index
    %74 = vector.load %arg3[%c0_97, %c0_98, %c0_99, %c0_100] : memref<3x3x128x128xf32, #tpu.memory_space<vmem>>, vector<1x1x128x128xf32>
    %75 = vector.shape_cast %74 : vector<1x1x128x128xf32> to vector<128x128xf32>
    %cst_101 = arith.constant dense<0.000000e+00> : vector<256x128xf32>
    %76 = tpu.matmul %73, %75, %cst_101 {dimension_numbers = #tpu.dot_dimension_numbers<[1], [0], [0], [1], [0, 0, 1, 1], [], []>} : vector<256x128xf32>, vector<128x128xf32>, vector<256x128xf32> -> vector<256x128xf32>
    %c0_102 = arith.constant 0 : index
    %c1_103 = arith.constant 1 : index
    %c0_104 = arith.constant 0 : index
    %77 = vector.load %arg5[%c0_102, %c1_103, %c0_104] : memref<18x18x128xf32, #tpu.memory_space<vmem>>, vector<16x16x128xf32>
    %78 = vector.shape_cast %77 : vector<16x16x128xf32> to vector<256x128xf32>
    %c0_105 = arith.constant 0 : index
    %c1_106 = arith.constant 1 : index
    %c0_107 = arith.constant 0 : index
    %c0_108 = arith.constant 0 : index
    %79 = vector.load %arg3[%c0_105, %c1_106, %c0_107, %c0_108] : memref<3x3x128x128xf32, #tpu.memory_space<vmem>>, vector<1x1x128x128xf32>
    %80 = vector.shape_cast %79 : vector<1x1x128x128xf32> to vector<128x128xf32>
    %cst_109 = arith.constant dense<0.000000e+00> : vector<256x128xf32>
    %81 = tpu.matmul %78, %80, %cst_109 {dimension_numbers = #tpu.dot_dimension_numbers<[1], [0], [0], [1], [0, 0, 1, 1], [], []>} : vector<256x128xf32>, vector<128x128xf32>, vector<256x128xf32> -> vector<256x128xf32>
    %82 = arith.addf %76, %81 : vector<256x128xf32>
    %c0_110 = arith.constant 0 : index
    %c2_111 = arith.constant 2 : index
    %c0_112 = arith.constant 0 : index
    %83 = vector.load %arg5[%c0_110, %c2_111, %c0_112] : memref<18x18x128xf32, #tpu.memory_space<vmem>>, vector<16x16x128xf32>
    %84 = vector.shape_cast %83 : vector<16x16x128xf32> to vector<256x128xf32>
    %c0_113 = arith.constant 0 : index
    %c2_114 = arith.constant 2 : index
    %c0_115 = arith.constant 0 : index
    %c0_116 = arith.constant 0 : index
    %85 = vector.load %arg3[%c0_113, %c2_114, %c0_115, %c0_116] : memref<3x3x128x128xf32, #tpu.memory_space<vmem>>, vector<1x1x128x128xf32>
    %86 = vector.shape_cast %85 : vector<1x1x128x128xf32> to vector<128x128xf32>
    %cst_117 = arith.constant dense<0.000000e+00> : vector<256x128xf32>
    %87 = tpu.matmul %84, %86, %cst_117 {dimension_numbers = #tpu.dot_dimension_numbers<[1], [0], [0], [1], [0, 0, 1, 1], [], []>} : vector<256x128xf32>, vector<128x128xf32>, vector<256x128xf32> -> vector<256x128xf32>
    %88 = arith.addf %82, %87 : vector<256x128xf32>
    %c1_118 = arith.constant 1 : index
    %c0_119 = arith.constant 0 : index
    %c0_120 = arith.constant 0 : index
    %89 = vector.load %arg5[%c1_118, %c0_119, %c0_120] : memref<18x18x128xf32, #tpu.memory_space<vmem>>, vector<16x16x128xf32>
    %90 = vector.shape_cast %89 : vector<16x16x128xf32> to vector<256x128xf32>
    %c1_121 = arith.constant 1 : index
    %c0_122 = arith.constant 0 : index
    %c0_123 = arith.constant 0 : index
    %c0_124 = arith.constant 0 : index
    %91 = vector.load %arg3[%c1_121, %c0_122, %c0_123, %c0_124] : memref<3x3x128x128xf32, #tpu.memory_space<vmem>>, vector<1x1x128x128xf32>
    %92 = vector.shape_cast %91 : vector<1x1x128x128xf32> to vector<128x128xf32>
    %cst_125 = arith.constant dense<0.000000e+00> : vector<256x128xf32>
    %93 = tpu.matmul %90, %92, %cst_125 {dimension_numbers = #tpu.dot_dimension_numbers<[1], [0], [0], [1], [0, 0, 1, 1], [], []>} : vector<256x128xf32>, vector<128x128xf32>, vector<256x128xf32> -> vector<256x128xf32>
    %94 = arith.addf %88, %93 : vector<256x128xf32>
    %c1_126 = arith.constant 1 : index
    %c1_127 = arith.constant 1 : index
    %c0_128 = arith.constant 0 : index
    %95 = vector.load %arg5[%c1_126, %c1_127, %c0_128] : memref<18x18x128xf32, #tpu.memory_space<vmem>>, vector<16x16x128xf32>
    %96 = vector.shape_cast %95 : vector<16x16x128xf32> to vector<256x128xf32>
    %c1_129 = arith.constant 1 : index
    %c1_130 = arith.constant 1 : index
    %c0_131 = arith.constant 0 : index
    %c0_132 = arith.constant 0 : index
    %97 = vector.load %arg3[%c1_129, %c1_130, %c0_131, %c0_132] : memref<3x3x128x128xf32, #tpu.memory_space<vmem>>, vector<1x1x128x128xf32>
    %98 = vector.shape_cast %97 : vector<1x1x128x128xf32> to vector<128x128xf32>
    %cst_133 = arith.constant dense<0.000000e+00> : vector<256x128xf32>
    %99 = tpu.matmul %96, %98, %cst_133 {dimension_numbers = #tpu.dot_dimension_numbers<[1], [0], [0], [1], [0, 0, 1, 1], [], []>} : vector<256x128xf32>, vector<128x128xf32>, vector<256x128xf32> -> vector<256x128xf32>
    %100 = arith.addf %94, %99 : vector<256x128xf32>
    %c1_134 = arith.constant 1 : index
    %c2_135 = arith.constant 2 : index
    %c0_136 = arith.constant 0 : index
    %101 = vector.load %arg5[%c1_134, %c2_135, %c0_136] : memref<18x18x128xf32, #tpu.memory_space<vmem>>, vector<16x16x128xf32>
    %102 = vector.shape_cast %101 : vector<16x16x128xf32> to vector<256x128xf32>
    %c1_137 = arith.constant 1 : index
    %c2_138 = arith.constant 2 : index
    %c0_139 = arith.constant 0 : index
    %c0_140 = arith.constant 0 : index
    %103 = vector.load %arg3[%c1_137, %c2_138, %c0_139, %c0_140] : memref<3x3x128x128xf32, #tpu.memory_space<vmem>>, vector<1x1x128x128xf32>
    %104 = vector.shape_cast %103 : vector<1x1x128x128xf32> to vector<128x128xf32>
    %cst_141 = arith.constant dense<0.000000e+00> : vector<256x128xf32>
    %105 = tpu.matmul %102, %104, %cst_141 {dimension_numbers = #tpu.dot_dimension_numbers<[1], [0], [0], [1], [0, 0, 1, 1], [], []>} : vector<256x128xf32>, vector<128x128xf32>, vector<256x128xf32> -> vector<256x128xf32>
    %106 = arith.addf %100, %105 : vector<256x128xf32>
    %c2_142 = arith.constant 2 : index
    %c0_143 = arith.constant 0 : index
    %c0_144 = arith.constant 0 : index
    %107 = vector.load %arg5[%c2_142, %c0_143, %c0_144] : memref<18x18x128xf32, #tpu.memory_space<vmem>>, vector<16x16x128xf32>
    %108 = vector.shape_cast %107 : vector<16x16x128xf32> to vector<256x128xf32>
    %c2_145 = arith.constant 2 : index
    %c0_146 = arith.constant 0 : index
    %c0_147 = arith.constant 0 : index
    %c0_148 = arith.constant 0 : index
    %109 = vector.load %arg3[%c2_145, %c0_146, %c0_147, %c0_148] : memref<3x3x128x128xf32, #tpu.memory_space<vmem>>, vector<1x1x128x128xf32>
    %110 = vector.shape_cast %109 : vector<1x1x128x128xf32> to vector<128x128xf32>
    %cst_149 = arith.constant dense<0.000000e+00> : vector<256x128xf32>
    %111 = tpu.matmul %108, %110, %cst_149 {dimension_numbers = #tpu.dot_dimension_numbers<[1], [0], [0], [1], [0, 0, 1, 1], [], []>} : vector<256x128xf32>, vector<128x128xf32>, vector<256x128xf32> -> vector<256x128xf32>
    %112 = arith.addf %106, %111 : vector<256x128xf32>
    %c2_150 = arith.constant 2 : index
    %c1_151 = arith.constant 1 : index
    %c0_152 = arith.constant 0 : index
    %113 = vector.load %arg5[%c2_150, %c1_151, %c0_152] : memref<18x18x128xf32, #tpu.memory_space<vmem>>, vector<16x16x128xf32>
    %114 = vector.shape_cast %113 : vector<16x16x128xf32> to vector<256x128xf32>
    %c2_153 = arith.constant 2 : index
    %c1_154 = arith.constant 1 : index
    %c0_155 = arith.constant 0 : index
    %c0_156 = arith.constant 0 : index
    %115 = vector.load %arg3[%c2_153, %c1_154, %c0_155, %c0_156] : memref<3x3x128x128xf32, #tpu.memory_space<vmem>>, vector<1x1x128x128xf32>
    %116 = vector.shape_cast %115 : vector<1x1x128x128xf32> to vector<128x128xf32>
    %cst_157 = arith.constant dense<0.000000e+00> : vector<256x128xf32>
    %117 = tpu.matmul %114, %116, %cst_157 {dimension_numbers = #tpu.dot_dimension_numbers<[1], [0], [0], [1], [0, 0, 1, 1], [], []>} : vector<256x128xf32>, vector<128x128xf32>, vector<256x128xf32> -> vector<256x128xf32>
    %118 = arith.addf %112, %117 : vector<256x128xf32>
    %c2_158 = arith.constant 2 : index
    %c2_159 = arith.constant 2 : index
    %c0_160 = arith.constant 0 : index
    %119 = vector.load %arg5[%c2_158, %c2_159, %c0_160] : memref<18x18x128xf32, #tpu.memory_space<vmem>>, vector<16x16x128xf32>
    %120 = vector.shape_cast %119 : vector<16x16x128xf32> to vector<256x128xf32>
    %c2_161 = arith.constant 2 : index
    %c2_162 = arith.constant 2 : index
    %c0_163 = arith.constant 0 : index
    %c0_164 = arith.constant 0 : index
    %121 = vector.load %arg3[%c2_161, %c2_162, %c0_163, %c0_164] : memref<3x3x128x128xf32, #tpu.memory_space<vmem>>, vector<1x1x128x128xf32>
    %122 = vector.shape_cast %121 : vector<1x1x128x128xf32> to vector<128x128xf32>
    %cst_165 = arith.constant dense<0.000000e+00> : vector<256x128xf32>
    %123 = tpu.matmul %120, %122, %cst_165 {dimension_numbers = #tpu.dot_dimension_numbers<[1], [0], [0], [1], [0, 0, 1, 1], [], []>} : vector<256x128xf32>, vector<128x128xf32>, vector<256x128xf32> -> vector<256x128xf32>
    %124 = arith.addf %118, %123 : vector<256x128xf32>
    %c0_166 = arith.constant 0 : index
    %c1_167 = arith.constant 1 : index
    %c1_168 = arith.constant 1 : index
    %c0_169 = arith.constant 0 : index
    %125 = vector.load %arg1[%c0_166, %c1_167, %c1_168, %c0_169] : memref<1x18x18x128xf32, #tpu.memory_space<vmem>>, vector<1x16x16x128xf32>
    %126 = vector.shape_cast %125 : vector<1x16x16x128xf32> to vector<16x16x128xf32>
    %127 = vector.shape_cast %126 : vector<16x16x128xf32> to vector<256x128xf32>
    %128 = arith.addf %124, %127 : vector<256x128xf32>
    %cst_170 = arith.constant 0.000000e+00 : f32
    %129 = vector.broadcast %cst_170 : f32 to vector<256x128xf32>
    %130 = arith.maximumf %128, %129 : vector<256x128xf32>
    %c0_171 = arith.constant 0 : index
    %c0_172 = arith.constant 0 : index
    %c0_173 = arith.constant 0 : index
    %131 = vector.load %arg4[%c0_171, %c0_172, %c0_173] : memref<1x256x128xf32, #tpu.memory_space<vmem>>, vector<1x256x128xf32>
    %132 = vector.shape_cast %131 : vector<1x256x128xf32> to vector<256x128xf32>
    %133 = vector.shape_cast %130 : vector<256x128xf32> to vector<1x256x128xf32>
    tpu.vector_store %arg4[%c0_171, %c0_172, %c0_173], %133 {strides = array<i32>} : memref<1x256x128xf32, #tpu.memory_space<vmem>>, vector<1x256x128xf32>,
    return
  }
  func.func @transform_0(%arg0: i32) -> (i32, i32, i32, i32) {
    %c0_i32 = arith.constant 0 : i32
    %c0_i32_0 = arith.constant 0 : i32
    %c0_i32_1 = arith.constant 0 : i32
    %c0_i32_2 = arith.constant 0 : i32
    return %arg0, %c0_i32, %c0_i32_0, %c0_i32_1 : i32, i32, i32, i32
  }
  func.func @transform_1(%arg0: i32) -> (i32, i32, i32, i32) {
    %c0_i32 = arith.constant 0 : i32
    %c0_i32_0 = arith.constant 0 : i32
    %c0_i32_1 = arith.constant 0 : i32
    %c0_i32_2 = arith.constant 0 : i32
    %c0_i32_3 = arith.constant 0 : i32
    return %c0_i32, %c0_i32_0, %c0_i32_1, %c0_i32_2 : i32, i32, i32, i32
  }
  func.func @transform_2(%arg0: i32) -> (i32, i32, i32, i32) {
    %c0_i32 = arith.constant 0 : i32
    %c0_i32_0 = arith.constant 0 : i32
    %c0_i32_1 = arith.constant 0 : i32
    %c0_i32_2 = arith.constant 0 : i32
    %c0_i32_3 = arith.constant 0 : i32
    return %c0_i32, %c0_i32_0, %c0_i32_1, %c0_i32_2 : i32, i32, i32, i32
  }
  func.func @transform_3(%arg0: i32) -> (i32, i32, i32) {
    %c0_i32 = arith.constant 0 : i32
    %c0_i32_0 = arith.constant 0 : i32
    %c0_i32_1 = arith.constant 0 : i32
    return %arg0, %c0_i32, %c0_i32_0 : i32, i32, i32
  }
}

</mosaic_0001>

<bundles_post_ra>
// kernel: tpu_custom_call.1
= control target key start
LH: loop header
LB: loop body
LE: loop exit
PB: predicated region body
PF: predicated region fallthrough
CT: control target
= control target key end

     0   :  { %8 = vsyncpa [#allocation4], 0  ;;  %s6451_s0 = inlined_call_operand.vmem [shape: f32[2,18,18,128], index: 0, kind: input, shape index: {}]   ;;  %s6452_s1 = inlined_call_operand.vmem [shape: f32[3,3,128,128], index: 1, kind: input, shape index: {}]   ;;  %s6453_s2 = inlined_call_operand.hbm [shape: f32[3,3,128,128], index: 2, kind: input, shape index: {}]   ;;  %s6454_s3 = inlined_call_operand.hbm [shape: f32[2,256,128], index: 3, kind: output, shape index: {}]  }
   0x1   :  { %9 = vsyncpa [#allocation5], 0 }
   0x2   :  { %11 = vsyncpa [#allocation5 + $0x1], 0  ;;  %s4455_s12 = smov 0   ;;  %s4457_s13 = smov 0  }
   0x3   :  { %s4459_s14 = smov 0   ;;  %s4461_s15 = smov 0  }
   0x4 LB: > { %s4476_s16 = sadd.s32 4294967295, %s4427_s15   ;;  %s3873_s17 = sadd.s32 4294967294, %s4427_s15   ;;  %s4427_s15 = sphi %s4461_s15, %s6554_s15   ;;  %s4423_s14 = sphi %s4459_s14, %s6553_s14   ;;  %s4419_s13 = sphi %s4457_s13, %s6552_s13   ;;  %s4415_s12 = sphi %s4455_s12, %s6551_s12  }
   0x5   : > { %s4480_s18 = sadd.s32 1, %s4427_s15   ;;  %s92_s19 = sadd.s32 1, %s4423_s14 }
   0x6   : > { %s89_s20 = ssub.s32 %s4427_s15, %s4480_s18  ;;  %p102_p0 = scmp.ne.s32.totalorder %s4423_s14, %s4419_s13 }
   0x7   : > { %p90_p1 = scmp.eq.s32.totalorder %s89_s20, 0  ;;  %p103_p2 = scmp.eq.s32.totalorder %s4476_s16, 1 }
   0x8   : > { %p108_p3 = scmp.ne.s32.totalorder %s4419_s13, %s4415_s12  ;;  %p109_p4 = scmp.eq.s32.totalorder %s3873_s17, 1 }
   0x9   : > { %s4491_s21 = scalar_select %p90_p1, %s4423_s14, %s92_s19  }
   0xa   : > { %p4493_p5 = por %p103_p2, %p102_p0  ;;  %p4497_p6 = por %p109_p4, %p108_p3 }
   0xb   : > { %p3874_p7 = scmp.ge.s32.totalorder %s4427_s15, 1  ;;  %p116_p8 = scmp.lt.s32.totalorder %s4427_s15, 3 }
   0xc   : > { %p4286_p9 = scmp.eq.s32.totalorder %s4476_s16, 0  ;;  %s130_s26 = sshll.u32 %s6453_s2, 4  ;;  %s131_s26 = int_to_ptr.hbm [resolvable:$true] %s130_s26 }
   0xd   : > { %p117_p10 = pnand %p3874_p7, %p116_p8  ;;  %s4429_s27 = smov [#allocation3]  }
   0xe   : > { %s132_s28 = sshll.u32 %s4429_s27, 4  ;;  %s4430_s29 = smov 128   ;;  %s133_s28 = int_to_ptr.vmem [resolvable:$true] %s132_s28 }
   0xf   : > { %p4278_p11 = pneg %p117_p10  ;;  %s4431_s30 = smov 8  }
  0x10   : > { %156 = sbr.rel (%p117_p10) target bundleno = 1459 (0x5b3), region = 32 }
  0x11   : > { %p4279_p12 = pnand %p4286_p9, %p4278_p11 }
  0x13   : > { %4281 = dma.hbm_to_vmem [thread:$0]  (!%p4279_p12), %s131_s26, 18432, %s133_s28, [#allocation4], %s4430_s29, %s4430_s29, %s4431_s30  }
  0x15   : > { %4406 = dma.done.wait (%p4286_p9), [#allocation4], 18432  }
  0x16   : > { %4408 = vsyncadd (%p4286_p9), [#allocation4], 4294948864  ;;  %v3896_v0 = vld [vmem:[%s6452_s1 + $0xf8] sm:$0xff]  ;;  %v3895_v2 = vld [vmem:[%s6452_s1 + $0xf0] sm:$0xff]  ;;  %p181_p13 = scmp.lt.s32.totalorder %s4476_s16, 1  ;;  %s178_s4 = sand.u32 1, %s4419_s13  }
  0x17   : > { %v233_v1 = vld [vmem:[%s6452_s1 + $0x78] sm:$0xff]  ;;  %283 = vmatpush.msra.mxu0 %v3896_v0  ;;  %4239 = vmatpush.msra.mxu2 %v3896_v0  ;;  %v232_v3 = vld [vmem:[%s6452_s1 + $0x70] sm:$0xff]  ;;  %v3894_v4 = vld [vmem:[%s6452_s1 + $0xe8] sm:$0xff]  ;;  %s3879_s5 = sshll.u32 %s178_s4, 8  ;;  %s4238_s7 = sshll.u32 %s4476_s16, 8 }
  0x18   : > { %4255 = vmatpush.msra.mxu3 %v233_v1  ;;  %396 = vmatpush.msra.mxu1 %v233_v1  ;;  %v231_v5 = vld [vmem:[%s6452_s1 + $0x68] sm:$0xff]  ;;  %v3893_v6 = vld [vmem:[%s6452_s1 + $0xe0] sm:$0xff]  ;;  %v3892_v8 = vld [vmem:[%s6452_s1 + $0xd8] sm:$0xff]  ;;  %s182_s10 = scalar_select %p181_p13, %s4476_s16, 1 }
  0x19   : > { %284 = vmatpush.msra.mxu0 %v3895_v2  ;;  %4240 = vmatpush.msra.mxu2 %v3895_v2  ;;  %v230_v7 = vld [vmem:[%s6452_s1 + $0x60] sm:$0xff]  ;;  %v229_v9 = vld [vmem:[%s6452_s1 + $0x58] sm:$0xff]  ;;  %v3891_v10 = vld [vmem:[%s6452_s1 + $0xd0] sm:$0xff]  ;;  %s6214_s6 = scalar_lea.vmem [#allocation6], %s3879_s5  ;;  %s3784_s16 = scalar_lea.sflag [#allocation5], %s178_s4 }
  0x1a   : > { %4256 = vmatpush.msra.mxu3 %v232_v3  ;;  %397 = vmatpush.msra.mxu1 %v232_v3  ;;  %v228_v11 = vld [vmem:[%s6452_s1 + $0x50] sm:$0xff]  ;;  %v3890_v12 = vld [vmem:[%s6452_s1 + $0xc8] sm:$0xff]  ;;  %v3889_v14 = vld [vmem:[%s6452_s1 + $0xc0] sm:$0xff]  ;;  %s4271_s28 = smul.u32 432, %s182_s10  ;;  %s3795_s10 = scalar_lea.hbm %s6454_s3, %s4238_s7 }
  0x1b   : > { %285 = vmatpush.msra.mxu0 %v3894_v4  ;;  %4241 = vmatpush.msra.mxu2 %v3894_v4  ;;  %v227_v13 = vld [vmem:[%s6452_s1 + $0x48] sm:$0xff]  ;;  %v226_v15 = vld [vmem:[%s6452_s1 + $0x40] sm:$0xff]  ;;  %v3888_v16 = vld [vmem:[%s6452_s1 + $0xb8] sm:$0xff]  ;;  %s3796_s11 = sshll.u32 %s6214_s6, 4  ;;  %s3798_s19 = sshll.u32 %s3795_s10, 4  ;;  %s3797_s11 = int_to_ptr.vmem [resolvable:$true] %s3796_s11  ;;  %s3799_s19 = int_to_ptr.hbm [resolvable:$true] %s3798_s19 }
  0x1c   : > { %4257 = vmatpush.msra.mxu3 %v231_v5  ;;  %398 = vmatpush.msra.mxu1 %v231_v5  ;;  %v225_v17 = vld [vmem:[%s6452_s1 + $0x38] sm:$0xff]  ;;  %v3887_v18 = vld [vmem:[%s6452_s1 + $0xb0] sm:$0xff]  ;;  %v3886_v20 = vld [vmem:[%s6452_s1 + $0xa8] sm:$0xff]  ;;  %s4605_s17 = scalar_lea.vmem %s6451_s0, %s4271_s28  ;;  %s4375_s20 = sshra.s32 %s3799_s19, 4  ;;  %s4376_s20 = int_to_ptr.hbm [resolvable:$true] %s4375_s20 }
  0x1d   : > { %286 = vmatpush.msra.mxu0 %v3893_v6  ;;  %4242 = vmatpush.msra.mxu2 %v3893_v6  ;;  %v224_v19 = vld [vmem:[%s6452_s1 + $0x30] sm:$0xff]  ;;  %v223_v21 = vld [vmem:[%s6452_s1 + $0x28] sm:$0xff]  ;;  %v3885_v22 = vld [vmem:[%s6452_s1 + $0xa0] sm:$0xff]  ;;  %s4377_s24 = scalar_lea.hbm %s4376_s20, 256  ;;  %p4382_p3 = scmp.lt.s32.totalorder %s4376_s20, %s6454_s3 }
  0x1e   : > { %4258 = vmatpush.msra.mxu3 %v230_v7  ;;  %399 = vmatpush.msra.mxu1 %v230_v7  ;;  %v222_v23 = vld [vmem:[%s6452_s1 + $0x20] sm:$0xff]  ;;  %v3884_v24 = vld [vmem:[%s6452_s1 + $0x98] sm:$0xff]  ;;  %v3883_v26 = vld [vmem:[%s6452_s1 + $0x90] sm:$0xff]  ;;  %p4378_p0 = scmp.ne.s32.totalorder %s4376_s20, %s4377_s24 }
  0x1f   : > { %287 = vmatpush.msra.mxu0 %v3892_v8  ;;  %4243 = vmatpush.msra.mxu2 %v3892_v8  ;;  %v221_v25 = vld [vmem:[%s6452_s1 + $0x18] sm:$0xff]  ;;  %v220_v27 = vld [vmem:[%s6452_s1 + $0x10] sm:$0xff]  ;;  %v3882_v28 = vld [vmem:[%s6452_s1 + $0x88] sm:$0xff] }
  0x20   : > { %4259 = vmatpush.msra.mxu3 %v229_v9  ;;  %400 = vmatpush.msra.mxu1 %v229_v9  ;;  %v219_v29 = vld [vmem:[%s6452_s1 + $0x8] sm:$0xff]  ;;  %v3881_v30 = vld [vmem:[%s6452_s1 + $0x80] sm:$0xff]  ;;  %v3912_v35 = vld [vmem:[%s6452_s1 + $0x178] sm:$0xff]  ;;  %p4379_p1 = pnand %p4378_p0, %p4493_p5 }
  0x21   : > { %288 = vmatpush.msra.mxu0 %v3891_v10  ;;  %4244 = vmatpush.msra.mxu2 %v3891_v10  ;;  %v218_v31 = vld [vmem:[%s6452_s1] sm:$0xff]  ;;  %v3960_v36 = vld [vmem:[%s6452_s1 + $0x1f8] sm:$0xff]  ;;  %v3911_v38 = vld [vmem:[%s6452_s1 + $0x170] sm:$0xff] }
  0x22   : > { %4260 = vmatpush.msra.mxu3 %v228_v11  ;;  %401 = vmatpush.msra.mxu1 %v228_v11  ;;  %v234_v32 = vld [vmem:[%s4605_s17 + $0x1] sm:$0xff]  ;;  %v4008_v37 = vld [vmem:[%s6452_s1 + $0x278] sm:$0xff]  ;;  %v3959_v40 = vld [vmem:[%s6452_s1 + $0x1f0] sm:$0xff]  ;;  %p4380_p2 = pneg %p4379_p1 }
  0x23   : > { %289 = vmatpush.msra.mxu0 %v3890_v12  ;;  %4245 = vmatpush.msra.mxu2 %v3890_v12  ;;  %v4618_v33 = vld [vmem:[%s4605_s17 + $0xc1] sm:$0xff]  ;;  %v4007_v41 = vld [vmem:[%s6452_s1 + $0x270] sm:$0xff]  ;;  %v3908_v50 = vld [vmem:[%s6452_s1 + $0x158] sm:$0xff] }
  0x24   : > { %4261 = vmatpush.msra.mxu3 %v227_v13  ;;  %402 = vmatpush.msra.mxu1 %v227_v13  ;;  %v4621_v34 = vld [vmem:[%s4605_s17 + $0xc0] sm:$0xff]  ;;  %v3910_v42 = vld [vmem:[%s6452_s1 + $0x168] sm:$0xff]  ;;  %v3956_v53 = vld [vmem:[%s6452_s1 + $0x1d8] sm:$0xff] }
  0x25   : > { %290 = vmatpush.msra.mxu0 %v3889_v14  ;;  %4246 = vmatpush.msra.mxu2 %v3889_v14  ;;  %v186_v39 = vld [vmem:[%s4605_s17] sm:$0xff]  ;;  %v3958_v43 = vld [vmem:[%s6452_s1 + $0x1e8] sm:$0xff]  ;;  %v3907_v54 = vld [vmem:[%s6452_s1 + $0x150] sm:$0xff] }
  0x26   : > { %4262 = vmatpush.msra.mxu3 %v226_v15  ;;  %403 = vmatpush.msra.mxu1 %v226_v15  ;;  %v4006_v44 = vld [vmem:[%s6452_s1 + $0x268] sm:$0xff]  ;;  %v3909_v46 = vld [vmem:[%s6452_s1 + $0x160] sm:$0xff]  ;;  %v4004_v55 = vld [vmem:[%s6452_s1 + $0x258] sm:$0xff] }
  0x27   : > { %291 = vmatpush.msra.mxu0 %v3888_v16  ;;  %4247 = vmatpush.msra.mxu2 %v3888_v16  ;;  %v235_v45 = vld [vmem:[%s4605_s17 + $0x9] sm:$0xff]  ;;  %v3957_v49 = vld [vmem:[%s6452_s1 + $0x1e0] sm:$0xff]  ;;  %v4694_v59 = vld [vmem:[%s4605_s17 + $0xd8] sm:$0xff] }
  0x28   : > { %4263 = vmatpush.msra.mxu3 %v225_v17  ;;  %404 = vmatpush.msra.mxu1 %v225_v17  ;;  %v4658_v47 = vld [vmem:[%s4605_s17 + $0xc9] sm:$0xff]  ;;  %v4005_v51 = vld [vmem:[%s6452_s1 + $0x260] sm:$0xff]  ;;  %v4700_v60 = vld [vmem:[%s4605_s17 + $0x18] sm:$0xff] }
  0x29   : > { %292 = vmatpush.msra.mxu0 %v3887_v18  ;;  %4248 = vmatpush.msra.mxu2 %v3887_v18  ;;  %v4661_v48 = vld [vmem:[%s4605_s17 + $0xc8] sm:$0xff]  ;;  %v3955_v56 = vld [vmem:[%s6452_s1 + $0x1d0] sm:$0xff]  ;;  %v4688_v57 = vld [vmem:[%s4605_s17 + $0x19] sm:$0xff] }
  0x2a   : > { %4264 = vmatpush.msra.mxu3 %v224_v19  ;;  %405 = vmatpush.msra.mxu1 %v224_v19  ;;  %v187_v52 = vld [vmem:[%s4605_s17 + $0x8] sm:$0xff]  ;;  %v4691_v58 = vld [vmem:[%s4605_s17 + $0xd9] sm:$0xff]  ;;  %v4003_v63 = vld [vmem:[%s6452_s1 + $0x250] sm:$0xff] }
  0x2b   : > { %293 = vmatpush.msra.mxu0 %v3886_v20  ;;  %4249 = vmatpush.msra.mxu2 %v3886_v20  ;;  %v3906_v61 = vld [vmem:[%s6452_s1 + $0x148] sm:$0xff]  ;;  %v4719_v2 = vld [vmem:[%s4605_s17 + $0xe0] sm:$0xff]  ;;  %v4738_v7 = vld [vmem:[%s4605_s17 + $0x31] sm:$0xff] }
  0x2c   : > { %4265 = vmatpush.msra.mxu3 %v223_v21  ;;  %406 = vmatpush.msra.mxu1 %v223_v21  ;;  %v3954_v62 = vld [vmem:[%s6452_s1 + $0x1c8] sm:$0xff]  ;;  %v4725_v3 = vld [vmem:[%s4605_s17 + $0x20] sm:$0xff]  ;;  %v254_v8 = vld [vmem:[%s4605_s17 + $0xf1] sm:$0xff] }
  0x2d   : > { %294 = vmatpush.msra.mxu0 %v3885_v22  ;;  %4250 = vmatpush.msra.mxu2 %v3885_v22  ;;  %v4713_v0 = vld [vmem:[%s4605_s17 + $0x21] sm:$0xff]  ;;  %v4742_v9 = vld [vmem:[%s4605_s17 + $0xf0] sm:$0xff]  ;;  %v3904_v11 = vld [vmem:[%s6452_s1 + $0x138] sm:$0xff] }
  0x2e   : > { %4266 = vmatpush.msra.mxu3 %v222_v23  ;;  %407 = vmatpush.msra.mxu1 %v222_v23  ;;  %v4716_v1 = vld [vmem:[%s4605_s17 + $0xe1] sm:$0xff]  ;;  %v4747_v10 = vld [vmem:[%s4605_s17 + $0x30] sm:$0xff]  ;;  %v3952_v12 = vld [vmem:[%s6452_s1 + $0x1b8] sm:$0xff] }
  0x2f   : > { %295 = vmatpush.msra.mxu0 %v3884_v24  ;;  %4251 = vmatpush.msra.mxu2 %v3884_v24  ;;  %v3905_v4 = vld [vmem:[%s6452_s1 + $0x140] sm:$0xff]  ;;  %v4002_v6 = vld [vmem:[%s6452_s1 + $0x248] sm:$0xff]  ;;  %v207_v16 = vld [vmem:[%s4605_s17 + $0xf8] sm:$0xff] }
  0x30   : > { %4267 = vmatpush.msra.mxu3 %v221_v25  ;;  %408 = vmatpush.msra.mxu1 %v221_v25  ;;  %v3953_v5 = vld [vmem:[%s6452_s1 + $0x1c0] sm:$0xff]  ;;  %v4766_v17 = vld [vmem:[%s4605_s17 + $0x38] sm:$0xff]  ;;  %v3903_v18 = vld [vmem:[%s6452_s1 + $0x130] sm:$0xff] }
  0x31   : > { %296 = vmatpush.msra.mxu0 %v3883_v26  ;;  %4252 = vmatpush.msra.mxu2 %v3883_v26  ;;  %v4001_v13 = vld [vmem:[%s6452_s1 + $0x240] sm:$0xff]  ;;  %v3951_v19 = vld [vmem:[%s6452_s1 + $0x1b0] sm:$0xff]  ;;  %v4000_v20 = vld [vmem:[%s6452_s1 + $0x238] sm:$0xff] }
  0x32   : > { %4268 = vmatpush.msra.mxu3 %v220_v27  ;;  %409 = vmatpush.msra.mxu1 %v220_v27  ;;  %v4760_v14 = vld [vmem:[%s4605_s17 + $0x39] sm:$0xff]  ;;  %v4779_v21 = vld [vmem:[%s4605_s17 + $0x49] sm:$0xff] }
  0x33   : > { %297 = vmatpush.msra.mxu0 %v3882_v28  ;;  %4253 = vmatpush.msra.mxu2 %v3882_v28  ;;  %v255_v15 = vld [vmem:[%s4605_s17 + $0xf9] sm:$0xff]  ;;  %v256_v22 = vld [vmem:[%s4605_s17 + $0x109] sm:$0xff]  ;;  %v4798_v28 = vld [vmem:[%s4605_s17 + $0x51] sm:$0xff] }
  0x34   : > { %4269 = vmatpush.msra.mxu3 %v219_v29  ;;  %410 = vmatpush.msra.mxu1 %v219_v29  ;;  %v208_v23 = vld [vmem:[%s4605_s17 + $0x108] sm:$0xff]  ;;  %v3999_v27 = vld [vmem:[%s6452_s1 + $0x230] sm:$0xff] }
  0x35   : > { %298 = vmatpush.msra.mxu0 %v3881_v30  ;;  %4254 = vmatpush.msra.mxu2 %v3881_v30  ;;  %v4785_v24 = vld [vmem:[%s4605_s17 + $0x48] sm:$0xff]  ;;  %v257_v29 = vld [vmem:[%s4605_s17 + $0x111] sm:$0xff] }
  0x36   : > { %4270 = vmatpush.msra.mxu3 %v218_v31  ;;  %299 = vmatmul.f32.vlgmr.msra.gmra.mxu0 %v234_v32  ;;  %v3902_v25 = vld [vmem:[%s6452_s1 + $0x128] sm:$0xff]  ;;  %v209_v30 = vld [vmem:[%s4605_s17 + $0x110] sm:$0xff]  ;;  %v3901_v32 = vld [vmem:[%s6452_s1 + $0x120] sm:$0xff] }
  0x37   : > { %347 = vmatmul.f32.vlgmr.msra.gmra.mxu2 %v4618_v33  ;;  %460 = vmatmul.f32.vlgmr.msra.gmra.mxu3 %v4621_v34  ;;  %v3950_v26 = vld [vmem:[%s6452_s1 + $0x1a8] sm:$0xff] }
  0x38   : > { %558 = vmatpush.msrb.mxu2 %v3912_v35  ;;  %753 = vmatpush.msrb.mxu3 %v3960_v36  ;;  %v3949_v35 = vld [vmem:[%s6452_s1 + $0x1a0] sm:$0xff]  ;;  %v3998_v36 = vld [vmem:[%s6452_s1 + $0x228] sm:$0xff] }
  0x39   : > { %411 = vmatpush.msra.mxu1 %v218_v31  ;;  %947 = vmatpush.msrb.mxu0 %v4008_v37  ;;  %v4804_v31 = vld [vmem:[%s4605_s17 + $0x50] sm:$0xff]  ;;  %v4817_v37 = vld [vmem:[%s4605_s17 + $0x61] sm:$0xff] }
  0x3a   : > { %559 = vmatpush.msrb.mxu2 %v3911_v38  ;;  %412 = vmatmul.f32.vlgmr.msra.gmra.mxu1 %v186_v39  ;;  %v258_v38 = vld [vmem:[%s4605_s17 + $0x121] sm:$0xff] }
  0x3b   : > { %754 = vmatpush.msrb.mxu3 %v3959_v40  ;;  %948 = vmatpush.msrb.mxu0 %v4007_v41  ;;  %v210_v39 = vld [vmem:[%s4605_s17 + $0x120] sm:$0xff]  ;;  %v3900_v41 = vld [vmem:[%s6452_s1 + $0x118] sm:$0xff] }
  0x3c   : > { %560 = vmatpush.msrb.mxu2 %v3910_v42  ;;  %v4823_v40 = vld [vmem:[%s4605_s17 + $0x60] sm:$0xff]  ;;  %v3948_v42 = vld [vmem:[%s6452_s1 + $0x198] sm:$0xff] }
  0x3d   : > { %755 = vmatpush.msrb.mxu3 %v3958_v43  ;;  %949 = vmatpush.msrb.mxu0 %v4006_v44  ;;  %v3997_v43 = vld [vmem:[%s6452_s1 + $0x220] sm:$0xff]  ;;  %v4836_v44 = vld [vmem:[%s4605_s17 + $0x69] sm:$0xff] }
  0x3e   : > { %302 = vmatmul.f32.gmra.mxu0 %v235_v45  ;;  %561 = vmatpush.msrb.mxu2 %v3909_v46  ;;  %v259_v45 = vld [vmem:[%s4605_s17 + $0x129] sm:$0xff] }
  0x3f   : > { %350 = vmatmul.f32.gmra.mxu2 %v4658_v47  ;;  %463 = vmatmul.f32.gmra.mxu3 %v4661_v48  ;;  %v211_v46 = vld [vmem:[%s4605_s17 + $0x128] sm:$0xff] }
  0x40   : > { %756 = vmatpush.msrb.mxu3 %v3957_v49  ;;  %562 = vmatpush.msrb.mxu2 %v3908_v50  ;;  %v4842_v49 = vld [vmem:[%s4605_s17 + $0x68] sm:$0xff]  ;;  %v3899_v50 = vld [vmem:[%s6452_s1 + $0x110] sm:$0xff] }
  0x41   : > { %950 = vmatpush.msrb.mxu0 %v4005_v51  ;;  %v3947_v51 = vld [vmem:[%s6452_s1 + $0x190] sm:$0xff] }
  0x42   : > { %415 = vmatmul.f32.gmra.mxu1 %v187_v52  ;;  %757 = vmatpush.msrb.mxu3 %v3956_v53  ;;  %v3996_v52 = vld [vmem:[%s6452_s1 + $0x218] sm:$0xff] }
  0x43   : > { %563 = vmatpush.msrb.mxu2 %v3907_v54  ;;  %951 = vmatpush.msrb.mxu0 %v4004_v55  ;;  %v4056_v53 = vld [vmem:[%s6452_s1 + $0x2f8] sm:$0xff]  ;;  %v4055_v54 = vld [vmem:[%s6452_s1 + $0x2f0] sm:$0xff] }
  0x44   : > { %758 = vmatpush.msrb.mxu3 %v3955_v56  ;;  %1141 = vmatpush.msrb.mxu1 %v4056_v53  ;;  %v4861_v55 = vld [vmem:[%s4605_s17 + $0x79] sm:$0xff]  ;;  %v4043_v53 = vld [vmem:[%s6452_s1 + $0x290] sm:$0xff] }
  0x45   : > { %564 = vmatpush.msrb.mxu2 %v3906_v61  ;;  %952 = vmatpush.msrb.mxu0 %v4003_v63  ;;  %v260_v56 = vld [vmem:[%s4605_s17 + $0x139] sm:$0xff]  ;;  %v3898_v63 = vld [vmem:[%s6452_s1 + $0x108] sm:$0xff] }
  0x46   : > { %305 = vmatmul.f32.gmra.mxu0 %v4688_v57  ;;  %759 = vmatpush.msrb.mxu3 %v3954_v62  ;;  %v212_v61 = vld [vmem:[%s4605_s17 + $0x138] sm:$0xff] }
  0x47   : > { %353 = vmatmul.f32.gmra.mxu2 %v4691_v58  ;;  %466 = vmatmul.f32.gmra.mxu3 %v4694_v59  ;;  %v4867_v62 = vld [vmem:[%s4605_s17 + $0x78] sm:$0xff] }
  0x48   : > { %565 = vmatpush.msrb.mxu2 %v3905_v4  ;;  %760 = vmatpush.msrb.mxu3 %v3953_v5  ;;  %v4054_v4 = vld [vmem:[%s6452_s1 + $0x2e8] sm:$0xff] }
  0x49   : > { %953 = vmatpush.msrb.mxu0 %v4002_v6  ;;  %1142 = vmatpush.msrb.mxu1 %v4055_v54  ;;  %v3946_v5 = vld [vmem:[%s6452_s1 + $0x188] sm:$0xff]  ;;  %v3995_v6 = vld [vmem:[%s6452_s1 + $0x210] sm:$0xff] }
  0x4a   : > { %418 = vmatmul.f32.gmra.mxu1 %v4700_v60  ;;  %566 = vmatpush.msrb.mxu2 %v3904_v11  ;;  %v4052_v11 = vld [vmem:[%s6452_s1 + $0x2d8] sm:$0xff]  ;;  %v4967_v54 = vld [vmem:[%s4605_s17 + $0xa9] sm:$0xff] }
  0x4b   : > { %761 = vmatpush.msrb.mxu3 %v3952_v12  ;;  %954 = vmatpush.msrb.mxu0 %v4001_v13  ;;  %v4889_v12 = vld [vmem:[%s4605_s17 + $0x81] sm:$0xff] }
  0x4c   : > { %567 = vmatpush.msrb.mxu2 %v3903_v18  ;;  %1143 = vmatpush.msrb.mxu1 %v4054_v4  ;;  %v261_v13 = vld [vmem:[%s4605_s17 + $0x141] sm:$0xff] }
  0x4d   : > { %762 = vmatpush.msrb.mxu3 %v3951_v19  ;;  %955 = vmatpush.msrb.mxu0 %v4000_v20  ;;  %v4898_v18 = vld [vmem:[%s4605_s17 + $0x80] sm:$0xff]  ;;  %v4050_v20 = vld [vmem:[%s6452_s1 + $0x2c8] sm:$0xff] }
  0x4e   : > { %308 = vmatmul.f32.gmra.mxu0 %v4713_v0  ;;  %568 = vmatpush.msrb.mxu2 %v3902_v25  ;;  %v3897_v19 = vld [vmem:[%s6452_s1 + $0x100] sm:$0xff]  ;;  %v4976_v4 = vld [vmem:[%s4605_s17 + $0xa8] sm:$0xff] }
  0x4f   : > { %356 = vmatmul.f32.gmra.mxu2 %v4716_v1  ;;  %469 = vmatmul.f32.gmra.mxu3 %v4719_v2  ;;  %v4049_v25 = vld [vmem:[%s6452_s1 + $0x2c0] sm:$0xff] }
  0x50   : > { %763 = vmatpush.msrb.mxu3 %v3950_v26  ;;  %956 = vmatpush.msrb.mxu0 %v3999_v27  ;;  %v4917_v26 = vld [vmem:[%s4605_s17 + $0x91] sm:$0xff]  ;;  %v3993_v27 = vld [vmem:[%s6452_s1 + $0x200] sm:$0xff] }
  0x51   : > { %569 = vmatpush.msrb.mxu2 %v3901_v32  ;;  %v4048_v32 = vld [vmem:[%s6452_s1 + $0x2b8] sm:$0xff] }
  0x52   : > { %421 = vmatmul.f32.gmra.mxu1 %v4725_v3  ;;  %764 = vmatpush.msrb.mxu3 %v3949_v35  ;;  %v4929_v35 = vld [vmem:[%s4605_s17 + $0x90] sm:$0xff] }
  0x53   : > { %957 = vmatpush.msrb.mxu0 %v3998_v36  ;;  %570 = vmatpush.msrb.mxu2 %v3900_v41  ;;  %v4104_v36 = vld [vmem:[%s6452_s1 + $0x378] sm:$0xff]  ;;  %v4046_v41 = vld [vmem:[%s6452_s1 + $0x2a8] sm:$0xff] }
  0x54   : > { %765 = vmatpush.msrb.mxu3 %v3948_v42  ;;  %v4945_v42 = vld [vmem:[%s4605_s17 + $0x99] sm:$0xff] }
  0x55   : > { %958 = vmatpush.msrb.mxu0 %v3997_v43  ;;  %571 = vmatpush.msrb.mxu2 %v3899_v50  ;;  %v263_v43 = vld [vmem:[%s4605_s17 + $0x159] sm:$0xff] }
  0x56   : > { %311 = vmatmul.f32.gmra.mxu0 %v4738_v7  ;;  %766 = vmatpush.msrb.mxu3 %v3947_v51  ;;  %v4954_v50 = vld [vmem:[%s4605_s17 + $0x98] sm:$0xff] }
  0x57   : > { %359 = vmatmul.f32.gmra.mxu2 %v254_v8  ;;  %472 = vmatmul.f32.gmra.mxu3 %v4742_v9  ;;  %v4053_v8 = vld [vmem:[%s6452_s1 + $0x2e0] sm:$0xff]  ;;  %v4200_v51 = vld [vmem:[%s6452_s1 + $0x478] sm:$0xff] }
  0x58   : > { %959 = vmatpush.msrb.mxu0 %v3996_v52  ;;  %572 = vmatpush.msrb.mxu2 %v3898_v63  ;;  %v4044_v52 = vld [vmem:[%s6452_s1 + $0x298] sm:$0xff]  ;;  %v4042_v63 = vld [vmem:[%s6452_s1 + $0x288] sm:$0xff] }
  0x59   : > { %767 = vmatpush.msrb.mxu3 %v3946_v5  ;;  %1144 = vmatpush.msrb.mxu1 %v4053_v8  ;;  %v4103_v5 = vld [vmem:[%s6452_s1 + $0x370] sm:$0xff]  ;;  %v4041_v8 = vld [vmem:[%s6452_s1 + $0x280] sm:$0xff] }
  0x5a   : > { %424 = vmatmul.f32.gmra.mxu1 %v4747_v10  ;;  %960 = vmatpush.msrb.mxu0 %v3995_v6  ;;  %v4151_v6 = vld [vmem:[%s6452_s1 + $0x3f0] sm:$0xff] }
  0x5b   : > { %1145 = vmatpush.msrb.mxu1 %v4052_v11  ;;  %573 = vmatpush.msrb.mxu2 %v3897_v19  ;;  %v4989_v11 = vld [vmem:[%s4605_s17 + $0xb1] sm:$0xff] }
  0x5c   : > { %v4199_v19 = vld [vmem:[%s6452_s1 + $0x470] sm:$0xff] }
  0x5d   : > { %1336 = vmatpush.msra.mxu2 %v4104_v36  ;;  %v510_v36 = vld [vmem:[%s4605_s17 + $0xa] sm:$0xff] }
  0x5e   : > { %314 = vmatmul.f32.gmra.mxu0 %v4760_v14 }
  0x5f   : > { %362 = vmatmul.f32.gmra.mxu2 %v255_v15  ;;  %475 = vmatmul.f32.gmra.mxu3 %v207_v16  ;;  %v213_v15 = vld [vmem:[%s4605_s17 + $0x140] sm:$0xff]  ;;  %v4051_v16 = vld [vmem:[%s6452_s1 + $0x2d0] sm:$0xff] }
  0x60   : > { %1146 = vmatpush.msrb.mxu1 %v4051_v16  ;;  %1337 = vmatpush.msra.mxu2 %v4103_v5  ;;  %v4995_v16 = vld [vmem:[%s4605_s17 + $0xb0] sm:$0xff]  ;;  %v4012_v5 = vld [vmem:[%s4605_s17 + $0x3a] sm:$0xff] }
  0x62   : > { %427 = vmatmul.f32.gmra.mxu1 %v4766_v17 }
  0x63   : > { %1147 = vmatpush.msrb.mxu1 %v4050_v20 }
  0x65   : > { %1148 = vmatpush.msrb.mxu1 %v4049_v25  ;;  %v4009_v25 = vld [vmem:[%s4605_s17 + $0x1a] sm:$0xff] }
  0x66   : > { %317 = vmatmul.f32.gmra.mxu0 %v4779_v21 }
  0x67   : > { %365 = vmatmul.f32.gmra.mxu2 %v256_v22  ;;  %478 = vmatmul.f32.gmra.mxu3 %v208_v23  ;;  %v3945_v22 = vld [vmem:[%s6452_s1 + $0x180] sm:$0xff]  ;;  %v3994_v23 = vld [vmem:[%s6452_s1 + $0x208] sm:$0xff] }
  0x68   : > { %768 = vmatpush.msrb.mxu3 %v3945_v22  ;;  %961 = vmatpush.msrb.mxu0 %v3994_v23  ;;  %v509_v22 = vld [vmem:[%s4605_s17 + $0x2] sm:$0xff] }
  0x69   : > { %1149 = vmatpush.msrb.mxu1 %v4048_v32 }
  0x6a   : > { %430 = vmatmul.f32.gmra.mxu1 %v4785_v24  ;;  %962 = vmatpush.msrb.mxu0 %v3993_v27  ;;  %v4102_v27 = vld [vmem:[%s6452_s1 + $0x368] sm:$0xff] }
  0x6b   : > { %1338 = vmatpush.msra.mxu2 %v4102_v27 }
  0x6c   : > { %1724 = vmatpush.msra.mxu0 %v4200_v51 }
  0x6e   : > { %320 = vmatmul.f32.gmra.mxu0 %v4798_v28 }
  0x6f   : > { %368 = vmatmul.f32.gmra.mxu2 %v257_v29  ;;  %481 = vmatmul.f32.gmra.mxu3 %v209_v30  ;;  %v262_v29 = vld [vmem:[%s4605_s17 + $0x151] sm:$0xff] }
  0x70   : > { %v214_v30 = vld [vmem:[%s4605_s17 + $0x150] sm:$0xff]  ;;  %1725 = vmatpush.msra.mxu0 %v4199_v19 }
  0x72   : > { %433 = vmatmul.f32.gmra.mxu1 %v4804_v31 }
  0x76   : > { %323 = vmatmul.f32.gmra.mxu0 %v4817_v37 }
  0x77   : > { %371 = vmatmul.f32.gmra.mxu2 %v258_v38  ;;  %484 = vmatmul.f32.gmra.mxu3 %v210_v39  ;;  %v4047_v38 = vld [vmem:[%s6452_s1 + $0x2b0] sm:$0xff]  ;;  %v4152_v39 = vld [vmem:[%s6452_s1 + $0x3f8] sm:$0xff] }
  0x78   : > { %1530 = vmatpush.msra.mxu3 %v4152_v39  ;;  %1150 = vmatpush.msrb.mxu1 %v4047_v38  ;;  %v4010_v39 = vld [vmem:[%s4605_s17 + $0x22] sm:$0xff] }
  0x7a   : > { %436 = vmatmul.f32.gmra.mxu1 %v4823_v40  ;;  %1531 = vmatpush.msra.mxu3 %v4151_v6  ;;  %v4197_v6 = vld [vmem:[%s6452_s1 + $0x460] sm:$0xff] }
  0x7b   : > { %1151 = vmatpush.msrb.mxu1 %v4046_v41  ;;  %v4198_v41 = vld [vmem:[%s6452_s1 + $0x468] sm:$0xff] }
  0x7c   : > { %1726 = vmatpush.msra.mxu0 %v4198_v41 }
  0x7e   : > { %326 = vmatmul.f32.gmra.mxu0 %v4836_v44 }
  0x7f   : > { %374 = vmatmul.f32.gmra.mxu2 %v259_v45  ;;  %487 = vmatmul.f32.gmra.mxu3 %v211_v46  ;;  %v215_v45 = vld [vmem:[%s4605_s17 + $0x158] sm:$0xff]  ;;  %v4045_v46 = vld [vmem:[%s6452_s1 + $0x2a0] sm:$0xff] }
  0x80   : > { %1152 = vmatpush.msrb.mxu1 %v4045_v46  ;;  %1727 = vmatpush.msra.mxu0 %v4197_v6  ;;  %v4195_v6 = vld [vmem:[%s6452_s1 + $0x450] sm:$0xff] }
  0x82   : > { %439 = vmatmul.f32.gmra.mxu1 %v4842_v49 }
  0x83   : > { %1153 = vmatpush.msrb.mxu1 %v4044_v52  ;;  %v4101_v52 = vld [vmem:[%s6452_s1 + $0x360] sm:$0xff] }
  0x84   : > { %1339 = vmatpush.msra.mxu2 %v4101_v52  ;;  %v4147_v52 = vld [vmem:[%s6452_s1 + $0x3d0] sm:$0xff] }
  0x85   : > { %1154 = vmatpush.msrb.mxu1 %v4043_v53  ;;  %v4149_v53 = vld [vmem:[%s6452_s1 + $0x3e0] sm:$0xff] }
  0x86   : > { %329 = vmatmul.f32.gmra.mxu0 %v4861_v55 }
  0x87   : > { %377 = vmatmul.f32.gmra.mxu2 %v260_v56  ;;  %490 = vmatmul.f32.gmra.mxu3 %v212_v61  ;;  %v264_v56 = vld [vmem:[%s4605_s17 + $0x169] sm:$0xff] }
  0x88   : > { %v216_v61 = vld [vmem:[%s4605_s17 + $0x168] sm:$0xff]  ;;  %1155 = vmatpush.msrb.mxu1 %v4042_v63 }
  0x8a   : > { %442 = vmatmul.f32.gmra.mxu1 %v4867_v62 }
  0x8b   : > { %1156 = vmatpush.msrb.mxu1 %v4041_v8 }
  0x8e   : > { %332 = vmatmul.f32.gmra.mxu0 %v4889_v12 }
  0x8f   : > { %380 = vmatmul.f32.gmra.mxu2 %v261_v13  ;;  %493 = vmatmul.f32.gmra.mxu3 %v213_v15  ;;  %v265_v13 = vld [vmem:[%s4605_s17 + $0x171] sm:$0xff] }
  0x90   : > { %v217_v15 = vld [vmem:[%s4605_s17 + $0x170] sm:$0xff] }
  0x92   : > { %445 = vmatmul.f32.gmra.mxu1 %v4898_v18 }
  0x96   : > { %335 = vmatmul.f32.gmra.mxu0 %v4917_v26 }
  0x97   : > { %383 = vmatmul.f32.gmra.mxu2 %v262_v29  ;;  %496 = vmatmul.f32.gmra.mxu3 %v214_v30  ;;  %v4150_v29 = vld [vmem:[%s6452_s1 + $0x3e8] sm:$0xff] }
  0x98   : > { %1532 = vmatpush.msra.mxu3 %v4150_v29 }
  0x9a   : > { %448 = vmatmul.f32.gmra.mxu1 %v4929_v35  ;;  %1533 = vmatpush.msra.mxu3 %v4149_v53 }
  0x9e   : > { %338 = vmatmul.f32.gmra.mxu0 %v4945_v42 }
  0x9f   : > { %386 = vmatmul.f32.gmra.mxu2 %v263_v43  ;;  %499 = vmatmul.f32.gmra.mxu3 %v215_v45 }
  0xa2   : > { %451 = vmatmul.f32.gmra.mxu1 %v4954_v50 }
  0xa6   : > { %341 = vmatmul.f32.gmra.mxu0 %v4967_v54 }
  0xa7   : > { %389 = vmatmul.f32.gmra.mxu2 %v264_v56  ;;  %502 = vmatmul.f32.gmra.mxu3 %v216_v61 }
  0xaa   : > { %454 = vmatmul.f32.gmra.mxu1 %v4976_v4 }
  0xae   : > { %344 = vmatmul.f32.gmra.mxu0 %v4989_v11 }
  0xaf   : > { %392 = vmatmul.f32.gmra.mxu2 %v265_v13  ;;  %505 = vmatmul.f32.gmra.mxu3 %v217_v15 }
  0xb2   : > { %457 = vmatmul.f32.gmra.mxu1 %v4995_v16 }
  0xb3   : > { %v5001_v20 = vpop.f32.mrf.mxu0 }
  0xb6   : > { %963 = vmatmul.f32.vlgmr.msrb.gmra.mxu0 %v4688_v57 }
  0xb7   : > { %574 = vmatmul.f32.vlgmr.msrb.gmra.mxu2 %v509_v22  ;;  %769 = vmatmul.f32.vlgmr.msrb.gmra.mxu3 %v4700_v60  ;;  %v5006_v23 = vpop.f32.mrf.mxu1  ;;  %v4100_v22 = vld [vmem:[%s6452_s1 + $0x358] sm:$0xff] }
  0xb8   : > { %1340 = vmatpush.msra.mxu2 %v4100_v22 }
  0xba   : > { %v348_v30 = vpop.f32.mrf.mxu2  ;;  %v461_v32 = vpop.f32.mrf.mxu3  ;;  %1157 = vmatmul.f32.vlgmr.msrb.gmra.mxu1 %v4009_v25 }
  0xbb   : > { %v5015_v57 = vadd.f32 %v461_v32, %v348_v30  ;;  %v5017_v60 = vpop.f32.mrf.mxu0  ;;  %v4014_v32 = vld [vmem:[%s4605_s17 + $0x52] sm:$0xff] }
  0xbe   : > { %966 = vmatmul.f32.gmra.mxu0 %v4713_v0 }
  0xbf   : > { %577 = vmatmul.f32.gmra.mxu2 %v510_v36  ;;  %772 = vmatmul.f32.gmra.mxu3 %v4725_v3  ;;  %v5022_v38 = vpop.f32.mrf.mxu1  ;;  %v4011_v3 = vld [vmem:[%s4605_s17 + $0x32] sm:$0xff] }
  0xc0   : > { %v4196_v36 = vld [vmem:[%s6452_s1 + $0x458] sm:$0xff] }
  0xc1   : > { %1728 = vmatpush.msra.mxu0 %v4196_v36 }
  0xc2   : > { %v351_v43 = vpop.f32.mrf.mxu2  ;;  %v464_v45 = vpop.f32.mrf.mxu3  ;;  %1160 = vmatmul.f32.gmra.mxu1 %v4010_v39 }
  0xc3   : > { %v5028_v46 = vadd.f32 %v464_v45, %v351_v43  ;;  %v5030_v51 = vpop.f32.mrf.mxu0  ;;  %1729 = vmatpush.msra.mxu0 %v4195_v6 }
  0xc6   : > { %969 = vmatmul.f32.gmra.mxu0 %v4738_v7 }
  0xc7   : > { %580 = vmatmul.f32.gmra.mxu2 %v4009_v25  ;;  %775 = vmatmul.f32.gmra.mxu3 %v4747_v10  ;;  %v5034_v0 = vpop.f32.mrf.mxu1  ;;  %v4148_v25 = vld [vmem:[%s6452_s1 + $0x3d8] sm:$0xff] }
  0xc8   : > { %1534 = vmatpush.msra.mxu3 %v4148_v25  ;;  %v4098_v25 = vld [vmem:[%s6452_s1 + $0x348] sm:$0xff] }
  0xca   : > { %v354_v56 = vpop.f32.mrf.mxu2  ;;  %v467_v61 = vpop.f32.mrf.mxu3  ;;  %1163 = vmatmul.f32.gmra.mxu1 %v4011_v3  ;;  %1535 = vmatpush.msra.mxu3 %v4147_v52 }
  0xcb   : > { %v5043_v7 = vadd.f32 %v467_v61, %v354_v56  ;;  %v5045_v10 = vpop.f32.mrf.mxu0 }
  0xce   : > { %972 = vmatmul.f32.gmra.mxu0 %v4760_v14 }
  0xcf   : > { %583 = vmatmul.f32.gmra.mxu2 %v4010_v39  ;;  %778 = vmatmul.f32.gmra.mxu3 %v4766_v17  ;;  %v5049_v63 = vpop.f32.mrf.mxu1  ;;  %v4013_v17 = vld [vmem:[%s4605_s17 + $0x4a] sm:$0xff] }
  0xd2   : > { %v357_v8 = vpop.f32.mrf.mxu2  ;;  %v470_v13 = vpop.f32.mrf.mxu3  ;;  %1166 = vmatmul.f32.gmra.mxu1 %v4012_v5 }
  0xd3   : > { %v5055_v15 = vadd.f32 %v470_v13, %v357_v8  ;;  %v5057_v19 = vpop.f32.mrf.mxu0 }
  0xd6   : > { %975 = vmatmul.f32.gmra.mxu0 %v4779_v21 }
  0xd7   : > { %586 = vmatmul.f32.gmra.mxu2 %v4011_v3  ;;  %781 = vmatmul.f32.gmra.mxu3 %v4785_v24  ;;  %v5061_v14 = vpop.f32.mrf.mxu1  ;;  %v4099_v3 = vld [vmem:[%s6452_s1 + $0x350] sm:$0xff] }
  0xd8   : > { %1341 = vmatpush.msra.mxu2 %v4099_v3 }
  0xda   : > { %v360_v27 = vpop.f32.mrf.mxu2  ;;  %v473_v29 = vpop.f32.mrf.mxu3  ;;  %1169 = vmatmul.f32.gmra.mxu1 %v4013_v17  ;;  %1342 = vmatpush.msra.mxu2 %v4098_v25  ;;  %v4193_v25 = vld [vmem:[%s6452_s1 + $0x440] sm:$0xff] }
  0xdb   : > { %v5070_v21 = vadd.f32 %v473_v29, %v360_v27  ;;  %v5072_v24 = vpop.f32.mrf.mxu0  ;;  %v4146_v27 = vld [vmem:[%s6452_s1 + $0x3c8] sm:$0xff] }
  0xdc   : > { %1536 = vmatpush.msra.mxu3 %v4146_v27 }
  0xde   : > { %978 = vmatmul.f32.gmra.mxu0 %v4798_v28 }
  0xdf   : > { %589 = vmatmul.f32.gmra.mxu2 %v4012_v5  ;;  %784 = vmatmul.f32.gmra.mxu3 %v4804_v31  ;;  %v5076_v30 = vpop.f32.mrf.mxu1  ;;  %v4015_v31 = vld [vmem:[%s4605_s17 + $0x62] sm:$0xff]  ;;  %v4016_v5 = vld [vmem:[%s4605_s17 + $0x6a] sm:$0xff] }
  0xe2   : > { %v363_v39 = vpop.f32.mrf.mxu2  ;;  %v476_v41 = vpop.f32.mrf.mxu3  ;;  %1172 = vmatmul.f32.gmra.mxu1 %v4014_v32 }
  0xe3   : > { %v5082_v43 = vadd.f32 %v476_v41, %v363_v39  ;;  %v5084_v45 = vpop.f32.mrf.mxu0  ;;  %v4018_v39 = vld [vmem:[%s4605_s17 + $0x82] sm:$0xff] }
  0xe4   : > { %v4194_v41 = vld [vmem:[%s6452_s1 + $0x448] sm:$0xff] }
  0xe5   : > { %1730 = vmatpush.msra.mxu0 %v4194_v41 }
  0xe6   : > { %981 = vmatmul.f32.gmra.mxu0 %v4817_v37 }
  0xe7   : > { %592 = vmatmul.f32.gmra.mxu2 %v4013_v17  ;;  %787 = vmatmul.f32.gmra.mxu3 %v4823_v40  ;;  %v5088_v28 = vpop.f32.mrf.mxu1 }
  0xe8   : > { %1731 = vmatpush.msra.mxu0 %v4193_v25 }
  0xea   : > { %v366_v53 = vpop.f32.mrf.mxu2  ;;  %v479_v56 = vpop.f32.mrf.mxu3  ;;  %1175 = vmatmul.f32.gmra.mxu1 %v4015_v31 }
  0xeb   : > { %v5097_v37 = vadd.f32 %v479_v56, %v366_v53  ;;  %v5099_v40 = vpop.f32.mrf.mxu0  ;;  %v4097_v56 = vld [vmem:[%s6452_s1 + $0x340] sm:$0xff] }
  0xec   : > { %1343 = vmatpush.msra.mxu2 %v4097_v56  ;;  %v2069_v56 = vld [vmem:[#allocation3 + $0xf8] sm:$0xff] }
  0xed   : > { %2070 = vmatpush.msra.mxu1 %v2069_v56  ;;  %v2068_v56 = vld [vmem:[#allocation3 + $0xf0] sm:$0xff] }
  0xee   : > { %984 = vmatmul.f32.gmra.mxu0 %v4836_v44 }
  0xef   : > { %595 = vmatmul.f32.gmra.mxu2 %v4014_v32  ;;  %790 = vmatmul.f32.gmra.mxu3 %v4842_v49  ;;  %v5103_v61 = vpop.f32.mrf.mxu1  ;;  %v4017_v49 = vld [vmem:[%s4605_s17 + $0x7a] sm:$0xff] }
  0xf0   : > { %2071 = vmatpush.msra.mxu1 %v2068_v56  ;;  %v4094_v56 = vld [vmem:[%s6452_s1 + $0x328] sm:$0xff] }
  0xf2   : > { %v369_v8 = vpop.f32.mrf.mxu2  ;;  %v482_v13 = vpop.f32.mrf.mxu3  ;;  %1178 = vmatmul.f32.gmra.mxu1 %v4016_v5 }
  0xf3   : > { %v5109_v17 = vadd.f32 %v482_v13, %v369_v8  ;;  %v5111_v22 = vpop.f32.mrf.mxu0 }
  0xf6   : > { %987 = vmatmul.f32.gmra.mxu0 %v4861_v55 }
  0xf7   : > { %598 = vmatmul.f32.gmra.mxu2 %v4015_v31  ;;  %793 = vmatmul.f32.gmra.mxu3 %v4867_v62  ;;  %v5115_v44 = vpop.f32.mrf.mxu1 }
  0xfa   : > { %v372_v29 = vpop.f32.mrf.mxu2  ;;  %v485_v32 = vpop.f32.mrf.mxu3  ;;  %1181 = vmatmul.f32.gmra.mxu1 %v4017_v49 }
  0xfb   : > { %v5124_v55 = vadd.f32 %v485_v32, %v372_v29  ;;  %v5126_v62 = vpop.f32.mrf.mxu0 }
  0xfe   : > { %990 = vmatmul.f32.gmra.mxu0 %v4889_v12 }
  0xff   : > { %601 = vmatmul.f32.gmra.mxu2 %v4016_v5  ;;  %796 = vmatmul.f32.gmra.mxu3 %v4898_v18  ;;  %v5130_v36 = vpop.f32.mrf.mxu1  ;;  %v4019_v18 = vld [vmem:[%s4605_s17 + $0x92] sm:$0xff]  ;;  %v4145_v5 = vld [vmem:[%s6452_s1 + $0x3c0] sm:$0xff] }
 0x100   : > { %1537 = vmatpush.msra.mxu3 %v4145_v5 }
 0x102   : > { %v375_v31 = vpop.f32.mrf.mxu2  ;;  %v488_v3 = vpop.f32.mrf.mxu3  ;;  %1184 = vmatmul.f32.gmra.mxu1 %v4018_v39 }
 0x103   : > { %v5136_v52 = vadd.f32 %v488_v3, %v375_v31  ;;  %v5138_v53 = vpop.f32.mrf.mxu0  ;;  %v4144_v31 = vld [vmem:[%s6452_s1 + $0x3b8] sm:$0xff] }
 0x104   : > { %1538 = vmatpush.msra.mxu3 %v4144_v31  ;;  %v4143_v31 = vld [vmem:[%s6452_s1 + $0x3b0] sm:$0xff] }
 0x106   : > { %993 = vmatmul.f32.gmra.mxu0 %v4917_v26  ;;  %1539 = vmatpush.msra.mxu3 %v4143_v31 }
 0x107   : > { %604 = vmatmul.f32.gmra.mxu2 %v4017_v49  ;;  %799 = vmatmul.f32.gmra.mxu3 %v4929_v35  ;;  %v5142_v12 = vpop.f32.mrf.mxu1  ;;  %v4020_v49 = vld [vmem:[%s4605_s17 + $0x9a] sm:$0xff] }
 0x10a   : > { %v378_v6 = vpop.f32.mrf.mxu2  ;;  %v491_v8 = vpop.f32.mrf.mxu3  ;;  %1187 = vmatmul.f32.gmra.mxu1 %v4019_v18 }
 0x10b   : > { %v5151_v26 = vadd.f32 %v491_v8, %v378_v6  ;;  %v5153_v35 = vpop.f32.mrf.mxu0  ;;  %v5190_v6 = vld [vmem:[%s4605_s17 + $0xb2] sm:$0xff] }
 0x10c   : > { %v4192_v8 = vld [vmem:[%s6452_s1 + $0x438] sm:$0xff] }
 0x10d   : > { %1732 = vmatpush.msra.mxu0 %v4192_v8 }
 0x10e   : > { %996 = vmatmul.f32.gmra.mxu0 %v4945_v42 }
 0x10f   : > { %607 = vmatmul.f32.gmra.mxu2 %v4018_v39  ;;  %802 = vmatmul.f32.gmra.mxu3 %v4954_v50  ;;  %v5157_v13 = vpop.f32.mrf.mxu1  ;;  %v5172_v50 = vld [vmem:[%s4605_s17 + $0xaa] sm:$0xff]  ;;  %v4096_v39 = vld [vmem:[%s6452_s1 + $0x338] sm:$0xff] }
 0x110   : > { %1344 = vmatpush.msra.mxu2 %v4096_v39  ;;  %v4095_v39 = vld [vmem:[%s6452_s1 + $0x330] sm:$0xff] }
 0x112   : > { %v381_v27 = vpop.f32.mrf.mxu2  ;;  %v494_v29 = vpop.f32.mrf.mxu3  ;;  %1190 = vmatmul.f32.gmra.mxu1 %v4020_v49  ;;  %1345 = vmatpush.msra.mxu2 %v4095_v39 }
 0x113   : > { %v5163_v32 = vadd.f32 %v494_v29, %v381_v27  ;;  %v5165_v41 = vpop.f32.mrf.mxu0 }
 0x114   : > { %1346 = vmatpush.msra.mxu2 %v4094_v56  ;;  %v4026_v56 = vld [vmem:[%s4605_s17 + $0xe2] sm:$0xff] }
 0x116   : > { %999 = vmatmul.f32.gmra.mxu0 %v4967_v54 }
 0x117   : > { %610 = vmatmul.f32.gmra.mxu2 %v4019_v18  ;;  %805 = vmatmul.f32.gmra.mxu3 %v4976_v4  ;;  %v5169_v42 = vpop.f32.mrf.mxu1 }
 0x11a   : > { %v384_v3 = vpop.f32.mrf.mxu2  ;;  %v497_v54 = vpop.f32.mrf.mxu3  ;;  %1193 = vmatmul.f32.gmra.mxu1 %v5172_v50 }
 0x11b   : > { %v5181_v4 = vadd.f32 %v497_v54, %v384_v3  ;;  %v5183_v18 = vpop.f32.mrf.mxu0 }
 0x11d   : > { %6457 = vst [vmem:[#allocation9_spill] sm:$0xff] %v5181_v4  ;;  %v417_v4 = vadd.f32 %v5022_v38, %v5017_v60 }
 0x11e   : > { %1002 = vmatmul.f32.gmra.mxu0 %v4989_v11 }
 0x11f   : > { %613 = vmatmul.f32.gmra.mxu2 %v4020_v49  ;;  %808 = vmatmul.f32.gmra.mxu3 %v4995_v16  ;;  %v5187_v5 = vpop.f32.mrf.mxu1  ;;  %v5206_v49 = vld [vmem:[%s4605_s17 + $0xc2] sm:$0xff] }
 0x122   : > { %v387_v25 = vpop.f32.mrf.mxu2  ;;  %v500_v27 = vpop.f32.mrf.mxu3  ;;  %1196 = vmatmul.f32.gmra.mxu1 %v5190_v6 }
 0x123   : > { %v5196_v29 = vadd.f32 %v500_v27, %v387_v25  ;;  %v5198_v11 = vpop.f32.mrf.mxu0  ;;  %v5225_v25 = vld [vmem:[%s4605_s17 + $0xca] sm:$0xff] }
 0x124   : > { %v4191_v27 = vld [vmem:[%s6452_s1 + $0x430] sm:$0xff] }
 0x125   : > { %6458 = vst [vmem:[#allocation10_spill] sm:$0xff] %v5196_v29  ;;  %1733 = vmatpush.msra.mxu0 %v4191_v27  ;;  %v4142_v27 = vld [vmem:[%s6452_s1 + $0x3a8] sm:$0xff]  ;;  %v2067_v29 = vld [vmem:[#allocation3 + $0xe8] sm:$0xff] }
 0x126   : > { %1005 = vmatmul.f32.gmra.mxu0 %v4618_v33  ;;  %1540 = vmatpush.msra.mxu3 %v4142_v27 }
 0x127   : > { %616 = vmatmul.f32.gmra.mxu2 %v5172_v50  ;;  %811 = vmatmul.f32.gmra.mxu3 %v4621_v34  ;;  %v5203_v16 = vpop.f32.mrf.mxu1 }
 0x128   : > { %2072 = vmatpush.msra.mxu1 %v2067_v29 }
 0x12a   : > { %v390_v3 = vpop.f32.mrf.mxu2  ;;  %v503_v33 = vpop.f32.mrf.mxu3  ;;  %1199 = vmatmul.f32.gmra.mxu1 %v5206_v49 }
 0x12b   : > { %v5215_v34 = vadd.f32 %v503_v33, %v390_v3  ;;  %v5217_v54 = vpop.f32.mrf.mxu0  ;;  %v4025_v33 = vld [vmem:[%s4605_s17 + $0xda] sm:$0xff] }
 0x12d   : > { %6459 = vst [vmem:[#allocation11_spill] sm:$0xff] %v5215_v34  ;;  %v414_v34 = vadd.f32 %v5006_v23, %v5001_v20 }
 0x12e   : > { %1008 = vmatmul.f32.gmra.mxu0 %v4658_v47 }
 0x12f   : > { %619 = vmatmul.f32.gmra.mxu2 %v5190_v6  ;;  %814 = vmatmul.f32.gmra.mxu3 %v4661_v48  ;;  %v5222_v8 = vpop.f32.mrf.mxu1 }
 0x132   : > { %v393_v39 = vpop.f32.mrf.mxu2  ;;  %v506_v31 = vpop.f32.mrf.mxu3  ;;  %1202 = vmatmul.f32.gmra.mxu1 %v5225_v25 }
 0x133   : > { %v5231_v47 = vadd.f32 %v506_v31, %v393_v39  ;;  %v964_v3 = vpop.f32.mrf.mxu0 }
 0x135   : > { %6460 = vst [vmem:[#allocation12_spill] sm:$0xff] %v5231_v47 }
 0x136   : > { %1011 = vmatmul.f32.gmra.mxu0 %v4691_v58 }
 0x137   : > { %622 = vmatmul.f32.gmra.mxu2 %v5206_v49  ;;  %817 = vmatmul.f32.gmra.mxu3 %v4694_v59  ;;  %v1158_v48 = vpop.f32.mrf.mxu1 }
 0x13a   : > { %v575_v58 = vpop.f32.mrf.mxu2  ;;  %v770_v39 = vpop.f32.mrf.mxu3  ;;  %1205 = vmatmul.f32.gmra.mxu1 %v4025_v33 }
 0x13b   : > { %v671_v59 = vadd.f32 %v575_v58, %v414_v34  ;;  %v967_v31 = vpop.f32.mrf.mxu0  ;;  %v4190_v34 = vld [vmem:[%s6452_s1 + $0x428] sm:$0xff] }
 0x13c   : > { %1734 = vmatpush.msra.mxu0 %v4190_v34 }
 0x13d   : > { %v866_v47 = vadd.f32 %v770_v39, %v671_v59 }
 0x13e   : > { %1014 = vmatmul.f32.gmra.mxu0 %v4716_v1 }
 0x13f   : > { %625 = vmatmul.f32.gmra.mxu2 %v5225_v25  ;;  %820 = vmatmul.f32.gmra.mxu3 %v4719_v2  ;;  %v1060_v20 = vadd.f32 %v964_v3, %v866_v47  ;;  %v1161_v23 = vpop.f32.mrf.mxu1  ;;  %v3979_v2 = vld [vmem:[%s4605_s17 + $0xf1] sm:$0xff] }
 0x140   : > { %v4027_v3 = vld [vmem:[%s4605_s17 + $0xf2] sm:$0xff] }
 0x141   : > { %v5251_v27 = vadd.f32 %v1158_v48, %v1060_v20  ;;  %v4093_v48 = vld [vmem:[%s6452_s1 + $0x320] sm:$0xff] }
 0x142   : > { %v578_v1 = vpop.f32.mrf.mxu2  ;;  %v773_v58 = vpop.f32.mrf.mxu3  ;;  %1208 = vmatmul.f32.gmra.mxu1 %v4026_v56  ;;  %1347 = vmatpush.msra.mxu2 %v4093_v48  ;;  %v4189_v48 = vld [vmem:[%s6452_s1 + $0x420] sm:$0xff] }
 0x143   : > { %v672_v29 = vadd.f32 %v578_v1, %v417_v4  ;;  %v970_v39 = vpop.f32.mrf.mxu0  ;;  %v420_v4 = vadd.f32 %v5034_v0, %v5030_v51  ;;  %v3980_v1 = vld [vmem:[%s4605_s17 + $0xf9] sm:$0xff]  ;;  %1735 = vmatpush.msra.mxu0 %v4189_v48  ;;  %v3982_v48 = vld [vmem:[%s4605_s17 + $0x111] sm:$0xff] }
 0x145   : > { %v867_v47 = vadd.f32 %v773_v58, %v672_v29  ;;  %v3932_v58 = vld [vmem:[%s4605_s17 + $0xf8] sm:$0xff] }
 0x146   : > { %1017 = vmatmul.f32.gmra.mxu0 %v3979_v2  ;;  %v2066_v2 = vld [vmem:[#allocation3 + $0xe0] sm:$0xff] }
 0x147   : > { %628 = vmatmul.f32.gmra.mxu2 %v4025_v33  ;;  %823 = vmatmul.f32.gmra.mxu3 %v4742_v9  ;;  %v1061_v60 = vadd.f32 %v967_v31, %v867_v47  ;;  %v1164_v38 = vpop.f32.mrf.mxu1  ;;  %v4141_v33 = vld [vmem:[%s6452_s1 + $0x3a0] sm:$0xff]  ;;  %v423_v47 = vadd.f32 %v5049_v63, %v5045_v10 }
 0x148   : > { %1541 = vmatpush.msra.mxu3 %v4141_v33  ;;  %2073 = vmatpush.msra.mxu1 %v2066_v2 }
 0x149   : > { %v5264_v59 = vadd.f32 %v1161_v23, %v1061_v60  ;;  %v4028_v23 = vld [vmem:[%s4605_s17 + $0xfa] sm:$0xff] }
 0x14a   : > { %v581_v20 = vpop.f32.mrf.mxu2  ;;  %v776_v9 = vpop.f32.mrf.mxu3  ;;  %1211 = vmatmul.f32.gmra.mxu1 %v4027_v3 }
 0x14b   : > { %v673_v31 = vadd.f32 %v581_v20, %v420_v4  ;;  %v973_v34 = vpop.f32.mrf.mxu0 }
 0x14d   : > { %v868_v29 = vadd.f32 %v776_v9, %v673_v31  ;;  %v3981_v9 = vld [vmem:[%s4605_s17 + $0x109] sm:$0xff] }
 0x14e   : > { %1020 = vmatmul.f32.gmra.mxu0 %v3980_v1  ;;  %v4092_v1 = vld [vmem:[%s6452_s1 + $0x318] sm:$0xff] }
 0x14f   : > { %631 = vmatmul.f32.gmra.mxu2 %v4026_v56  ;;  %826 = vmatmul.f32.gmra.mxu3 %v3932_v58  ;;  %v1062_v51 = vadd.f32 %v970_v39, %v868_v29  ;;  %v1167_v0 = vpop.f32.mrf.mxu1  ;;  %v3933_v39 = vld [vmem:[%s4605_s17 + $0x108] sm:$0xff]  ;;  %v426_v58 = vadd.f32 %v5061_v14, %v5057_v19  ;;  %v4030_v14 = vld [vmem:[%s4605_s17 + $0x112] sm:$0xff] }
 0x150   : > { %1348 = vmatpush.msra.mxu2 %v4092_v1 }
 0x151   : > { %v5274_v60 = vadd.f32 %v1164_v38, %v1062_v51  ;;  %v4029_v38 = vld [vmem:[%s4605_s17 + $0x10a] sm:$0xff] }
 0x152   : > { %v584_v4 = vpop.f32.mrf.mxu2  ;;  %v779_v33 = vpop.f32.mrf.mxu3  ;;  %1214 = vmatmul.f32.gmra.mxu1 %v4028_v23 }
 0x153   : > { %v674_v20 = vadd.f32 %v584_v4, %v423_v47  ;;  %v976_v56 = vpop.f32.mrf.mxu0  ;;  %v3934_v4 = vld [vmem:[%s4605_s17 + $0x110] sm:$0xff] }
 0x155   : > { %v869_v31 = vadd.f32 %v779_v33, %v674_v20  ;;  %v2065_v20 = vld [vmem:[#allocation3 + $0xd8] sm:$0xff] }
 0x156   : > { %1023 = vmatmul.f32.gmra.mxu0 %v3981_v9  ;;  %2074 = vmatpush.msra.mxu1 %v2065_v20  ;;  %v3984_v20 = vld [vmem:[%s4605_s17 + $0x129] sm:$0xff] }
 0x157   : > { %634 = vmatmul.f32.gmra.mxu2 %v4027_v3  ;;  %829 = vmatmul.f32.gmra.mxu3 %v3933_v39  ;;  %v1063_v10 = vadd.f32 %v973_v34, %v869_v31  ;;  %v1170_v63 = vpop.f32.mrf.mxu1  ;;  %v4140_v3 = vld [vmem:[%s6452_s1 + $0x398] sm:$0xff] }
 0x158   : > { %1542 = vmatpush.msra.mxu3 %v4140_v3  ;;  %v4188_v31 = vld [vmem:[%s6452_s1 + $0x418] sm:$0xff]  ;;  %v3983_v3 = vld [vmem:[%s4605_s17 + $0x121] sm:$0xff] }
 0x159   : > { %v5287_v29 = vadd.f32 %v1167_v0, %v1063_v10  ;;  %v429_v0 = vadd.f32 %v5076_v30, %v5072_v24  ;;  %1736 = vmatpush.msra.mxu0 %v4188_v31  ;;  %v4031_v30 = vld [vmem:[%s4605_s17 + $0x122] sm:$0xff] }
 0x15a   : > { %v587_v2 = vpop.f32.mrf.mxu2  ;;  %v782_v51 = vpop.f32.mrf.mxu3  ;;  %1217 = vmatmul.f32.gmra.mxu1 %v4029_v38 }
 0x15b   : > { %v675_v34 = vadd.f32 %v587_v2, %v426_v58  ;;  %v979_v47 = vpop.f32.mrf.mxu0 }
 0x15d   : > { %v870_v33 = vadd.f32 %v782_v51, %v675_v34  ;;  %v432_v51 = vadd.f32 %v5088_v28, %v5084_v45  ;;  %v4032_v28 = vld [vmem:[%s4605_s17 + $0x12a] sm:$0xff] }
 0x15e   : > { %1026 = vmatmul.f32.gmra.mxu0 %v3982_v48  ;;  %v4139_v48 = vld [vmem:[%s6452_s1 + $0x390] sm:$0xff] }
 0x15f   : > { %637 = vmatmul.f32.gmra.mxu2 %v4028_v23  ;;  %832 = vmatmul.f32.gmra.mxu3 %v3934_v4  ;;  %v1064_v19 = vadd.f32 %v976_v56, %v870_v33  ;;  %v1173_v39 = vpop.f32.mrf.mxu1  ;;  %v3935_v56 = vld [vmem:[%s4605_s17 + $0x120] sm:$0xff] }
 0x160   : > { %1543 = vmatpush.msra.mxu3 %v4139_v48  ;;  %v4090_v48 = vld [vmem:[%s6452_s1 + $0x308] sm:$0xff] }
 0x161   : > { %v5297_v9 = vadd.f32 %v1170_v63, %v1064_v19  ;;  %v4091_v63 = vld [vmem:[%s6452_s1 + $0x310] sm:$0xff]  ;;  %v3936_v19 = vld [vmem:[%s4605_s17 + $0x128] sm:$0xff] }
 0x162   : > { %v590_v10 = vpop.f32.mrf.mxu2  ;;  %v785_v1 = vpop.f32.mrf.mxu3  ;;  %1220 = vmatmul.f32.gmra.mxu1 %v4030_v14  ;;  %1349 = vmatpush.msra.mxu2 %v4091_v63  ;;  %v3937_v63 = vld [vmem:[%s4605_s17 + $0x138] sm:$0xff] }
 0x163   : > { %v676_v58 = vadd.f32 %v590_v10, %v429_v0  ;;  %v982_v23 = vpop.f32.mrf.mxu0  ;;  %v2064_v10 = vld [vmem:[#allocation3 + $0xd0] sm:$0xff] }
 0x164   : > { %2075 = vmatpush.msra.mxu1 %v2064_v10  ;;  %1350 = vmatpush.msra.mxu2 %v4090_v48 }
 0x165   : > { %v871_v2 = vadd.f32 %v785_v1, %v676_v58  ;;  %v4187_v58 = vld [vmem:[%s6452_s1 + $0x410] sm:$0xff] }
 0x166   : > { %1029 = vmatmul.f32.gmra.mxu0 %v3983_v3 }
 0x167   : > { %640 = vmatmul.f32.gmra.mxu2 %v4029_v38  ;;  %835 = vmatmul.f32.gmra.mxu3 %v3935_v56  ;;  %v1065_v24 = vadd.f32 %v979_v47, %v871_v2  ;;  %v1176_v0 = vpop.f32.mrf.mxu1 }
 0x168   : > { %1737 = vmatpush.msra.mxu0 %v4187_v58  ;;  %v4186_v58 = vld [vmem:[%s6452_s1 + $0x408] sm:$0xff] }
 0x169   : > { %v5310_v34 = vadd.f32 %v1173_v39, %v1065_v24  ;;  %v435_v39 = vadd.f32 %v5103_v61, %v5099_v40  ;;  %v4033_v61 = vld [vmem:[%s4605_s17 + $0x13a] sm:$0xff] }
 0x16a   : > { %v593_v4 = vpop.f32.mrf.mxu2  ;;  %v788_v38 = vpop.f32.mrf.mxu3  ;;  %1223 = vmatmul.f32.gmra.mxu1 %v4031_v30  ;;  %1738 = vmatpush.msra.mxu0 %v4186_v58 }
 0x16b   : > { %v677_v47 = vadd.f32 %v593_v4, %v432_v51  ;;  %v985_v33 = vpop.f32.mrf.mxu0  ;;  %v438_v4 = vadd.f32 %v5115_v44, %v5111_v22  ;;  %v4034_v44 = vld [vmem:[%s4605_s17 + $0x142] sm:$0xff] }
 0x16d   : > { %v872_v31 = vadd.f32 %v788_v38, %v677_v47  ;;  %v4138_v47 = vld [vmem:[%s6452_s1 + $0x388] sm:$0xff] }
 0x16e   : > { %1032 = vmatmul.f32.gmra.mxu0 %v3984_v20  ;;  %1544 = vmatpush.msra.mxu3 %v4138_v47 }
 0x16f   : > { %643 = vmatmul.f32.gmra.mxu2 %v4030_v14  ;;  %838 = vmatmul.f32.gmra.mxu3 %v3936_v19  ;;  %v1066_v45 = vadd.f32 %v982_v23, %v872_v31  ;;  %v3985_v14 = vld [vmem:[%s4605_s17 + $0x139] sm:$0xff]  ;;  %v1179_v51 = vpop.f32.mrf.mxu1 }
 0x170   : > { %v3938_v31 = vld [vmem:[%s4605_s17 + $0x140] sm:$0xff] }
 0x171   : > { %v5320_v1 = vadd.f32 %v1176_v0, %v1066_v45  ;;  %v3986_v0 = vld [vmem:[%s4605_s17 + $0x141] sm:$0xff]  ;;  %v2063_v45 = vld [vmem:[#allocation3 + $0xc8] sm:$0xff] }
 0x172   : > { %v596_v3 = vpop.f32.mrf.mxu2  ;;  %v791_v56 = vpop.f32.mrf.mxu3  ;;  %1226 = vmatmul.f32.gmra.mxu1 %v4032_v28 }
 0x173   : > { %v678_v2 = vadd.f32 %v596_v3, %v435_v39  ;;  %v988_v24 = vpop.f32.mrf.mxu0  ;;  %2076 = vmatpush.msra.mxu1 %v2063_v45  ;;  %v441_v39 = vadd.f32 %v5130_v36, %v5126_v62  ;;  %v4035_v62 = vld [vmem:[%s4605_s17 + $0x152] sm:$0xff]  ;;  %v4089_v36 = vld [vmem:[%s6452_s1 + $0x300] sm:$0xff] }
 0x174   : > { %1351 = vmatpush.msra.mxu2 %v4089_v36  ;;  %v3990_v36 = vld [vmem:[%s4605_s17 + $0x171] sm:$0xff] }
 0x175   : > { %v873_v23 = vadd.f32 %v791_v56, %v678_v2 }
 0x176   : > { %1035 = vmatmul.f32.gmra.mxu0 %v3985_v14 }
 0x177   : > { %646 = vmatmul.f32.gmra.mxu2 %v4031_v30  ;;  %841 = vmatmul.f32.gmra.mxu3 %v3937_v63  ;;  %v1067_v40 = vadd.f32 %v985_v33, %v873_v23  ;;  %v3987_v63 = vld [vmem:[%s4605_s17 + $0x151] sm:$0xff] }
 0x179   : > { %v5333_v38 = vadd.f32 %v1179_v51, %v1067_v40  ;;  %v444_v51 = vadd.f32 %v5142_v12, %v5138_v53  ;;  %v4137_v40 = vld [vmem:[%s6452_s1 + $0x380] sm:$0xff] }
 0x17a   : > { %v599_v30 = vpop.f32.mrf.mxu2  ;;  %v794_v20 = vpop.f32.mrf.mxu3  ;;  %1229 = vmatmul.f32.gmra.mxu1 %v4033_v61  ;;  %1545 = vmatpush.msra.mxu3 %v4137_v40  ;;  %v4036_v12 = vld [vmem:[%s4605_s17 + $0x15a] sm:$0xff] }
 0x17b   : > { %v679_v33 = vadd.f32 %v599_v30, %v438_v4  ;;  %v991_v19 = vpop.f32.mrf.mxu0  ;;  %v3988_v30 = vld [vmem:[%s4605_s17 + $0x159] sm:$0xff] }
 0x17d   : > { %v874_v10 = vadd.f32 %v794_v20, %v679_v33  ;;  %v3940_v20 = vld [vmem:[%s4605_s17 + $0x158] sm:$0xff] }
 0x17e   : > { %1038 = vmatmul.f32.gmra.mxu0 %v3986_v0  ;;  %v447_v0 = vadd.f32 %v5157_v13, %v5153_v35  ;;  %v4037_v35 = vld [vmem:[%s4605_s17 + $0x16a] sm:$0xff]  ;;  %v450_v13 = vadd.f32 %v5169_v42, %v5165_v41  ;;  %v453_v41 = vadd.f32 %v5187_v5, %v5183_v18  ;;  %v456_v18 = vadd.f32 %v5203_v16, %v5198_v11 }
 0x17f   : > { %649 = vmatmul.f32.gmra.mxu2 %v4032_v28  ;;  %844 = vmatmul.f32.gmra.mxu3 %v3938_v31  ;;  %v5340_v22 = vadd.f32 %v988_v24, %v874_v10  ;;  %v3939_v28 = vld [vmem:[%s4605_s17 + $0x150] sm:$0xff]  ;;  %v4185_v31 = vld [vmem:[%s6452_s1 + $0x400] sm:$0xff]  ;;  %v459_v11 = vadd.f32 %v5222_v8, %v5217_v54 }
 0x180   : > { %1739 = vmatpush.msra.mxu0 %v4185_v31 }
 0x182   : > { %v602_v3 = vpop.f32.mrf.mxu2  ;;  %v797_v56 = vpop.f32.mrf.mxu3  ;;  %1232 = vmatmul.f32.gmra.mxu1 %v4034_v44 }
 0x183   : > { %v680_v2 = vadd.f32 %v602_v3, %v441_v39  ;;  %v994_v14 = vpop.f32.mrf.mxu0  ;;  %v3941_v3 = vld [vmem:[%s4605_s17 + $0x168] sm:$0xff] }
 0x185   : > { %v875_v23 = vadd.f32 %v797_v56, %v680_v2 }
 0x186   : > { %1041 = vmatmul.f32.gmra.mxu0 %v3987_v63 }
 0x187   : > { %652 = vmatmul.f32.gmra.mxu2 %v4033_v61  ;;  %847 = vmatmul.f32.gmra.mxu3 %v3939_v28  ;;  %v5350_v24 = vadd.f32 %v991_v19, %v875_v23  ;;  %v2062_v19 = vld [vmem:[#allocation3 + $0xc0] sm:$0xff] }
 0x188   : > { %2077 = vmatpush.msra.mxu1 %v2062_v19 }
 0x18a   : > { %v605_v48 = vpop.f32.mrf.mxu2  ;;  %v800_v4 = vpop.f32.mrf.mxu3  ;;  %1235 = vmatmul.f32.gmra.mxu1 %v4035_v62 }
 0x18b   : > { %v681_v61 = vadd.f32 %v605_v48, %v444_v51  ;;  %v997_v47 = vpop.f32.mrf.mxu0  ;;  %v3942_v51 = vld [vmem:[%s4605_s17 + $0x170] sm:$0xff]  ;;  %v2061_v48 = vld [vmem:[#allocation3 + $0xb8] sm:$0xff] }
 0x18c   : > { %2078 = vmatpush.msra.mxu1 %v2061_v48 }
 0x18d   : > { %v876_v33 = vadd.f32 %v800_v4, %v681_v61  ;;  %v4038_v4 = vld [vmem:[%s4605_s17 + $0x172] sm:$0xff] }
 0x18e   : > { %1044 = vmatmul.f32.gmra.mxu0 %v3988_v30 }
 0x18f   : > { %655 = vmatmul.f32.gmra.mxu2 %v4034_v44  ;;  %850 = vmatmul.f32.gmra.mxu3 %v3940_v20  ;;  %v5363_v53 = vadd.f32 %v994_v14, %v876_v33  ;;  %v3989_v44 = vld [vmem:[%s4605_s17 + $0x169] sm:$0xff]  ;;  %v3991_v20 = vld [vmem:[%s4605_s17 + $0x181] sm:$0xff] }
 0x190   : > { %v3943_v33 = vld [vmem:[%s4605_s17 + $0x180] sm:$0xff] }
 0x192   : > { %v608_v10 = vpop.f32.mrf.mxu2  ;;  %v803_v45 = vpop.f32.mrf.mxu3  ;;  %1238 = vmatmul.f32.gmra.mxu1 %v4036_v12 }
 0x193   : > { %v682_v39 = vadd.f32 %v608_v10, %v447_v0  ;;  %v1000_v58 = vpop.f32.mrf.mxu0  ;;  %v4039_v0 = vld [vmem:[%s4605_s17 + $0x182] sm:$0xff] }
 0x195   : > { %v877_v56 = vadd.f32 %v803_v45, %v682_v39  ;;  %v3992_v39 = vld [vmem:[%s4605_s17 + $0x189] sm:$0xff] }
 0x196   : > { %1047 = vmatmul.f32.gmra.mxu0 %v3989_v44 }
 0x197   : > { %658 = vmatmul.f32.gmra.mxu2 %v4035_v62  ;;  %853 = vmatmul.f32.gmra.mxu3 %v3941_v3  ;;  %v5373_v2 = vadd.f32 %v997_v47, %v877_v56  ;;  %v2060_v3 = vld [vmem:[#allocation3 + $0xb0] sm:$0xff] }
 0x198   : > { %2079 = vmatpush.msra.mxu1 %v2060_v3 }
 0x19a   : > { %v611_v14 = vpop.f32.mrf.mxu2  ;;  %v806_v63 = vpop.f32.mrf.mxu3  ;;  %1241 = vmatmul.f32.gmra.mxu1 %v4037_v35 }
 0x19b   : > { %v683_v28 = vadd.f32 %v611_v14, %v450_v13  ;;  %v1003_v23 = vpop.f32.mrf.mxu0 }
 0x19d   : > { %v878_v40 = vadd.f32 %v806_v63, %v683_v28  ;;  %v4153_v28 = vld [vmem:[%s4605_s17 + $0x32] sm:$0xff] }
 0x19e   : > { %1050 = vmatmul.f32.gmra.mxu0 %v3990_v36  ;;  %v4105_v36 = vld [vmem:[%s4605_s17 + $0x31] sm:$0xff] }
 0x19f   : > { %661 = vmatmul.f32.gmra.mxu2 %v4036_v12  ;;  %856 = vmatmul.f32.gmra.mxu3 %v3942_v51  ;;  %v5380_v62 = vadd.f32 %v1000_v58, %v878_v40  ;;  %v3944_v58 = vld [vmem:[%s4605_s17 + $0x188] sm:$0xff] }
 0x1a2   : > { %v614_v42 = vpop.f32.mrf.mxu2  ;;  %v809_v61 = vpop.f32.mrf.mxu3  ;;  %1244 = vmatmul.f32.gmra.mxu1 %v4038_v4 }
 0x1a3   : > { %v684_v47 = vadd.f32 %v614_v42, %v453_v41  ;;  %v1006_v30 = vpop.f32.mrf.mxu0  ;;  %v4154_v41 = vld [vmem:[%s4605_s17 + $0x3a] sm:$0xff] }
 0x1a4   : > { %v4058_v42 = vld [vmem:[%s4605_s17 + $0x38] sm:$0xff] }
 0x1a5   : > { %v879_v19 = vadd.f32 %v809_v61, %v684_v47  ;;  %v4106_v61 = vld [vmem:[%s4605_s17 + $0x39] sm:$0xff]  ;;  %v5408_v47 = vpop.f32.mrf.mxu1 }
 0x1a6   : > { %1053 = vmatmul.f32.gmra.mxu0 %v3991_v20  ;;  %v2059_v20 = vld [vmem:[#allocation3 + $0xa8] sm:$0xff] }
 0x1a7   : > { %664 = vmatmul.f32.gmra.mxu2 %v4037_v35  ;;  %859 = vmatmul.f32.gmra.mxu3 %v3943_v33  ;;  %v5387_v12 = vadd.f32 %v1003_v23, %v879_v19  ;;  %v4040_v35 = vld [vmem:[%s4605_s17 + $0x18a] sm:$0xff] }
 0x1a8   : > { %v4057_v23 = vld [vmem:[%s4605_s17 + $0x30] sm:$0xff]  ;;  %2080 = vmatpush.msra.mxu1 %v2059_v20 }
 0x1aa   : > { %v617_v5 = vpop.f32.mrf.mxu2  ;;  %v812_v31 = vpop.f32.mrf.mxu3  ;;  %1247 = vmatmul.f32.gmra.mxu1 %v4039_v0 }
 0x1ab   : > { %v685_v10 = vadd.f32 %v617_v5, %v456_v18  ;;  %v1009_v45 = vpop.f32.mrf.mxu0  ;;  %v4155_v5 = vld [vmem:[%s4605_s17 + $0x4a] sm:$0xff] }
 0x1ad   : > { %v880_v44 = vadd.f32 %v812_v31, %v685_v10  ;;  %v4059_v31 = vld [vmem:[%s4605_s17 + $0x48] sm:$0xff] }
 0x1ae   : > { %1056 = vmatmul.f32.gmra.mxu0 %v3992_v39  ;;  %v4107_v10 = vld [vmem:[%s4605_s17 + $0x49] sm:$0xff]  ;;  %v5416_v39 = vpop.f32.mrf.mxu1 }
 0x1af   : > { %667 = vmatmul.f32.gmra.mxu2 %v4038_v4  ;;  %862 = vmatmul.f32.gmra.mxu3 %v3944_v58  ;;  %v5394_v56 = vadd.f32 %v1006_v30, %v880_v44 }
 0x1b2   : > { %v620_v16 = vpop.f32.mrf.mxu2  ;;  %v815_v13 = vpop.f32.mrf.mxu3  ;;  %1250 = vmatmul.f32.gmra.mxu1 %v4040_v35 }
 0x1b3   : > { %v686_v14 = vadd.f32 %v620_v16, %v459_v11  ;;  %v1012_v63 = vpop.f32.mrf.mxu0  ;;  %v4060_v16 = vld [vmem:[%s4605_s17 + $0x50] sm:$0xff] }
 0x1b5   : > { %v881_v51 = vadd.f32 %v815_v13, %v686_v14  ;;  %v4108_v13 = vld [vmem:[%s4605_s17 + $0x51] sm:$0xff] }
 0x1b6   : > { %1740 = vmatmul.f32.vlgmr.msra.gmra.mxu0 %v4153_v28 }
 0x1b7   : > { %1352 = vmatmul.f32.vlgmr.msra.gmra.mxu2 %v4057_v23  ;;  %1546 = vmatmul.f32.vlgmr.msra.gmra.mxu3 %v4105_v36  ;;  %v5402_v40 = vadd.f32 %v1009_v45, %v881_v51  ;;  %v5426_v23 = vpop.f32.mrf.mxu1 }
 0x1ba   : > { %v623_v48 = vpop.f32.mrf.mxu2  ;;  %v818_v4 = vpop.f32.mrf.mxu3 }
 0x1bb   : > { %v687_v54 = vadd.f32 %v623_v48, %v5015_v57  ;;  %v1015_v8 = vpop.f32.mrf.mxu0 }
 0x1bd   : > { %v882_v30 = vadd.f32 %v818_v4, %v687_v54  ;;  %v4157_v4 = vld [vmem:[%s4605_s17 + $0x62] sm:$0xff] }
 0x1be   : > { %1743 = vmatmul.f32.gmra.mxu0 %v4154_v41  ;;  %v4061_v54 = vld [vmem:[%s4605_s17 + $0x60] sm:$0xff] }
 0x1bf   : > { %1355 = vmatmul.f32.gmra.mxu2 %v4058_v42  ;;  %1549 = vmatmul.f32.gmra.mxu3 %v4106_v61  ;;  %v5410_v33 = vadd.f32 %v1012_v63, %v882_v30  ;;  %v2058_v63 = vld [vmem:[#allocation3 + $0xa0] sm:$0xff]  ;;  %v5434_v20 = vpop.f32.mrf.mxu1 }
 0x1c0   : > { %2081 = vmatpush.msra.mxu1 %v2058_v63 }
 0x1c2   : > { %v626_v19 = vpop.f32.mrf.mxu2  ;;  %v821_v0 = vpop.f32.mrf.mxu3 }
 0x1c3   : > { %v688_v57 = vadd.f32 %v626_v19, %v5028_v46  ;;  %v1018_v18 = vpop.f32.mrf.mxu0  ;;  %v4156_v46 = vld [vmem:[%s4605_s17 + $0x52] sm:$0xff] }
 0x1c5   : > { %v883_v45 = vadd.f32 %v821_v0, %v688_v57  ;;  %v4158_v0 = vld [vmem:[%s4605_s17 + $0x6a] sm:$0xff] }
 0x1c6   : > { %1746 = vmatmul.f32.gmra.mxu0 %v4155_v5  ;;  %v4062_v57 = vld [vmem:[%s4605_s17 + $0x68] sm:$0xff] }
 0x1c7   : > { %1358 = vmatmul.f32.gmra.mxu2 %v4059_v31  ;;  %1552 = vmatmul.f32.gmra.mxu3 %v4107_v10  ;;  %v5418_v58 = vadd.f32 %v1015_v8, %v883_v45  ;;  %v4109_v8 = vld [vmem:[%s4605_s17 + $0x61] sm:$0xff] }
 0x1c8   : > { %v2057_v31 = vld [vmem:[#allocation3 + $0x98] sm:$0xff] }
 0x1c9   : > { %2082 = vmatpush.msra.mxu1 %v2057_v31 }
 0x1ca   : > { %v629_v44 = vpop.f32.mrf.mxu2  ;;  %v824_v3 = vpop.f32.mrf.mxu3 }
 0x1cb   : > { %v689_v35 = vadd.f32 %v629_v44, %v5043_v7  ;;  %v1021_v11 = vpop.f32.mrf.mxu0 }
 0x1cd   : > { %v884_v14 = vadd.f32 %v824_v3, %v689_v35  ;;  %v4159_v35 = vld [vmem:[%s4605_s17 + $0x7a] sm:$0xff] }
 0x1ce   : > { %1749 = vmatmul.f32.gmra.mxu0 %v4156_v46  ;;  %v4111_v46 = vld [vmem:[%s4605_s17 + $0x79] sm:$0xff] }
 0x1cf   : > { %1361 = vmatmul.f32.gmra.mxu2 %v4060_v16  ;;  %1555 = vmatmul.f32.gmra.mxu3 %v4108_v13  ;;  %v5424_v28 = vadd.f32 %v1018_v18, %v884_v14  ;;  %v4110_v18 = vld [vmem:[%s4605_s17 + $0x69] sm:$0xff]  ;;  %v5446_v16 = vpop.f32.mrf.mxu1 }
 0x1d2   : > { %v632_v36 = vpop.f32.mrf.mxu2  ;;  %v827_v51 = vpop.f32.mrf.mxu3 }
 0x1d3   : > { %v690_v7 = vadd.f32 %v632_v36, %v5055_v15  ;;  %v1024_v48 = vpop.f32.mrf.mxu0 }
 0x1d5   : > { %v885_v41 = vadd.f32 %v827_v51, %v690_v7 }
 0x1d6   : > { %1752 = vmatmul.f32.gmra.mxu0 %v4157_v4  ;;  %v4112_v4 = vld [vmem:[%s4605_s17 + $0x81] sm:$0xff] }
 0x1d7   : > { %1364 = vmatmul.f32.gmra.mxu2 %v4061_v54  ;;  %1558 = vmatmul.f32.gmra.mxu3 %v4109_v8  ;;  %v5432_v42 = vadd.f32 %v1021_v11, %v885_v41  ;;  %v4063_v11 = vld [vmem:[%s4605_s17 + $0x78] sm:$0xff]  ;;  %v2056_v8 = vld [vmem:[#allocation3 + $0x90] sm:$0xff]  ;;  %v5454_v41 = vpop.f32.mrf.mxu1 }
 0x1d8   : > { %2083 = vmatpush.msra.mxu1 %v2056_v8 }
 0x1da   : > { %v635_v61 = vpop.f32.mrf.mxu2  ;;  %v830_v30 = vpop.f32.mrf.mxu3 }
 0x1db   : > { %v691_v19 = vadd.f32 %v635_v61, %v5070_v21  ;;  %v1027_v15 = vpop.f32.mrf.mxu0 }
 0x1dd   : > { %v886_v5 = vadd.f32 %v830_v30, %v691_v19 }
 0x1de   : > { %1755 = vmatmul.f32.gmra.mxu0 %v4158_v0  ;;  %v4161_v0 = vld [vmem:[%s4605_s17 + $0x92] sm:$0xff] }
 0x1df   : > { %1367 = vmatmul.f32.gmra.mxu2 %v4062_v57  ;;  %1561 = vmatmul.f32.gmra.mxu3 %v4110_v18  ;;  %v5440_v10 = vadd.f32 %v1024_v48, %v886_v5  ;;  %v4064_v48 = vld [vmem:[%s4605_s17 + $0x80] sm:$0xff]  ;;  %v4065_v57 = vld [vmem:[%s4605_s17 + $0x90] sm:$0xff] }
 0x1e0   : > { %v4113_v18 = vld [vmem:[%s4605_s17 + $0x91] sm:$0xff] }
 0x1e2   : > { %v638_v45 = vpop.f32.mrf.mxu2  ;;  %v833_v44 = vpop.f32.mrf.mxu3 }
 0x1e3   : > { %v692_v21 = vadd.f32 %v638_v45, %v5082_v43  ;;  %v1030_v3 = vpop.f32.mrf.mxu0  ;;  %v4160_v43 = vld [vmem:[%s4605_s17 + $0x82] sm:$0xff]  ;;  %v5464_v45 = vpop.f32.mrf.mxu1 }
 0x1e5   : > { %v887_v13 = vadd.f32 %v833_v44, %v692_v21 }
 0x1e6   : > { %1758 = vmatmul.f32.gmra.mxu0 %v4159_v35 }
 0x1e7   : > { %1370 = vmatmul.f32.gmra.mxu2 %v4063_v11  ;;  %1564 = vmatmul.f32.gmra.mxu3 %v4111_v46  ;;  %v5448_v14 = vadd.f32 %v1027_v15, %v887_v13  ;;  %v4066_v11 = vld [vmem:[%s4605_s17 + $0x98] sm:$0xff] }
 0x1e8   : > { %v4114_v46 = vld [vmem:[%s4605_s17 + $0x99] sm:$0xff] }
 0x1ea   : > { %v641_v63 = vpop.f32.mrf.mxu2  ;;  %v836_v36 = vpop.f32.mrf.mxu3 }
 0x1eb   : > { %v693_v51 = vadd.f32 %v641_v63, %v5097_v37  ;;  %v1033_v7 = vpop.f32.mrf.mxu0  ;;  %v2055_v63 = vld [vmem:[#allocation3 + $0x88] sm:$0xff] }
 0x1ec   : > { %2084 = vmatpush.msra.mxu1 %v2055_v63  ;;  %v4117_v63 = vld [vmem:[%s4605_s17 + $0xc1] sm:$0xff] }
 0x1ed   : > { %v888_v54 = vadd.f32 %v836_v36, %v693_v51 }
 0x1ee   : > { %1761 = vmatmul.f32.gmra.mxu0 %v4160_v43  ;;  %v5472_v43 = vpop.f32.mrf.mxu1 }
 0x1ef   : > { %1373 = vmatmul.f32.gmra.mxu2 %v4064_v48  ;;  %1567 = vmatmul.f32.gmra.mxu3 %v4112_v4  ;;  %v5456_v61 = vadd.f32 %v1030_v3, %v888_v54  ;;  %v4067_v4 = vld [vmem:[%s4605_s17 + $0xa8] sm:$0xff] }
 0x1f0   : > { %v4115_v54 = vld [vmem:[%s4605_s17 + $0xa9] sm:$0xff] }
 0x1f2   : > { %v644_v30 = vpop.f32.mrf.mxu2  ;;  %v839_v19 = vpop.f32.mrf.mxu3 }
 0x1f3   : > { %v694_v37 = vadd.f32 %v644_v30, %v5109_v17  ;;  %v1036_v15 = vpop.f32.mrf.mxu0  ;;  %v4162_v17 = vld [vmem:[%s4605_s17 + $0x9a] sm:$0xff] }
 0x1f5   : > { %v889_v5 = vadd.f32 %v839_v19, %v694_v37 }
 0x1f6   : > { %1764 = vmatmul.f32.gmra.mxu0 %v4161_v0 }
 0x1f7   : > { %1376 = vmatmul.f32.gmra.mxu2 %v4065_v57  ;;  %1570 = vmatmul.f32.gmra.mxu3 %v4113_v18  ;;  %v5462_v31 = vadd.f32 %v1033_v7, %v889_v5  ;;  %v4432_v57 = vmov 0.0   ;;  %v4116_v18 = vld [vmem:[%s4605_s17 + $0xb1] sm:$0xff]  ;;  %v5485_v5 = vpop.f32.mrf.mxu1 }
 0x1f8   : > { %1901 = vst [vmem:[#allocation2] sm:$0xff] %v4432_v57 }
 0x1f9   : > { %1902 = vst [vmem:[#allocation2 + $0x8] sm:$0xff] %v4432_v57 }
 0x1fa   : > { %v647_v44 = vpop.f32.mrf.mxu2  ;;  %v842_v21 = vpop.f32.mrf.mxu3  ;;  %1903 = vst [vmem:[#allocation2 + $0x10] sm:$0x3] %v4432_v57 }
 0x1fb   : > { %v695_v3 = vadd.f32 %v647_v44, %v5124_v55  ;;  %v1039_v35 = vpop.f32.mrf.mxu0  ;;  %1905 = vst [vmem:[#allocation2 + $0x198] sm:$0xff] %v4432_v57 }
 0x1fc   : > { %1906 = vst [vmem:[#allocation2 + $0x1a0] sm:$0xff] %v4432_v57 }
 0x1fd   : > { %v890_v13 = vadd.f32 %v842_v21, %v695_v3  ;;  %v2020_v21 = vld [vmem:[#allocation3 + $0x78] sm:$0xff]  ;;  %1907 = vst [vmem:[#allocation2 + $0x1a8] sm:$0x3] %v4432_v57 }
 0x1fe   : > { %1767 = vmatmul.f32.gmra.mxu0 %v4162_v17  ;;  %2183 = vmatpush.msrb.mxu2 %v2020_v21  ;;  %v2344_v3 = vld [vmem:[#allocation3 + $0x178] sm:$0xff]  ;;  %1909 = vst [vmem:[#allocation2 + $0x18] sm:$0x1] %v4432_v57 }
 0x1ff   : > { %1379 = vmatmul.f32.gmra.mxu2 %v4066_v11  ;;  %1573 = vmatmul.f32.gmra.mxu3 %v4114_v46  ;;  %v5470_v36 = vadd.f32 %v1036_v15, %v890_v13  ;;  %1910 = vst [vmem:[#allocation2 + $0x30] sm:$0x1] %v4432_v57  ;;  %v4069_v13 = vld [vmem:[%s4605_s17 + $0xc0] sm:$0xff] }
 0x200   : > { %2345 = vmatpush.msrb.mxu3 %v2344_v3  ;;  %v2021_v46 = vld [vmem:[#allocation2 + $0x1] sm:$0xff]  ;;  %1911 = vst [vmem:[#allocation2 + $0x48] sm:$0x1] %v4432_v57 }
 0x201   : > { %1912 = vst [vmem:[#allocation2 + $0x60] sm:$0x1] %v4432_v57 }
 0x202   : > { %v650_v51 = vpop.f32.mrf.mxu2  ;;  %v845_v7 = vpop.f32.mrf.mxu3  ;;  %1913 = vst [vmem:[#allocation2 + $0x78] sm:$0x1] %v4432_v57 }
 0x203   : > { %v696_v55 = vadd.f32 %v650_v51, %v5136_v52  ;;  %v1042_v48 = vpop.f32.mrf.mxu0  ;;  %v4068_v52 = vld [vmem:[%s4605_s17 + $0xb0] sm:$0xff]  ;;  %1914 = vst [vmem:[#allocation2 + $0x90] sm:$0x1] %v4432_v57 }
 0x204   : > { %1915 = vst [vmem:[#allocation2 + $0xa8] sm:$0x1] %v4432_v57 }
 0x205   : > { %v891_v8 = vadd.f32 %v845_v7, %v696_v55  ;;  %v5504_v7 = vpop.f32.mrf.mxu1  ;;  %1916 = vst [vmem:[#allocation2 + $0xc0] sm:$0x1] %v4432_v57  ;;  %v2538_v55 = vld [vmem:[#allocation3 + $0x1f8] sm:$0xff] }
 0x206   : > { %1770 = vmatmul.f32.gmra.mxu0 %v5172_v50  ;;  %v2054_v50 = vld [vmem:[#allocation3 + $0x80] sm:$0xff]  ;;  %1917 = vst [vmem:[#allocation2 + $0xd8] sm:$0x1] %v4432_v57 }
 0x207   : > { %1382 = vmatmul.f32.gmra.mxu2 %v4067_v4  ;;  %1576 = vmatmul.f32.gmra.mxu3 %v4115_v54  ;;  %v5478_v30 = vadd.f32 %v1039_v35, %v891_v8  ;;  %1918 = vst [vmem:[#allocation2 + $0xf0] sm:$0x1] %v4432_v57  ;;  %v6461_v54 = vld [vmem:[#allocation9_spill] sm:$0xff] }
 0x208   : > { %2085 = vmatpush.msra.mxu1 %v2054_v50  ;;  %2539 = vmatpush.msrb.mxu0 %v2538_v55  ;;  %1919 = vst [vmem:[#allocation2 + $0x108] sm:$0x1] %v4432_v57 }
 0x209   : > { %2086 = vmatmul.f32.vlgmr.msra.gmra.mxu1 %v2021_v46  ;;  %1920 = vst [vmem:[#allocation2 + $0x120] sm:$0x1] %v4432_v57  ;;  %v4119_v46 = vld [vmem:[%s4605_s17 + $0xd9] sm:$0xff] }
 0x20a   : > { %v653_v19 = vpop.f32.mrf.mxu2  ;;  %v848_v37 = vpop.f32.mrf.mxu3  ;;  %1921 = vst [vmem:[#allocation2 + $0x138] sm:$0x1] %v4432_v57 }
 0x20b   : > { %v697_v15 = vadd.f32 %v653_v19, %v5151_v26  ;;  %v1045_v0 = vpop.f32.mrf.mxu0  ;;  %1922 = vst [vmem:[#allocation2 + $0x150] sm:$0x1] %v4432_v57 }
 0x20c   : > { %1923 = vst [vmem:[#allocation2 + $0x168] sm:$0x1] %v4432_v57 }
 0x20d   : > { %v892_v44 = vadd.f32 %v848_v37, %v697_v15  ;;  %v4070_v37 = vld [vmem:[%s4605_s17 + $0xc8] sm:$0xff]  ;;  %1924 = vst [vmem:[#allocation2 + $0x180] sm:$0x1] %v4432_v57 }
 0x20e   : > { %1773 = vmatmul.f32.gmra.mxu0 %v5190_v6  ;;  %v4118_v15 = vld [vmem:[%s4605_s17 + $0xc9] sm:$0xff]  ;;  %1925 = vst [vmem:[#allocation2 + $0x29] sm:$0x1] %v4432_v57 }
 0x20f   : > { %1385 = vmatmul.f32.gmra.mxu2 %v4068_v52  ;;  %1579 = vmatmul.f32.gmra.mxu3 %v4116_v18  ;;  %v5490_v26 = vadd.f32 %v1042_v48, %v892_v44  ;;  %v5524_v18 = vpop.f32.mrf.mxu1  ;;  %1926 = vst [vmem:[#allocation2 + $0x41] sm:$0x1] %v4432_v57 }
 0x210   : > { %1927 = vst [vmem:[#allocation2 + $0x59] sm:$0x1] %v4432_v57 }
 0x211   : > { %1928 = vst [vmem:[#allocation2 + $0x71] sm:$0x1] %v4432_v57 }
 0x212   : > { %v656_v35 = vpop.f32.mrf.mxu2  ;;  %v851_v6 = vpop.f32.mrf.mxu3  ;;  %1929 = vst [vmem:[#allocation2 + $0x89] sm:$0x1] %v4432_v57 }
 0x213   : > { %v698_v17 = vadd.f32 %v656_v35, %v5163_v32  ;;  %v1048_v11 = vpop.f32.mrf.mxu0  ;;  %v2732_v35 = vld [vmem:[#allocation3 + $0x278] sm:$0xff]  ;;  %1930 = vst [vmem:[#allocation2 + $0xa1] sm:$0x1] %v4432_v57 }
 0x214   : > { %2733 = vmatpush.msrb.mxu1 %v2732_v35  ;;  %1931 = vst [vmem:[#allocation2 + $0xb9] sm:$0x1] %v4432_v57  ;;  %v6464_v35 = vld [vmem:[#allocation12_spill] sm:$0xff] }
 0x215   : > { %v893_v51 = vadd.f32 %v851_v6, %v698_v17  ;;  %v2019_v6 = vld [vmem:[#allocation3 + $0x70] sm:$0xff]  ;;  %1932 = vst [vmem:[#allocation2 + $0xd1] sm:$0x1] %v4432_v57 }
 0x216   : > { %1776 = vmatmul.f32.gmra.mxu0 %v5206_v49  ;;  %v2022_v49 = vld [vmem:[#allocation2 + $0x9] sm:$0xff]  ;;  %v2343_v17 = vld [vmem:[#allocation3 + $0x170] sm:$0xff]  ;;  %2184 = vmatpush.msrb.mxu2 %v2019_v6  ;;  %1933 = vst [vmem:[#allocation2 + $0xe9] sm:$0x1] %v4432_v57 }
 0x217   : > { %1388 = vmatmul.f32.gmra.mxu2 %v4069_v13  ;;  %1582 = vmatmul.f32.gmra.mxu3 %v4117_v63  ;;  %v5506_v32 = vadd.f32 %v1045_v0, %v893_v51  ;;  %v4327_v63 = vld [vmem:[%s4605_s17 + $0xda] sm:$0xff]  ;;  %1934 = vst [vmem:[#allocation2 + $0x101] sm:$0x1] %v4432_v57 }
 0x218   : > { %2089 = vmatmul.f32.gmra.mxu1 %v2022_v49  ;;  %2346 = vmatpush.msrb.mxu3 %v2343_v17  ;;  %v6463_v49 = vld [vmem:[#allocation11_spill] sm:$0xff]  ;;  %1935 = vst [vmem:[#allocation2 + $0x119] sm:$0x1] %v4432_v57 }
 0x219   : > { %1936 = vst [vmem:[#allocation2 + $0x131] sm:$0x1] %v4432_v57 }
 0x21a   : > { %v659_v48 = vpop.f32.mrf.mxu2  ;;  %v854_v4 = vpop.f32.mrf.mxu3  ;;  %1937 = vst [vmem:[#allocation2 + $0x149] sm:$0x1] %v4432_v57 }
 0x21b   : > { %v699_v8 = vadd.f32 %v659_v48, %v6461_v54  ;;  %v1051_v19 = vpop.f32.mrf.mxu0  ;;  %1938 = vst [vmem:[#allocation2 + $0x161] sm:$0x1] %v4432_v57 }
 0x21c   : > { %1939 = vst [vmem:[#allocation2 + $0x179] sm:$0x1] %v4432_v57 }
 0x21d   : > { %v894_v0 = vadd.f32 %v854_v4, %v699_v8  ;;  %v5542_v4 = vpop.f32.mrf.mxu1  ;;  %1940 = vst [vmem:[#allocation2 + $0x191] sm:$0x1] %v4432_v57 }
 0x21e   : > { %1779 = vmatmul.f32.gmra.mxu0 %v5225_v25  ;;  %v6462_v25 = vld [vmem:[#allocation10_spill] sm:$0xff] }
 0x21f   : > { %1391 = vmatmul.f32.gmra.mxu2 %v4070_v37  ;;  %1585 = vmatmul.f32.gmra.mxu3 %v4118_v15  ;;  %v5520_v52 = vadd.f32 %v1048_v11, %v894_v0  ;;  %v4071_v11 = vld [vmem:[%s4605_s17 + $0xd8] sm:$0xff]  ;;  %v4072_v37 = vld [vmem:[%s4605_s17 + $0xe0] sm:$0xff] }
 0x220   : > { %v4120_v15 = vld [vmem:[%s4605_s17 + $0xe1] sm:$0xff] }
 0x222   : > { %v662_v44 = vpop.f32.mrf.mxu2  ;;  %v857_v50 = vpop.f32.mrf.mxu3 }
 0x223   : > { %v700_v21 = vadd.f32 %v662_v44, %v6462_v25  ;;  %v1054_v3 = vpop.f32.mrf.mxu0  ;;  %v4328_v44 = vld [vmem:[%s4605_s17 + $0xe2] sm:$0xff] }
 0x225   : > { %v895_v13 = vadd.f32 %v857_v50, %v700_v21 }
 0x226   : > { %1782 = vmatmul.f32.gmra.mxu0 %v4327_v63  ;;  %v4073_v63 = vld [vmem:[%s4605_s17 + $0xf0] sm:$0xff] }
 0x227   : > { %1394 = vmatmul.f32.gmra.mxu2 %v4071_v11  ;;  %1588 = vmatmul.f32.gmra.mxu3 %v4119_v46  ;;  %v5536_v51 = vadd.f32 %v1051_v19, %v895_v13  ;;  %v2537_v19 = vld [vmem:[#allocation3 + $0x1f0] sm:$0xff]  ;;  %v2018_v46 = vld [vmem:[#allocation3 + $0x68] sm:$0xff] }
 0x228   : > { %2540 = vmatpush.msrb.mxu0 %v2537_v19  ;;  %v2731_v11 = vld [vmem:[#allocation3 + $0x270] sm:$0xff]  ;;  %v2342_v13 = vld [vmem:[#allocation3 + $0x168] sm:$0xff]  ;;  %2185 = vmatpush.msrb.mxu2 %v2018_v46 }
 0x229   : > { %2734 = vmatpush.msrb.mxu1 %v2731_v11  ;;  %2347 = vmatpush.msrb.mxu3 %v2342_v13  ;;  %v4122_v11 = vld [vmem:[%s4605_s17 + $0xf9] sm:$0xff] }
 0x22a   : > { %v665_v55 = vpop.f32.mrf.mxu2  ;;  %v860_v48 = vpop.f32.mrf.mxu3 }
 0x22b   : > { %v701_v54 = vadd.f32 %v665_v55, %v6463_v49  ;;  %v1057_v8 = vpop.f32.mrf.mxu0  ;;  %v4121_v55 = vld [vmem:[%s4605_s17 + $0xf1] sm:$0xff] }
 0x22c   : > { %v4329_v49 = vld [vmem:[%s4605_s17 + $0xf2] sm:$0xff] }
 0x22d   : > { %v896_v0 = vadd.f32 %v860_v48, %v701_v54 }
 0x22e   : > { %1785 = vmatmul.f32.gmra.mxu0 %v4328_v44  ;;  %v4170_v44 = vld [vmem:[%s4605_s17 + $0xfa] sm:$0xff] }
 0x22f   : > { %1397 = vmatmul.f32.gmra.mxu2 %v4072_v37  ;;  %1591 = vmatmul.f32.gmra.mxu3 %v4120_v15  ;;  %v5552_v50 = vadd.f32 %v1054_v3, %v896_v0  ;;  %v5559_v3 = vpop.f32.mrf.mxu1 }
 0x232   : > { %v668_v25 = vpop.f32.mrf.mxu2  ;;  %v863_v21 = vpop.f32.mrf.mxu3 }
 0x233   : > { %v702_v6 = vadd.f32 %v668_v25, %v6464_v35  ;;  %v1741_v17 = vpop.f32.mrf.mxu0  ;;  %v2536_v25 = vld [vmem:[#allocation3 + $0x1e8] sm:$0xff] }
 0x234   : > { %v4074_v35 = vld [vmem:[%s4605_s17 + $0xf8] sm:$0xff]  ;;  %2541 = vmatpush.msrb.mxu0 %v2536_v25 }
 0x235   : > { %v897_v48 = vadd.f32 %v863_v21, %v702_v6 }
 0x236   : > { %1788 = vmatmul.f32.gmra.mxu0 %v4329_v49  ;;  %v2730_v49 = vld [vmem:[#allocation3 + $0x268] sm:$0xff] }
 0x237   : > { %1400 = vmatmul.f32.gmra.mxu2 %v4073_v63  ;;  %1594 = vmatmul.f32.gmra.mxu3 %v4121_v55  ;;  %v5562_v54 = vadd.f32 %v1057_v8, %v897_v48  ;;  %v5568_v21 = vpop.f32.mrf.mxu1 }
 0x238   : > { %2735 = vmatpush.msrb.mxu1 %v2730_v49  ;;  %v4124_v49 = vld [vmem:[%s4605_s17 + $0x111] sm:$0xff] }
 0x23a   : > { %v1353_v19 = vpop.f32.mrf.mxu2  ;;  %v1547_v37 = vpop.f32.mrf.mxu3 }
 0x23b   : > { %v1449_v15 = vadd.f32 %v1353_v19, %v5251_v27  ;;  %v1744_v0 = vpop.f32.mrf.mxu0  ;;  %v4171_v27 = vld [vmem:[%s4605_s17 + $0x10a] sm:$0xff] }
 0x23c   : > { %v2017_v19 = vld [vmem:[#allocation3 + $0x60] sm:$0xff] }
 0x23d   : > { %v1643_v46 = vadd.f32 %v1547_v37, %v1449_v15  ;;  %v2341_v37 = vld [vmem:[#allocation3 + $0x160] sm:$0xff]  ;;  %v4075_v15 = vld [vmem:[%s4605_s17 + $0x108] sm:$0xff]  ;;  %2186 = vmatpush.msrb.mxu2 %v2017_v19 }
 0x23e   : > { %1791 = vmatmul.f32.gmra.mxu0 %v4170_v44  ;;  %v4123_v44 = vld [vmem:[%s4605_s17 + $0x109] sm:$0xff]  ;;  %2348 = vmatpush.msrb.mxu3 %v2341_v37 }
 0x23f   : > { %v1837_v6 = vadd.f32 %v1741_v17, %v1643_v46  ;;  %1403 = vmatmul.f32.gmra.mxu2 %v4074_v35  ;;  %1597 = vmatmul.f32.gmra.mxu3 %v4122_v11  ;;  %v5574_v35 = vpop.f32.mrf.mxu1 }
 0x241   : > { %v1869_v8 = vmax.f32 %v1837_v6, 0.0 }
 0x242   : > { %v1356_v13 = vpop.f32.mrf.mxu2  ;;  %v1550_v63 = vpop.f32.mrf.mxu3 }
 0x243   : > { %1941 = vst [vmem:[#allocation2 + $0x19] sm:$0xff] %v1869_v8  ;;  %v1450_v55 = vadd.f32 %v1356_v13, %v5264_v59  ;;  %v1747_v48 = vpop.f32.mrf.mxu0  ;;  %2092 = vmatmul.f32.gmra.mxu1 %v1869_v8  ;;  %v4172_v13 = vld [vmem:[%s4605_s17 + $0x112] sm:$0xff] }
 0x245   : > { %v1644_v17 = vadd.f32 %v1550_v63, %v1450_v55  ;;  %v2535_v63 = vld [vmem:[#allocation3 + $0x1e0] sm:$0xff] }
 0x246   : > { %1794 = vmatmul.f32.gmra.mxu0 %v4171_v27  ;;  %v4076_v55 = vld [vmem:[%s4605_s17 + $0x110] sm:$0xff] }
 0x247   : > { %v1838_v25 = vadd.f32 %v1744_v0, %v1644_v17  ;;  %1406 = vmatmul.f32.gmra.mxu2 %v4075_v15  ;;  %1600 = vmatmul.f32.gmra.mxu3 %v4123_v44  ;;  %v4173_v44 = vld [vmem:[%s4605_s17 + $0x122] sm:$0xff] }
 0x248   : > { %2542 = vmatpush.msrb.mxu0 %v2535_v63 }
 0x249   : > { %v1870_v59 = vmax.f32 %v1838_v25, 0.0 }
 0x24a   : > { %v1359_v11 = vpop.f32.mrf.mxu2  ;;  %v1553_v46 = vpop.f32.mrf.mxu3 }
 0x24b   : > { %1942 = vst [vmem:[#allocation2 + $0x21] sm:$0xff] %v1870_v59  ;;  %v1451_v6 = vadd.f32 %v1359_v11, %v5274_v60  ;;  %v1750_v8 = vpop.f32.mrf.mxu0  ;;  %2095 = vmatmul.f32.gmra.mxu1 %v1870_v59  ;;  %v5581_v60 = vpop.f32.mrf.mxu1  ;;  %v2729_v59 = vld [vmem:[#allocation3 + $0x260] sm:$0xff]  ;;  %v2016_v11 = vld [vmem:[#allocation3 + $0x58] sm:$0xff] }
 0x24c   : > { %2736 = vmatpush.msrb.mxu1 %v2729_v59  ;;  %2187 = vmatpush.msrb.mxu2 %v2016_v11  ;;  %v4078_v59 = vld [vmem:[%s4605_s17 + $0x128] sm:$0xff] }
 0x24d   : > { %v1645_v27 = vadd.f32 %v1553_v46, %v1451_v6  ;;  %v2340_v46 = vld [vmem:[#allocation3 + $0x158] sm:$0xff]  ;;  %v4077_v6 = vld [vmem:[%s4605_s17 + $0x120] sm:$0xff] }
 0x24e   : > { %1797 = vmatmul.f32.gmra.mxu0 %v4172_v13  ;;  %2349 = vmatpush.msrb.mxu3 %v2340_v46  ;;  %v4126_v11 = vld [vmem:[%s4605_s17 + $0x129] sm:$0xff] }
 0x24f   : > { %v1839_v0 = vadd.f32 %v1747_v48, %v1645_v27  ;;  %1409 = vmatmul.f32.gmra.mxu2 %v4076_v55  ;;  %1603 = vmatmul.f32.gmra.mxu3 %v4124_v49  ;;  %v4125_v48 = vld [vmem:[%s4605_s17 + $0x121] sm:$0xff] }
 0x251   : > { %v1871_v19 = vmax.f32 %v1839_v0, 0.0 }
 0x252   : > { %v1362_v37 = vpop.f32.mrf.mxu2  ;;  %v1556_v15 = vpop.f32.mrf.mxu3 }
 0x253   : > { %1943 = vst [vmem:[#allocation2 + $0x31] sm:$0xff] %v1871_v19  ;;  %v1452_v17 = vadd.f32 %v1362_v37, %v5287_v29  ;;  %v1753_v25 = vpop.f32.mrf.mxu0  ;;  %2098 = vmatmul.f32.gmra.mxu1 %v1871_v19  ;;  %v4174_v19 = vld [vmem:[%s4605_s17 + $0x12a] sm:$0xff] }
 0x254   : > { %v2534_v37 = vld [vmem:[#allocation3 + $0x1d8] sm:$0xff] }
 0x255   : > { %v1646_v13 = vadd.f32 %v1556_v15, %v1452_v17  ;;  %2543 = vmatpush.msrb.mxu0 %v2534_v37  ;;  %v5590_v15 = vpop.f32.mrf.mxu1  ;;  %v4079_v37 = vld [vmem:[%s4605_s17 + $0x138] sm:$0xff] }
 0x256   : > { %1800 = vmatmul.f32.gmra.mxu0 %v4173_v44 }
 0x257   : > { %v1840_v63 = vadd.f32 %v1750_v8, %v1646_v13  ;;  %1412 = vmatmul.f32.gmra.mxu2 %v4077_v6  ;;  %1606 = vmatmul.f32.gmra.mxu3 %v4125_v48  ;;  %v4175_v6 = vld [vmem:[%s4605_s17 + $0x13a] sm:$0xff] }
 0x259   : > { %v1872_v55 = vmax.f32 %v1840_v63, 0.0  ;;  %v2728_v63 = vld [vmem:[#allocation3 + $0x258] sm:$0xff] }
 0x25a   : > { %v1365_v29 = vpop.f32.mrf.mxu2  ;;  %v1559_v49 = vpop.f32.mrf.mxu3  ;;  %2737 = vmatpush.msrb.mxu1 %v2728_v63 }
 0x25b   : > { %1944 = vst [vmem:[#allocation2 + $0x39] sm:$0xff] %v1872_v55  ;;  %v1453_v27 = vadd.f32 %v1365_v29, %v5297_v9  ;;  %v1756_v0 = vpop.f32.mrf.mxu0  ;;  %2101 = vmatmul.f32.gmra.mxu1 %v1872_v55  ;;  %v2015_v55 = vld [vmem:[#allocation3 + $0x50] sm:$0xff] }
 0x25c   : > { %v2339_v29 = vld [vmem:[#allocation3 + $0x150] sm:$0xff]  ;;  %2188 = vmatpush.msrb.mxu2 %v2015_v55 }
 0x25d   : > { %v1647_v44 = vadd.f32 %v1559_v49, %v1453_v27  ;;  %v4127_v49 = vld [vmem:[%s4605_s17 + $0x139] sm:$0xff]  ;;  %2350 = vmatpush.msrb.mxu3 %v2339_v29  ;;  %v5596_v27 = vpop.f32.mrf.mxu1 }
 0x25e   : > { %1803 = vmatmul.f32.gmra.mxu0 %v4174_v19 }
 0x25f   : > { %v1841_v8 = vadd.f32 %v1753_v25, %v1647_v44  ;;  %1415 = vmatmul.f32.gmra.mxu2 %v4078_v59  ;;  %1609 = vmatmul.f32.gmra.mxu3 %v4126_v11 }
 0x261   : > { %v1873_v17 = vmax.f32 %v1841_v8, 0.0 }
 0x262   : > { %v1368_v46 = vpop.f32.mrf.mxu2  ;;  %v1562_v9 = vpop.f32.mrf.mxu3 }
 0x263   : > { %1945 = vst [vmem:[#allocation2 + $0x49] sm:$0xff] %v1873_v17  ;;  %v1454_v48 = vadd.f32 %v1368_v46, %v5310_v34  ;;  %v1759_v13 = vpop.f32.mrf.mxu0  ;;  %2104 = vmatmul.f32.gmra.mxu1 %v1873_v17  ;;  %v4176_v17 = vld [vmem:[%s4605_s17 + $0x142] sm:$0xff] }
 0x264   : > { %v2533_v46 = vld [vmem:[#allocation3 + $0x1d0] sm:$0xff] }
 0x265   : > { %v1648_v25 = vadd.f32 %v1562_v9, %v1454_v48  ;;  %v4080_v9 = vld [vmem:[%s4605_s17 + $0x140] sm:$0xff]  ;;  %2544 = vmatpush.msrb.mxu0 %v2533_v46  ;;  %v5602_v63 = vpop.f32.mrf.mxu1 }
 0x266   : > { %1806 = vmatmul.f32.gmra.mxu0 %v4175_v6  ;;  %v4128_v48 = vld [vmem:[%s4605_s17 + $0x141] sm:$0xff] }
 0x267   : > { %v1842_v19 = vadd.f32 %v1756_v0, %v1648_v25  ;;  %1418 = vmatmul.f32.gmra.mxu2 %v4079_v37  ;;  %1612 = vmatmul.f32.gmra.mxu3 %v4127_v49  ;;  %v4177_v37 = vld [vmem:[%s4605_s17 + $0x152] sm:$0xff] }
 0x269   : > { %v1874_v34 = vmax.f32 %v1842_v19, 0.0  ;;  %v2727_v19 = vld [vmem:[#allocation3 + $0x250] sm:$0xff] }
 0x26a   : > { %v1371_v59 = vpop.f32.mrf.mxu2  ;;  %v1565_v11 = vpop.f32.mrf.mxu3  ;;  %2738 = vmatpush.msrb.mxu1 %v2727_v19 }
 0x26b   : > { %1946 = vst [vmem:[#allocation2 + $0x51] sm:$0xff] %v1874_v34  ;;  %v1455_v44 = vadd.f32 %v1371_v59, %v5320_v1  ;;  %v1762_v8 = vpop.f32.mrf.mxu0  ;;  %2107 = vmatmul.f32.gmra.mxu1 %v1874_v34  ;;  %v2014_v34 = vld [vmem:[#allocation3 + $0x48] sm:$0xff] }
 0x26c   : > { %v2338_v59 = vld [vmem:[#allocation3 + $0x148] sm:$0xff]  ;;  %2189 = vmatpush.msrb.mxu2 %v2014_v34 }
 0x26d   : > { %v1649_v6 = vadd.f32 %v1565_v11, %v1455_v44  ;;  %v4081_v11 = vld [vmem:[%s4605_s17 + $0x150] sm:$0xff]  ;;  %2351 = vmatpush.msrb.mxu3 %v2338_v59 }
 0x26e   : > { %1809 = vmatmul.f32.gmra.mxu0 %v4176_v17  ;;  %v4129_v44 = vld [vmem:[%s4605_s17 + $0x151] sm:$0xff] }
 0x26f   : > { %v1843_v0 = vadd.f32 %v1759_v13, %v1649_v6  ;;  %1421 = vmatmul.f32.gmra.mxu2 %v4080_v9  ;;  %1615 = vmatmul.f32.gmra.mxu3 %v4128_v48  ;;  %v5610_v6 = vpop.f32.mrf.mxu1 }
 0x271   : > { %v1875_v55 = vmax.f32 %v1843_v0, 0.0 }
 0x272   : > { %v1374_v29 = vpop.f32.mrf.mxu2  ;;  %v1568_v1 = vpop.f32.mrf.mxu3 }
 0x273   : > { %1947 = vst [vmem:[#allocation2 + $0x61] sm:$0xff] %v1875_v55  ;;  %v1456_v49 = vadd.f32 %v1374_v29, %v5333_v38  ;;  %v1765_v25 = vpop.f32.mrf.mxu0  ;;  %2110 = vmatmul.f32.gmra.mxu1 %v1875_v55  ;;  %v1262_v38 = vadd.f32 %v5408_v47, %v5340_v22  ;;  %v4178_v29 = vld [vmem:[%s4605_s17 + $0x15a] sm:$0xff]  ;;  %v1263_v22 = vadd.f32 %v5416_v39, %v5350_v24  ;;  %v2531_v24 = vld [vmem:[#allocation3 + $0x1c0] sm:$0xff] }
 0x275   : > { %v1650_v13 = vadd.f32 %v1568_v1, %v1456_v49  ;;  %v2532_v1 = vld [vmem:[#allocation3 + $0x1c8] sm:$0xff] }
 0x276   : > { %1812 = vmatmul.f32.gmra.mxu0 %v4177_v37  ;;  %v4082_v37 = vld [vmem:[%s4605_s17 + $0x158] sm:$0xff] }
 0x277   : > { %v1844_v17 = vadd.f32 %v1762_v8, %v1650_v13  ;;  %1424 = vmatmul.f32.gmra.mxu2 %v4081_v11  ;;  %1618 = vmatmul.f32.gmra.mxu3 %v4129_v44  ;;  %v4130_v49 = vld [vmem:[%s4605_s17 + $0x159] sm:$0xff]  ;;  %v4179_v11 = vld [vmem:[%s4605_s17 + $0x16a] sm:$0xff] }
 0x278   : > { %2545 = vmatpush.msrb.mxu0 %v2532_v1  ;;  %v2336_v1 = vld [vmem:[#allocation3 + $0x138] sm:$0xff] }
 0x279   : > { %v1876_v46 = vmax.f32 %v1844_v17, 0.0  ;;  %v2726_v17 = vld [vmem:[#allocation3 + $0x248] sm:$0xff] }
 0x27a   : > { %v1377_v9 = vpop.f32.mrf.mxu2  ;;  %v1571_v48 = vpop.f32.mrf.mxu3  ;;  %2739 = vmatpush.msrb.mxu1 %v2726_v17  ;;  %2546 = vmatpush.msrb.mxu0 %v2531_v24  ;;  %v2010_v17 = vld [vmem:[#allocation3 + $0x28] sm:$0xff] }
 0x27b   : > { %1948 = vst [vmem:[#allocation2 + $0x69] sm:$0xff] %v1876_v46  ;;  %v1457_v0 = vadd.f32 %v1377_v9, %v1262_v38  ;;  %v1768_v55 = vpop.f32.mrf.mxu0  ;;  %2113 = vmatmul.f32.gmra.mxu1 %v1876_v46  ;;  %v2013_v38 = vld [vmem:[#allocation3 + $0x40] sm:$0xff]  ;;  %v4083_v9 = vld [vmem:[%s4605_s17 + $0x168] sm:$0xff] }
 0x27c   : > { %v2337_v46 = vld [vmem:[#allocation3 + $0x140] sm:$0xff]  ;;  %2190 = vmatpush.msrb.mxu2 %v2013_v38  ;;  %v2334_v38 = vld [vmem:[#allocation3 + $0x128] sm:$0xff] }
 0x27d   : > { %v1651_v8 = vadd.f32 %v1571_v48, %v1457_v0  ;;  %v4131_v48 = vld [vmem:[%s4605_s17 + $0x169] sm:$0xff]  ;;  %2352 = vmatpush.msrb.mxu3 %v2337_v46 }
 0x27e   : > { %1815 = vmatmul.f32.gmra.mxu0 %v4178_v29  ;;  %v2012_v29 = vld [vmem:[#allocation3 + $0x38] sm:$0xff] }
 0x27f   : > { %v1845_v19 = vadd.f32 %v1765_v25, %v1651_v8  ;;  %1427 = vmatmul.f32.gmra.mxu2 %v4082_v37  ;;  %1621 = vmatmul.f32.gmra.mxu3 %v4130_v49  ;;  %v5620_v25 = vpop.f32.mrf.mxu1  ;;  %v2530_v37 = vld [vmem:[#allocation3 + $0x1b8] sm:$0xff]  ;;  %v1264_v49 = vadd.f32 %v5426_v23, %v5363_v53  ;;  %v4084_v53 = vld [vmem:[%s4605_s17 + $0x170] sm:$0xff] }
 0x280   : > { %2191 = vmatpush.msrb.mxu2 %v2012_v29  ;;  %2353 = vmatpush.msrb.mxu3 %v2336_v1  ;;  %v4132_v23 = vld [vmem:[%s4605_s17 + $0x171] sm:$0xff]  ;;  %v2008_v1 = vld [vmem:[#allocation3 + $0x18] sm:$0xff] }
 0x281   : > { %v1877_v47 = vmax.f32 %v1845_v19, 0.0  ;;  %v2011_v19 = vld [vmem:[#allocation3 + $0x30] sm:$0xff]  ;;  %2547 = vmatpush.msrb.mxu0 %v2530_v37  ;;  %v2527_v29 = vld [vmem:[#allocation3 + $0x1a0] sm:$0xff]  ;;  %v2332_v37 = vld [vmem:[#allocation3 + $0x118] sm:$0xff] }
 0x282   : > { %v1380_v34 = vpop.f32.mrf.mxu2  ;;  %v1574_v59 = vpop.f32.mrf.mxu3  ;;  %2192 = vmatpush.msrb.mxu2 %v2011_v19  ;;  %v2526_v19 = vld [vmem:[#allocation3 + $0x198] sm:$0xff] }
 0x283   : > { %1949 = vst [vmem:[#allocation2 + $0x79] sm:$0xff] %v1877_v47  ;;  %v1458_v44 = vadd.f32 %v1380_v34, %v1263_v22  ;;  %v1771_v13 = vpop.f32.mrf.mxu0  ;;  %2116 = vmatmul.f32.gmra.mxu1 %v1877_v47  ;;  %v2335_v22 = vld [vmem:[#allocation3 + $0x130] sm:$0xff] }
 0x284   : > { %v2529_v47 = vld [vmem:[#allocation3 + $0x1b0] sm:$0xff]  ;;  %2354 = vmatpush.msrb.mxu3 %v2335_v22  ;;  %2193 = vmatpush.msrb.mxu2 %v2010_v17  ;;  %v2725_v17 = vld [vmem:[#allocation3 + $0x240] sm:$0xff] }
 0x285   : > { %v1652_v0 = vadd.f32 %v1574_v59, %v1458_v44  ;;  %v4180_v44 = vld [vmem:[%s4605_s17 + $0x172] sm:$0xff]  ;;  %2548 = vmatpush.msrb.mxu0 %v2529_v47  ;;  %v2007_v22 = vld [vmem:[#allocation3 + $0x10] sm:$0xff]  ;;  %2740 = vmatpush.msrb.mxu1 %v2725_v17 }
 0x286   : > { %1818 = vmatmul.f32.gmra.mxu0 %v4179_v11  ;;  %2355 = vmatpush.msrb.mxu3 %v2334_v38  ;;  %v2006_v38 = vld [vmem:[#allocation3 + $0x8] sm:$0xff] }
 0x287   : > { %v1846_v39 = vadd.f32 %v1768_v55, %v1652_v0  ;;  %1430 = vmatmul.f32.gmra.mxu2 %v4083_v9  ;;  %1624 = vmatmul.f32.gmra.mxu3 %v4131_v48  ;;  %v2528_v9 = vld [vmem:[#allocation3 + $0x1a8] sm:$0xff]  ;;  %v2009_v48 = vld [vmem:[#allocation3 + $0x20] sm:$0xff]  ;;  %v5627_v24 = vpop.f32.mrf.mxu1 }
 0x288   : > { %v2333_v0 = vld [vmem:[#allocation3 + $0x120] sm:$0xff]  ;;  %2194 = vmatpush.msrb.mxu2 %v2009_v48  ;;  %2549 = vmatpush.msrb.mxu0 %v2528_v9 }
 0x289   : > { %v1878_v8 = vmax.f32 %v1846_v39, 0.0  ;;  %2356 = vmatpush.msrb.mxu3 %v2333_v0  ;;  %v2005_v9 = vld [vmem:[#allocation3] sm:$0xff]  ;;  %v2524_v0 = vld [vmem:[#allocation3 + $0x188] sm:$0xff] }
 0x28a   : > { %v1383_v34 = vpop.f32.mrf.mxu2  ;;  %v1577_v55 = vpop.f32.mrf.mxu3  ;;  %2195 = vmatpush.msrb.mxu2 %v2008_v1  ;;  %2550 = vmatpush.msrb.mxu0 %v2527_v29  ;;  %v1266_v29 = vadd.f32 %v5446_v16, %v5380_v62  ;;  %v1267_v16 = vadd.f32 %v5454_v41, %v5387_v12  ;;  %v1268_v41 = vadd.f32 %v5464_v45, %v5394_v56 }
 0x28b   : > { %1950 = vst [vmem:[#allocation2 + $0x81] sm:$0xff] %v1878_v8  ;;  %v1459_v59 = vadd.f32 %v1383_v34, %v1264_v49  ;;  %v1774_v11 = vpop.f32.mrf.mxu0  ;;  %2119 = vmatmul.f32.gmra.mxu1 %v1878_v8  ;;  %v1265_v49 = vadd.f32 %v5434_v20, %v5373_v2  ;;  %2357 = vmatpush.msrb.mxu3 %v2332_v37  ;;  %v4085_v2 = vld [vmem:[%s4605_s17 + $0x180] sm:$0xff] }
 0x28c   : > { %2196 = vmatpush.msrb.mxu2 %v2007_v22  ;;  %v4133_v20 = vld [vmem:[%s4605_s17 + $0x181] sm:$0xff]  ;;  %2551 = vmatpush.msrb.mxu0 %v2526_v19  ;;  %v1269_v56 = vadd.f32 %v5472_v43, %v5402_v40  ;;  %v1270_v40 = vadd.f32 %v5485_v5, %v5410_v33  ;;  %v1271_v33 = vadd.f32 %v5504_v7, %v5418_v58 }
 0x28d   : > { %v1653_v46 = vadd.f32 %v1577_v55, %v1459_v59  ;;  %v1272_v58 = vadd.f32 %v5524_v18, %v5424_v28 }
 0x28e   : > { %1821 = vmatmul.f32.gmra.mxu0 %v4180_v44  ;;  %v4181_v44 = vld [vmem:[%s4605_s17 + $0x182] sm:$0xff]  ;;  %2197 = vmatpush.msrb.mxu2 %v2006_v38 }
 0x28f   : > { %v1847_v39 = vadd.f32 %v1771_v13, %v1653_v46  ;;  %1433 = vmatmul.f32.gmra.mxu2 %v4084_v53  ;;  %1627 = vmatmul.f32.gmra.mxu3 %v4132_v23  ;;  %v2331_v13 = vld [vmem:[#allocation3 + $0x110] sm:$0xff]  ;;  %v2330_v46 = vld [vmem:[#allocation3 + $0x108] sm:$0xff]  ;;  %v5636_v1 = vpop.f32.mrf.mxu1 }
 0x290   : > { %2358 = vmatpush.msrb.mxu3 %v2331_v13  ;;  %v2525_v23 = vld [vmem:[#allocation3 + $0x190] sm:$0xff]  ;;  %2198 = vmatpush.msrb.mxu2 %v2005_v9  ;;  %v4134_v13 = vld [vmem:[%s4605_s17 + $0x189] sm:$0xff]  ;;  %v4087_v9 = vld [vmem:[%s4605_s17 + $0x198] sm:$0xff] }
 0x291   : > { %v1879_v8 = vmax.f32 %v1847_v39, 0.0  ;;  %v2329_v39 = vld [vmem:[#allocation3 + $0x100] sm:$0xff]  ;;  %2552 = vmatpush.msrb.mxu0 %v2525_v23  ;;  %v2724_v23 = vld [vmem:[#allocation3 + $0x238] sm:$0xff] }
 0x292   : > { %v1386_v47 = vpop.f32.mrf.mxu2  ;;  %v1580_v34 = vpop.f32.mrf.mxu3  ;;  %2359 = vmatpush.msrb.mxu3 %v2330_v46  ;;  %2741 = vmatpush.msrb.mxu1 %v2724_v23 }
 0x293   : > { %1951 = vst [vmem:[#allocation2 + $0x91] sm:$0xff] %v1879_v8  ;;  %v1460_v55 = vadd.f32 %v1386_v47, %v1265_v49  ;;  %v1777_v59 = vpop.f32.mrf.mxu0  ;;  %2122 = vmatmul.f32.gmra.mxu1 %v1879_v8  ;;  %v2523_v49 = vld [vmem:[#allocation3 + $0x180] sm:$0xff]  ;;  %2553 = vmatpush.msrb.mxu0 %v2524_v0 }
 0x294   : > { %2360 = vmatpush.msrb.mxu3 %v2329_v39  ;;  %v4182_v47 = vld [vmem:[%s4605_s17 + $0x18a] sm:$0xff] }
 0x295   : > { %v1654_v53 = vadd.f32 %v1580_v34, %v1460_v55  ;;  %v4086_v34 = vld [vmem:[%s4605_s17 + $0x188] sm:$0xff]  ;;  %2554 = vmatpush.msrb.mxu0 %v2523_v49 }
 0x296   : > { %1824 = vmatmul.f32.gmra.mxu0 %v4181_v44 }
 0x297   : > { %v1848_v48 = vadd.f32 %v1774_v11, %v1654_v53  ;;  %1436 = vmatmul.f32.gmra.mxu2 %v4085_v2  ;;  %1630 = vmatmul.f32.gmra.mxu3 %v4133_v20  ;;  %v4183_v53 = vld [vmem:[%s4605_s17 + $0x19a] sm:$0xff]  ;;  %v5644_v46 = vpop.f32.mrf.mxu1 }
 0x299   : > { %v1880_v37 = vmax.f32 %v1848_v48, 0.0  ;;  %v4135_v48 = vld [vmem:[%s4605_s17 + $0x199] sm:$0xff] }
 0x29a   : > { %v1389_v8 = vpop.f32.mrf.mxu2  ;;  %v1583_v19 = vpop.f32.mrf.mxu3 }
 0x29b   : > { %1952 = vst [vmem:[#allocation2 + $0x99] sm:$0xff] %v1880_v37  ;;  %v1461_v11 = vadd.f32 %v1389_v8, %v1266_v29  ;;  %v1780_v22 = vpop.f32.mrf.mxu0  ;;  %2125 = vmatmul.f32.gmra.mxu1 %v1880_v37  ;;  %v4184_v8 = vld [vmem:[%s4605_s17 + $0x1a2] sm:$0xff] }
 0x29d   : > { %v1655_v55 = vadd.f32 %v1583_v19, %v1461_v11  ;;  %v4088_v19 = vld [vmem:[%s4605_s17 + $0x1a0] sm:$0xff] }
 0x29e   : > { %1827 = vmatmul.f32.gmra.mxu0 %v4182_v47  ;;  %v4136_v11 = vld [vmem:[%s4605_s17 + $0x1a1] sm:$0xff] }
 0x29f   : > { %v1849_v62 = vadd.f32 %v1777_v59, %v1655_v55  ;;  %1439 = vmatmul.f32.gmra.mxu2 %v4086_v34  ;;  %1633 = vmatmul.f32.gmra.mxu3 %v4134_v13  ;;  %v5653_v47 = vpop.f32.mrf.mxu1 }
 0x2a1   : > { %v1881_v44 = vmax.f32 %v1849_v62, 0.0 }
 0x2a2   : > { %v1392_v17 = vpop.f32.mrf.mxu2  ;;  %v1586_v38 = vpop.f32.mrf.mxu3 }
 0x2a3   : > { %1953 = vst [vmem:[#allocation2 + $0xa9] sm:$0xff] %v1881_v44  ;;  %v1462_v2 = vadd.f32 %v1392_v17, %v1267_v16  ;;  %v1783_v20 = vpop.f32.mrf.mxu0  ;;  %2128 = vmatmul.f32.gmra.mxu1 %v1881_v44  ;;  %v2723_v44 = vld [vmem:[#allocation3 + $0x230] sm:$0xff] }
 0x2a4   : > { %v2296_v17 = vld [vmem:[#allocation2 + $0x2] sm:$0xff]  ;;  %2742 = vmatpush.msrb.mxu1 %v2723_v44 }
 0x2a5   : > { %v1656_v59 = vadd.f32 %v1586_v38, %v1462_v2  ;;  %v2490_v2 = vld [vmem:[#allocation2 + $0x18] sm:$0xff] }
 0x2a6   : > { %1830 = vmatmul.f32.gmra.mxu0 %v4183_v53 }
 0x2a7   : > { %v1850_v12 = vadd.f32 %v1780_v22, %v1656_v59  ;;  %1442 = vmatmul.f32.gmra.mxu2 %v4087_v9  ;;  %1636 = vmatmul.f32.gmra.mxu3 %v4135_v48  ;;  %v5657_v53 = vpop.f32.mrf.mxu1 }
 0x2a9   : > { %v1882_v0 = vmax.f32 %v1850_v12, 0.0  ;;  %v2297_v12 = vld [vmem:[#allocation2 + $0xa] sm:$0xff] }
 0x2aa   : > { %v1395_v39 = vpop.f32.mrf.mxu2  ;;  %v1589_v29 = vpop.f32.mrf.mxu3 }
 0x2ab   : > { %1954 = vst [vmem:[#allocation2 + $0xb1] sm:$0xff] %v1882_v0  ;;  %v1463_v37 = vadd.f32 %v1395_v39, %v1268_v41  ;;  %v1786_v49 = vpop.f32.mrf.mxu0  ;;  %2131 = vmatmul.f32.gmra.mxu1 %v1882_v0  ;;  %v2491_v0 = vld [vmem:[#allocation2 + $0x20] sm:$0xff] }
 0x2ad   : > { %v1657_v34 = vadd.f32 %v1589_v29, %v1463_v37 }
 0x2ae   : > { %1833 = vmatmul.f32.gmra.mxu0 %v4184_v8 }
 0x2af   : > { %v1851_v22 = vadd.f32 %v1783_v20, %v1657_v34  ;;  %1445 = vmatmul.f32.gmra.mxu2 %v4088_v19  ;;  %1639 = vmatmul.f32.gmra.mxu3 %v4136_v11  ;;  %v2722_v11 = vld [vmem:[#allocation3 + $0x228] sm:$0xff] }
 0x2b0   : > { %2743 = vmatpush.msrb.mxu1 %v2722_v11  ;;  %v2301_v11 = vld [vmem:[#allocation2 + $0x3a] sm:$0xff] }
 0x2b1   : > { %v1883_v45 = vmax.f32 %v1851_v22, 0.0  ;;  %v2492_v22 = vld [vmem:[#allocation2 + $0x30] sm:$0xff] }
 0x2b2   : > { %v1398_v13 = vpop.f32.mrf.mxu2  ;;  %v1592_v55 = vpop.f32.mrf.mxu3 }
 0x2b3   : > { %1955 = vst [vmem:[#allocation2 + $0xc1] sm:$0xff] %v1883_v45  ;;  %v1464_v62 = vadd.f32 %v1398_v13, %v1269_v56  ;;  %v1789_v16 = vpop.f32.mrf.mxu0  ;;  %2134 = vmatmul.f32.gmra.mxu1 %v1883_v45  ;;  %v2298_v56 = vld [vmem:[#allocation2 + $0x1a] sm:$0xff] }
 0x2b5   : > { %v1658_v38 = vadd.f32 %v1592_v55, %v1464_v62 }
 0x2b6   : > { %2555 = vmatmul.f32.vlgmr.msrb.gmra.mxu0 %v2490_v2 }
 0x2b7   : > { %v1852_v20 = vadd.f32 %v1786_v49, %v1658_v38  ;;  %2199 = vmatmul.f32.vlgmr.msrb.gmra.mxu2 %v4432_v57  ;;  %2361 = vmatmul.f32.vlgmr.msrb.gmra.mxu3 %v2296_v17  ;;  %v2493_v17 = vld [vmem:[#allocation2 + $0x38] sm:$0xff]  ;;  %v2299_v38 = vld [vmem:[#allocation2 + $0x22] sm:$0xff] }
 0x2b9   : > { %v1884_v43 = vmax.f32 %v1852_v20, 0.0 }
 0x2ba   : > { %v1401_v23 = vpop.f32.mrf.mxu2  ;;  %v1595_v9 = vpop.f32.mrf.mxu3 }
 0x2bb   : > { %1956 = vst [vmem:[#allocation2 + $0xc9] sm:$0xff] %v1884_v43  ;;  %v1465_v48 = vadd.f32 %v1401_v23, %v1270_v40  ;;  %v1792_v59 = vpop.f32.mrf.mxu0  ;;  %2137 = vmatmul.f32.gmra.mxu1 %v1884_v43  ;;  %v1273_v40 = vadd.f32 %v5542_v4, %v5432_v42  ;;  %v1274_v42 = vadd.f32 %v5559_v3, %v5440_v10 }
 0x2bd   : > { %v1659_v41 = vadd.f32 %v1595_v9, %v1465_v48  ;;  %v2721_v48 = vld [vmem:[#allocation3 + $0x220] sm:$0xff] }
 0x2be   : > { %2558 = vmatmul.f32.gmra.mxu0 %v2491_v0  ;;  %2744 = vmatpush.msrb.mxu1 %v2721_v48 }
 0x2bf   : > { %v1853_v39 = vadd.f32 %v1789_v16, %v1659_v41  ;;  %2202 = vmatmul.f32.gmra.mxu2 %v4432_v57  ;;  %2364 = vmatmul.f32.gmra.mxu3 %v2297_v12  ;;  %v2494_v12 = vld [vmem:[#allocation2 + $0x48] sm:$0xff]  ;;  %v2300_v41 = vld [vmem:[#allocation2 + $0x32] sm:$0xff] }
 0x2c0   : > { %v5663_v29 = vpop.f32.mrf.mxu1 }
 0x2c1   : > { %v1885_v5 = vmax.f32 %v1853_v39, 0.0 }
 0x2c2   : > { %v1404_v37 = vpop.f32.mrf.mxu2  ;;  %v1598_v49 = vpop.f32.mrf.mxu3 }
 0x2c3   : > { %1957 = vst [vmem:[#allocation2 + $0xd9] sm:$0xff] %v1885_v5  ;;  %v1466_v8 = vadd.f32 %v1404_v37, %v1271_v33  ;;  %v1795_v19 = vpop.f32.mrf.mxu0  ;;  %2140 = vmatmul.f32.gmra.mxu1 %v1885_v5 }
 0x2c5   : > { %v1660_v34 = vadd.f32 %v1598_v49, %v1466_v8 }
 0x2c6   : > { %2561 = vmatmul.f32.gmra.mxu0 %v2492_v22 }
 0x2c7   : > { %v1854_v57 = vadd.f32 %v1792_v59, %v1660_v34  ;;  %2205 = vmatmul.f32.gmra.mxu2 %v2490_v2  ;;  %2367 = vmatmul.f32.gmra.mxu3 %v2298_v56  ;;  %v1275_v56 = vadd.f32 %v5568_v21, %v5448_v14  ;;  %v1276_v14 = vadd.f32 %v5574_v35, %v5456_v61 }
 0x2c8   : > { %v5667_v45 = vpop.f32.mrf.mxu1 }
 0x2c9   : > { %v1886_v7 = vmax.f32 %v1854_v57, 0.0 }
 0x2ca   : > { %v1407_v13 = vpop.f32.mrf.mxu2  ;;  %v1601_v55 = vpop.f32.mrf.mxu3 }
 0x2cb   : > { %1958 = vst [vmem:[#allocation2 + $0xe1] sm:$0xff] %v1886_v7  ;;  %v1467_v62 = vadd.f32 %v1407_v13, %v1272_v58  ;;  %v1798_v16 = vpop.f32.mrf.mxu0  ;;  %2143 = vmatmul.f32.gmra.mxu1 %v1886_v7  ;;  %v2720_v13 = vld [vmem:[#allocation3 + $0x218] sm:$0xff] }
 0x2cc   : > { %2745 = vmatpush.msrb.mxu1 %v2720_v13 }
 0x2cd   : > { %v1661_v44 = vadd.f32 %v1601_v55, %v1467_v62  ;;  %v2496_v62 = vld [vmem:[#allocation2 + $0x60] sm:$0xff] }
 0x2ce   : > { %2564 = vmatmul.f32.gmra.mxu0 %v2493_v17 }
 0x2cf   : > { %v1855_v20 = vadd.f32 %v1795_v19, %v1661_v44  ;;  %2208 = vmatmul.f32.gmra.mxu2 %v2491_v0  ;;  %2370 = vmatmul.f32.gmra.mxu3 %v2299_v38  ;;  %v2495_v19 = vld [vmem:[#allocation2 + $0x50] sm:$0xff] }
 0x2d0   : > { %v5671_v2 = vpop.f32.mrf.mxu1 }
 0x2d1   : > { %v1887_v28 = vmax.f32 %v1855_v20, 0.0 }
 0x2d2   : > { %v1410_v18 = vpop.f32.mrf.mxu2  ;;  %v1604_v43 = vpop.f32.mrf.mxu3 }
 0x2d3   : > { %1959 = vst [vmem:[#allocation2 + $0xf1] sm:$0xff] %v1887_v28  ;;  %v1468_v23 = vadd.f32 %v1410_v18, %v1273_v40  ;;  %v1801_v9 = vpop.f32.mrf.mxu0  ;;  %2146 = vmatmul.f32.gmra.mxu1 %v1887_v28 }
 0x2d5   : > { %v1662_v59 = vadd.f32 %v1604_v43, %v1468_v23  ;;  %v2497_v43 = vld [vmem:[#allocation2 + $0x68] sm:$0xff]  ;;  %v2303_v23 = vld [vmem:[#allocation2 + $0x52] sm:$0xff] }
 0x2d6   : > { %2567 = vmatmul.f32.gmra.mxu0 %v2494_v12 }
 0x2d7   : > { %v1856_v0 = vadd.f32 %v1798_v16, %v1662_v59  ;;  %2211 = vmatmul.f32.gmra.mxu2 %v2492_v22  ;;  %2373 = vmatmul.f32.gmra.mxu3 %v2300_v41  ;;  %v2302_v16 = vld [vmem:[#allocation2 + $0x4a] sm:$0xff]  ;;  %v1277_v59 = vadd.f32 %v5581_v60, %v5462_v31  ;;  %v1278_v31 = vadd.f32 %v5590_v15, %v5470_v36 }
 0x2d8   : > { %v5675_v39 = vpop.f32.mrf.mxu1 }
 0x2d9   : > { %v1888_v4 = vmax.f32 %v1856_v0, 0.0 }
 0x2da   : > { %v1413_v33 = vpop.f32.mrf.mxu2  ;;  %v1607_v5 = vpop.f32.mrf.mxu3 }
 0x2db   : > { %1960 = vst [vmem:[#allocation2 + $0xf9] sm:$0xff] %v1888_v4  ;;  %v1469_v37 = vadd.f32 %v1413_v33, %v1274_v42  ;;  %v1804_v49 = vpop.f32.mrf.mxu0  ;;  %2149 = vmatmul.f32.gmra.mxu1 %v1888_v4  ;;  %v2719_v42 = vld [vmem:[#allocation3 + $0x210] sm:$0xff]  ;;  %v2498_v33 = vld [vmem:[#allocation2 + $0x78] sm:$0xff] }
 0x2dc   : > { %2746 = vmatpush.msrb.mxu1 %v2719_v42 }
 0x2dd   : > { %v1663_v8 = vadd.f32 %v1607_v5, %v1469_v37  ;;  %v2304_v5 = vld [vmem:[#allocation2 + $0x62] sm:$0xff] }
 0x2de   : > { %2570 = vmatmul.f32.gmra.mxu0 %v2495_v19 }
 0x2df   : > { %v1857_v34 = vadd.f32 %v1801_v9, %v1663_v8  ;;  %2214 = vmatmul.f32.gmra.mxu2 %v2493_v17  ;;  %2376 = vmatmul.f32.gmra.mxu3 %v2301_v11 }
 0x2e0   : > { %v5679_v22 = vpop.f32.mrf.mxu1 }
 0x2e1   : > { %v1889_v10 = vmax.f32 %v1857_v34, 0.0 }
 0x2e2   : > { %v1416_v3 = vpop.f32.mrf.mxu2  ;;  %v1610_v57 = vpop.f32.mrf.mxu3 }
 0x2e3   : > { %1961 = vst [vmem:[#allocation2 + $0x109] sm:$0xff] %v1889_v10  ;;  %v1470_v58 = vadd.f32 %v1416_v3, %v1275_v56  ;;  %v1807_v7 = vpop.f32.mrf.mxu0  ;;  %2152 = vmatmul.f32.gmra.mxu1 %v1889_v10  ;;  %v2499_v10 = vld [vmem:[#allocation2 + $0x80] sm:$0xff]  ;;  %v2305_v3 = vld [vmem:[#allocation2 + $0x6a] sm:$0xff] }
 0x2e5   : > { %v1664_v55 = vadd.f32 %v1610_v57, %v1470_v58 }
 0x2e6   : > { %2573 = vmatmul.f32.gmra.mxu0 %v2496_v62 }
 0x2e7   : > { %v1858_v44 = vadd.f32 %v1804_v49, %v1664_v55  ;;  %2217 = vmatmul.f32.gmra.mxu2 %v2494_v12  ;;  %2379 = vmatmul.f32.gmra.mxu3 %v2302_v16  ;;  %v2718_v16 = vld [vmem:[#allocation3 + $0x208] sm:$0xff] }
 0x2e8   : > { %v5683_v17 = vpop.f32.mrf.mxu1  ;;  %2747 = vmatpush.msrb.mxu1 %v2718_v16 }
 0x2e9   : > { %v1890_v21 = vmax.f32 %v1858_v44, 0.0 }
 0x2ea   : > { %v1419_v38 = vpop.f32.mrf.mxu2  ;;  %v1613_v20 = vpop.f32.mrf.mxu3 }
 0x2eb   : > { %1962 = vst [vmem:[#allocation2 + $0x111] sm:$0xff] %v1890_v21  ;;  %v1471_v40 = vadd.f32 %v1419_v38, %v1276_v14  ;;  %v1810_v28 = vpop.f32.mrf.mxu0  ;;  %2155 = vmatmul.f32.gmra.mxu1 %v1890_v21  ;;  %v2500_v14 = vld [vmem:[#allocation2 + $0x90] sm:$0xff]  ;;  %v2306_v21 = vld [vmem:[#allocation2 + $0x7a] sm:$0xff] }
 0x2ed   : > { %v1665_v18 = vadd.f32 %v1613_v20, %v1471_v40 }
 0x2ee   : > { %2576 = vmatmul.f32.gmra.mxu0 %v2497_v43 }
 0x2ef   : > { %v1859_v9 = vadd.f32 %v1807_v7, %v1665_v18  ;;  %2220 = vmatmul.f32.gmra.mxu2 %v2495_v19  ;;  %2382 = vmatmul.f32.gmra.mxu3 %v2303_v23  ;;  %v1279_v7 = vadd.f32 %v5596_v27, %v5478_v30  ;;  %v1280_v30 = vadd.f32 %v5602_v63, %v5490_v26  ;;  %v2717_v63 = vld [vmem:[#allocation3 + $0x200] sm:$0xff] }
 0x2f0   : > { %v5687_v48 = vpop.f32.mrf.mxu1  ;;  %2748 = vmatpush.msrb.mxu1 %v2717_v63  ;;  %v3508_v63 = vld [vmem:[#allocation3 + $0x470] sm:$0xff] }
 0x2f1   : > { %v1891_v61 = vmax.f32 %v1859_v9, 0.0  ;;  %v2501_v9 = vld [vmem:[#allocation2 + $0x98] sm:$0xff] }
 0x2f2   : > { %v1422_v35 = vpop.f32.mrf.mxu2  ;;  %v1616_v12 = vpop.f32.mrf.mxu3 }
 0x2f3   : > { %1963 = vst [vmem:[#allocation2 + $0x121] sm:$0xff] %v1891_v61  ;;  %v1472_v41 = vadd.f32 %v1422_v35, %v1277_v59  ;;  %v1813_v0 = vpop.f32.mrf.mxu0  ;;  %2158 = vmatmul.f32.gmra.mxu1 %v1891_v61  ;;  %v2307_v59 = vld [vmem:[#allocation2 + $0x82] sm:$0xff] }
 0x2f5   : > { %v1666_v4 = vadd.f32 %v1616_v12, %v1472_v41  ;;  %v1281_v12 = vadd.f32 %v5610_v6, %v5506_v32  ;;  %v1282_v6 = vadd.f32 %v5620_v25, %v5520_v52  ;;  %v3120_v52 = vld [vmem:[#allocation3 + $0x370] sm:$0xff] }
 0x2f6   : > { %2579 = vmatmul.f32.gmra.mxu0 %v2498_v33 }
 0x2f7   : > { %v1860_v37 = vadd.f32 %v1810_v28, %v1666_v4  ;;  %2223 = vmatmul.f32.gmra.mxu2 %v2496_v62  ;;  %2385 = vmatmul.f32.gmra.mxu3 %v2304_v5  ;;  %v3121_v5 = vld [vmem:[#allocation3 + $0x378] sm:$0xff] }
 0x2f8   : > { %v5691_v49 = vpop.f32.mrf.mxu1  ;;  %3122 = vmatpush.msra.mxu3 %v3121_v5 }
 0x2f9   : > { %v1892_v60 = vmax.f32 %v1860_v37, 0.0 }
 0x2fa   : > { %v1425_v8 = vpop.f32.mrf.mxu2  ;;  %v1619_v19 = vpop.f32.mrf.mxu3  ;;  %3123 = vmatpush.msra.mxu3 %v3120_v52  ;;  %v2313_v52 = vld [vmem:[#allocation2 + $0xca] sm:$0xff] }
 0x2fb   : > { %1964 = vst [vmem:[#allocation2 + $0x129] sm:$0xff] %v1892_v60  ;;  %v1473_v11 = vadd.f32 %v1425_v8, %v1278_v31  ;;  %v1816_v34 = vpop.f32.mrf.mxu0  ;;  %2161 = vmatmul.f32.gmra.mxu1 %v1892_v60  ;;  %v2502_v31 = vld [vmem:[#allocation2 + $0xa8] sm:$0xff]  ;;  %v2308_v60 = vld [vmem:[#allocation2 + $0x92] sm:$0xff] }
 0x2fd   : > { %v1667_v56 = vadd.f32 %v1619_v19, %v1473_v11 }
 0x2fe   : > { %2582 = vmatmul.f32.gmra.mxu0 %v2499_v10 }
 0x2ff   : > { %v1861_v57 = vadd.f32 %v1813_v0, %v1667_v56  ;;  %2226 = vmatmul.f32.gmra.mxu2 %v2497_v43  ;;  %2388 = vmatmul.f32.gmra.mxu3 %v2305_v3  ;;  %v3315_v3 = vld [vmem:[#allocation3 + $0x3f8] sm:$0xff] }
 0x300   : > { %v5695_v58 = vpop.f32.mrf.mxu1  ;;  %3316 = vmatpush.msra.mxu0 %v3315_v3 }
 0x301   : > { %v1893_v36 = vmax.f32 %v1861_v57, 0.0 }
 0x302   : > { %v1428_v15 = vpop.f32.mrf.mxu2  ;;  %v1622_v13 = vpop.f32.mrf.mxu3 }
 0x303   : > { %1965 = vst [vmem:[#allocation2 + $0x139] sm:$0xff] %v1893_v36  ;;  %v1474_v55 = vadd.f32 %v1428_v15, %v1279_v7  ;;  %v1819_v62 = vpop.f32.mrf.mxu0  ;;  %2164 = vmatmul.f32.gmra.mxu1 %v1893_v36  ;;  %v2503_v7 = vld [vmem:[#allocation2 + $0xb0] sm:$0xff]  ;;  %v3509_v36 = vld [vmem:[#allocation3 + $0x478] sm:$0xff]  ;;  %v2309_v15 = vld [vmem:[#allocation2 + $0x9a] sm:$0xff] }
 0x304   : > { %3510 = vmatpush.msra.mxu1 %v3509_v36 }
 0x305   : > { %v1668_v44 = vadd.f32 %v1622_v13, %v1474_v55  ;;  %v2925_v55 = vld [vmem:[#allocation3 + $0x2f0] sm:$0xff] }
 0x306   : > { %2585 = vmatmul.f32.gmra.mxu0 %v2500_v14  ;;  %3511 = vmatpush.msra.mxu1 %v3508_v63  ;;  %v2509_v63 = vld [vmem:[#allocation2 + $0xf8] sm:$0xff] }
 0x307   : > { %v1862_v38 = vadd.f32 %v1816_v34, %v1668_v44  ;;  %2229 = vmatmul.f32.gmra.mxu2 %v2498_v33  ;;  %2391 = vmatmul.f32.gmra.mxu3 %v2306_v21  ;;  %v2926_v33 = vld [vmem:[#allocation3 + $0x2f8] sm:$0xff] }
 0x308   : > { %v5699_v20 = vpop.f32.mrf.mxu1  ;;  %2927 = vmatpush.msra.mxu2 %v2926_v33 }
 0x309   : > { %v1894_v27 = vmax.f32 %v1862_v38, 0.0 }
 0x30a   : > { %v1431_v40 = vpop.f32.mrf.mxu2  ;;  %v1625_v28 = vpop.f32.mrf.mxu3  ;;  %2928 = vmatpush.msra.mxu2 %v2925_v55  ;;  %v3507_v55 = vld [vmem:[#allocation3 + $0x468] sm:$0xff] }
 0x30b   : > { %1966 = vst [vmem:[#allocation2 + $0x141] sm:$0xff] %v1894_v27  ;;  %v1475_v18 = vadd.f32 %v1431_v40, %v1280_v30  ;;  %v1822_v43 = vpop.f32.mrf.mxu0  ;;  %2167 = vmatmul.f32.gmra.mxu1 %v1894_v27  ;;  %v2504_v27 = vld [vmem:[#allocation2 + $0xc0] sm:$0xff]  ;;  %v2310_v40 = vld [vmem:[#allocation2 + $0xaa] sm:$0xff] }
 0x30c   : > { %3512 = vmatpush.msra.mxu1 %v3507_v55  ;;  %v2921_v55 = vld [vmem:[#allocation3 + $0x2d0] sm:$0xff] }
 0x30d   : > { %v1669_v23 = vadd.f32 %v1625_v28, %v1475_v18  ;;  %v3314_v18 = vld [vmem:[#allocation3 + $0x3f0] sm:$0xff] }
 0x30e   : > { %2588 = vmatmul.f32.gmra.mxu0 %v2501_v9 }
 0x30f   : > { %v1863_v61 = vadd.f32 %v1819_v62, %v1669_v23  ;;  %2232 = vmatmul.f32.gmra.mxu2 %v2499_v10  ;;  %2394 = vmatmul.f32.gmra.mxu3 %v2307_v59  ;;  %v1283_v62 = vadd.f32 %v5627_v24, %v5536_v51  ;;  %v1284_v51 = vadd.f32 %v5636_v1, %v5552_v50 }
 0x310   : > { %v5703_v35 = vpop.f32.mrf.mxu1  ;;  %3317 = vmatpush.msra.mxu0 %v3314_v18  ;;  %v1285_v50 = vadd.f32 %v5644_v46, %v5562_v54  ;;  %v2314_v18 = vld [vmem:[#allocation2 + $0xda] sm:$0xff] }
 0x311   : > { %v1895_v26 = vmax.f32 %v1863_v61, 0.0 }
 0x312   : > { %v1434_v41 = vpop.f32.mrf.mxu2  ;;  %v1628_v0 = vpop.f32.mrf.mxu3 }
 0x313   : > { %1967 = vst [vmem:[#allocation2 + $0x151] sm:$0xff] %v1895_v26  ;;  %v1476_v42 = vadd.f32 %v1434_v41, %v1281_v12  ;;  %v1825_v4 = vpop.f32.mrf.mxu0  ;;  %2170 = vmatmul.f32.gmra.mxu1 %v1895_v26  ;;  %v2505_v26 = vld [vmem:[#allocation2 + $0xc8] sm:$0xff]  ;;  %v2311_v41 = vld [vmem:[#allocation2 + $0xb2] sm:$0xff] }
 0x315   : > { %v1670_v37 = vadd.f32 %v1628_v0, %v1476_v42  ;;  %v2924_v42 = vld [vmem:[#allocation3 + $0x2e8] sm:$0xff] }
 0x316   : > { %2591 = vmatmul.f32.gmra.mxu0 %v2502_v31  ;;  %2929 = vmatpush.msra.mxu2 %v2924_v42  ;;  %v2922_v42 = vld [vmem:[#allocation3 + $0x2d8] sm:$0xff] }
 0x317   : > { %v1864_v8 = vadd.f32 %v1822_v43, %v1670_v37  ;;  %2235 = vmatmul.f32.gmra.mxu2 %v2500_v14  ;;  %2397 = vmatmul.f32.gmra.mxu3 %v2308_v60 }
 0x318   : > { %v5707_v32 = vpop.f32.mrf.mxu1 }
 0x319   : > { %v1896_v19 = vmax.f32 %v1864_v8, 0.0 }
 0x31a   : > { %v1437_v11 = vpop.f32.mrf.mxu2  ;;  %v1631_v34 = vpop.f32.mrf.mxu3 }
 0x31b   : > { %1968 = vst [vmem:[#allocation2 + $0x159] sm:$0xff] %v1896_v19  ;;  %v1477_v56 = vadd.f32 %v1437_v11, %v1282_v6  ;;  %v1828_v10 = vpop.f32.mrf.mxu0  ;;  %2173 = vmatmul.f32.gmra.mxu1 %v1896_v19  ;;  %v2506_v19 = vld [vmem:[#allocation2 + $0xd8] sm:$0xff]  ;;  %v2312_v11 = vld [vmem:[#allocation2 + $0xc2] sm:$0xff] }
 0x31d   : > { %v1671_v57 = vadd.f32 %v1631_v34, %v1477_v56  ;;  %v3313_v56 = vld [vmem:[#allocation3 + $0x3e8] sm:$0xff] }
 0x31e   : > { %2594 = vmatmul.f32.gmra.mxu0 %v2503_v7 }
 0x31f   : > { %v1865_v13 = vadd.f32 %v1825_v4, %v1671_v57  ;;  %2238 = vmatmul.f32.gmra.mxu2 %v2501_v9  ;;  %2400 = vmatmul.f32.gmra.mxu3 %v2309_v15  ;;  %v3119_v4 = vld [vmem:[#allocation3 + $0x368] sm:$0xff]  ;;  %v2685_v57 = vld [vmem:[#allocation2 + $0x21] sm:$0xff] }
 0x320   : > { %v5711_v25 = vpop.f32.mrf.mxu1  ;;  %3124 = vmatpush.msra.mxu3 %v3119_v4  ;;  %3318 = vmatpush.msra.mxu0 %v3313_v56  ;;  %v3117_v4 = vld [vmem:[#allocation3 + $0x358] sm:$0xff] }
 0x321   : > { %v1897_v16 = vmax.f32 %v1865_v13, 0.0  ;;  %v2507_v13 = vld [vmem:[#allocation2 + $0xe0] sm:$0xff] }
 0x322   : > { %v1440_v44 = vpop.f32.mrf.mxu2  ;;  %v1634_v14 = vpop.f32.mrf.mxu3 }
 0x323   : > { %1969 = vst [vmem:[#allocation2 + $0x169] sm:$0xff] %v1897_v16  ;;  %v1478_v21 = vadd.f32 %v1440_v44, %v1283_v62  ;;  %v1831_v38 = vpop.f32.mrf.mxu0  ;;  %2176 = vmatmul.f32.gmra.mxu1 %v1897_v16  ;;  %v2923_v62 = vld [vmem:[#allocation3 + $0x2e0] sm:$0xff] }
 0x324   : > { %v3118_v16 = vld [vmem:[#allocation3 + $0x360] sm:$0xff]  ;;  %2930 = vmatpush.msra.mxu2 %v2923_v62 }
 0x325   : > { %v1672_v30 = vadd.f32 %v1634_v14, %v1478_v21  ;;  %3125 = vmatpush.msra.mxu3 %v3118_v16 }
 0x326   : > { %2597 = vmatmul.f32.gmra.mxu0 %v2504_v27  ;;  %2931 = vmatpush.msra.mxu2 %v2922_v42  ;;  %v3504_v42 = vld [vmem:[#allocation3 + $0x450] sm:$0xff] }
 0x327   : > { %v1866_v28 = vadd.f32 %v1828_v10, %v1672_v30  ;;  %2241 = vmatmul.f32.gmra.mxu2 %v2502_v31  ;;  %2403 = vmatmul.f32.gmra.mxu3 %v2310_v40  ;;  %v2684_v31 = vld [vmem:[#allocation2 + $0x19] sm:$0xff] }
 0x328   : > { %v5715_v43 = vpop.f32.mrf.mxu1  ;;  %3126 = vmatpush.msra.mxu3 %v3117_v4  ;;  %2932 = vmatpush.msra.mxu2 %v2921_v55  ;;  %v2319_v4 = vld [vmem:[#allocation2 + $0x112] sm:$0xff]  ;;  %v5786_v55 = vld [vmem:[#allocation2 + $0x81] sm:$0xff] }
 0x329   : > { %v1898_v24 = vmax.f32 %v1866_v28, 0.0  ;;  %v2508_v28 = vld [vmem:[#allocation2 + $0xf0] sm:$0xff] }
 0x32a   : > { %v1443_v23 = vpop.f32.mrf.mxu2  ;;  %v1637_v9 = vpop.f32.mrf.mxu3 }
 0x32b   : > { %1970 = vst [vmem:[#allocation2 + $0x171] sm:$0xff] %v1898_v24  ;;  %v1479_v59 = vadd.f32 %v1443_v23, %v1284_v51  ;;  %v1834_v61 = vpop.f32.mrf.mxu0  ;;  %2179 = vmatmul.f32.gmra.mxu1 %v1898_v24  ;;  %v3312_v51 = vld [vmem:[#allocation3 + $0x3e0] sm:$0xff] }
 0x32c   : > { %3319 = vmatpush.msra.mxu0 %v3312_v51  ;;  %v3310_v51 = vld [vmem:[#allocation3 + $0x3d0] sm:$0xff] }
 0x32d   : > { %v1673_v12 = vadd.f32 %v1637_v9, %v1479_v59 }
 0x32e   : > { %2600 = vmatmul.f32.gmra.mxu0 %v2505_v26 }
 0x32f   : > { %v1867_v0 = vadd.f32 %v1831_v38, %v1673_v12  ;;  %2244 = vmatmul.f32.gmra.mxu2 %v2503_v7  ;;  %2406 = vmatmul.f32.gmra.mxu3 %v2311_v41  ;;  %v5730_v38 = vld [vmem:[#allocation2 + $0x31] sm:$0xff] }
 0x330   : > { %v5719_v33 = vpop.f32.mrf.mxu1  ;;  %v3506_v41 = vld [vmem:[#allocation3 + $0x460] sm:$0xff] }
 0x331   : > { %v1899_v1 = vmax.f32 %v1867_v0, 0.0  ;;  %v2315_v0 = vld [vmem:[#allocation2 + $0xe2] sm:$0xff]  ;;  %3513 = vmatpush.msra.mxu1 %v3506_v41 }
 0x332   : > { %v1446_v5 = vpop.f32.mrf.mxu2  ;;  %v1640_v37 = vpop.f32.mrf.mxu3 }
 0x333   : > { %1971 = vst [vmem:[#allocation2 + $0x181] sm:$0xff] %v1899_v1  ;;  %v1480_v60 = vadd.f32 %v1446_v5, %v1285_v50  ;;  %v2556_v8 = vpop.f32.mrf.mxu0  ;;  %2749 = vmatmul.f32.vlgmr.msrb.gmra.mxu1 %v2684_v31 }
 0x335   : > { %v1674_v6 = vadd.f32 %v1640_v37, %v1480_v60  ;;  %v5746_v37 = vld [vmem:[#allocation2 + $0x49] sm:$0xff] }
 0x336   : > { %2603 = vmatmul.f32.gmra.mxu0 %v2506_v19 }
 0x337   : > { %v1868_v34 = vadd.f32 %v1834_v61, %v1674_v6  ;;  %2247 = vmatmul.f32.gmra.mxu2 %v2504_v27  ;;  %2409 = vmatmul.f32.gmra.mxu3 %v2312_v11  ;;  %v5738_v61 = vld [vmem:[#allocation2 + $0x39] sm:$0xff]  ;;  %v2510_v6 = vld [vmem:[#allocation2 + $0x108] sm:$0xff] }
 0x338   : > { %v5723_v10 = vpop.f32.mrf.mxu1  ;;  %v3311_v11 = vld [vmem:[#allocation3 + $0x3d8] sm:$0xff] }
 0x339   : > { %v1900_v54 = vmax.f32 %v1868_v34, 0.0  ;;  %3320 = vmatpush.msra.mxu0 %v3311_v11 }
 0x33a   : > { %v2200_v46 = vpop.f32.mrf.mxu2  ;;  %v2362_v3 = vpop.f32.mrf.mxu3 }
 0x33b   : > { %1972 = vst [vmem:[#allocation2 + $0x189] sm:$0xff] %v1900_v54  ;;  %v2201_v7 = vadd.f32 %v2200_v46, %v5653_v47  ;;  %v2559_v36 = vpop.f32.mrf.mxu0  ;;  %2752 = vmatmul.f32.gmra.mxu1 %v2685_v57  ;;  %3321 = vmatpush.msra.mxu0 %v3310_v51 }
 0x33d   : > { %v2458_v15 = vadd.f32 %v2362_v3, %v2201_v7  ;;  %v5754_v3 = vld [vmem:[#allocation2 + $0x51] sm:$0xff] }
 0x33e   : > { %2606 = vmatmul.f32.gmra.mxu0 %v2507_v13 }
 0x33f   : > { %2250 = vmatmul.f32.gmra.mxu2 %v2505_v26  ;;  %2412 = vmatmul.f32.gmra.mxu3 %v2313_v52  ;;  %v5726_v44 = vadd.f32 %v2556_v8, %v2458_v15  ;;  %v3505_v15 = vld [vmem:[#allocation3 + $0x458] sm:$0xff]  ;;  %v3116_v52 = vld [vmem:[#allocation3 + $0x350] sm:$0xff] }
 0x340   : > { %v5728_v14 = vpop.f32.mrf.mxu1  ;;  %3514 = vmatpush.msra.mxu1 %v3505_v15  ;;  %3127 = vmatpush.msra.mxu3 %v3116_v52 }
 0x342   : > { %v2203_v21 = vpop.f32.mrf.mxu2  ;;  %v2365_v47 = vpop.f32.mrf.mxu3  ;;  %3515 = vmatpush.msra.mxu1 %v3504_v42  ;;  %v3308_v42 = vld [vmem:[#allocation3 + $0x3c0] sm:$0xff] }
 0x343   : > { %v2204_v30 = vadd.f32 %v2203_v21, %v5657_v53  ;;  %v2562_v27 = vpop.f32.mrf.mxu0  ;;  %2755 = vmatmul.f32.gmra.mxu1 %v5730_v38 }
 0x345   : > { %v2459_v40 = vadd.f32 %v2365_v47, %v2204_v30  ;;  %v5762_v47 = vld [vmem:[#allocation2 + $0x61] sm:$0xff] }
 0x346   : > { %2609 = vmatmul.f32.gmra.mxu0 %v2508_v28 }
 0x347   : > { %2253 = vmatmul.f32.gmra.mxu2 %v2506_v19  ;;  %2415 = vmatmul.f32.gmra.mxu3 %v2314_v18  ;;  %v5734_v24 = vadd.f32 %v2559_v36, %v2459_v40  ;;  %v2316_v19 = vld [vmem:[#allocation2 + $0xf2] sm:$0xff]  ;;  %v2318_v18 = vld [vmem:[#allocation2 + $0x10a] sm:$0xff] }
 0x348   : > { %v5736_v23 = vpop.f32.mrf.mxu1  ;;  %v2511_v36 = vld [vmem:[#allocation2 + $0x110] sm:$0xff] }
 0x34a   : > { %v2206_v9 = vpop.f32.mrf.mxu2  ;;  %v2368_v59 = vpop.f32.mrf.mxu3 }
 0x34b   : > { %v2207_v53 = vadd.f32 %v2206_v9, %v5663_v29  ;;  %v2565_v12 = vpop.f32.mrf.mxu0  ;;  %2758 = vmatmul.f32.gmra.mxu1 %v5738_v61 }
 0x34d   : > { %v2460_v26 = vadd.f32 %v2368_v59, %v2207_v53 }
 0x34e   : > { %2612 = vmatmul.f32.gmra.mxu0 %v2509_v63 }
 0x34f   : > { %2256 = vmatmul.f32.gmra.mxu2 %v2507_v13  ;;  %2418 = vmatmul.f32.gmra.mxu3 %v2315_v0  ;;  %v5742_v50 = vadd.f32 %v2562_v27, %v2460_v26  ;;  %v2317_v13 = vld [vmem:[#allocation2 + $0xfa] sm:$0xff]  ;;  %v5770_v26 = vld [vmem:[#allocation2 + $0x69] sm:$0xff] }
 0x350   : > { %v5744_v1 = vpop.f32.mrf.mxu1  ;;  %v2513_v0 = vld [vmem:[#allocation2 + $0x128] sm:$0xff] }
 0x352   : > { %v2209_v29 = vpop.f32.mrf.mxu2  ;;  %v2371_v5 = vpop.f32.mrf.mxu3 }
 0x353   : > { %v2210_v31 = vadd.f32 %v2209_v29, %v5667_v45  ;;  %v2568_v60 = vpop.f32.mrf.mxu0  ;;  %2761 = vmatmul.f32.gmra.mxu1 %v5746_v37  ;;  %v2920_v29 = vld [vmem:[#allocation3 + $0x2c8] sm:$0xff] }
 0x354   : > { %2933 = vmatpush.msra.mxu2 %v2920_v29  ;;  %v2918_v29 = vld [vmem:[#allocation3 + $0x2b8] sm:$0xff] }
 0x355   : > { %v2461_v8 = vadd.f32 %v2371_v5, %v2210_v31  ;;  %v3115_v5 = vld [vmem:[#allocation3 + $0x348] sm:$0xff] }
 0x356   : > { %2615 = vmatmul.f32.gmra.mxu0 %v2510_v6  ;;  %3128 = vmatpush.msra.mxu3 %v3115_v5  ;;  %v3113_v5 = vld [vmem:[#allocation3 + $0x338] sm:$0xff] }
 0x357   : > { %2259 = vmatmul.f32.gmra.mxu2 %v2508_v28  ;;  %2421 = vmatmul.f32.gmra.mxu3 %v2316_v19  ;;  %v5750_v34 = vadd.f32 %v2565_v12, %v2461_v8  ;;  %v2512_v28 = vld [vmem:[#allocation2 + $0x120] sm:$0xff] }
 0x358   : > { %v5752_v56 = vpop.f32.mrf.mxu1 }
 0x35a   : > { %v2212_v54 = vpop.f32.mrf.mxu2  ;;  %v2374_v46 = vpop.f32.mrf.mxu3 }
 0x35b   : > { %v2213_v45 = vadd.f32 %v2212_v54, %v5671_v2  ;;  %v2571_v57 = vpop.f32.mrf.mxu0  ;;  %2764 = vmatmul.f32.gmra.mxu1 %v5754_v3 }
 0x35d   : > { %v2462_v7 = vadd.f32 %v2374_v46, %v2213_v45  ;;  %v2514_v46 = vld [vmem:[#allocation2 + $0x138] sm:$0xff]  ;;  %v2320_v45 = vld [vmem:[#allocation2 + $0x122] sm:$0xff] }
 0x35e   : > { %2618 = vmatmul.f32.gmra.mxu0 %v2511_v36 }
 0x35f   : > { %2262 = vmatmul.f32.gmra.mxu2 %v2509_v63  ;;  %2424 = vmatmul.f32.gmra.mxu3 %v2317_v13  ;;  %v5758_v62 = vadd.f32 %v2568_v60, %v2462_v7 }
 0x360   : > { %v5760_v16 = vpop.f32.mrf.mxu1 }
 0x362   : > { %v2215_v2 = vpop.f32.mrf.mxu2  ;;  %v2377_v21 = vpop.f32.mrf.mxu3 }
 0x363   : > { %v2216_v30 = vadd.f32 %v2215_v2, %v5675_v39  ;;  %v2574_v27 = vpop.f32.mrf.mxu0  ;;  %2767 = vmatmul.f32.gmra.mxu1 %v5762_v47 }
 0x365   : > { %v2463_v40 = vadd.f32 %v2377_v21, %v2216_v30  ;;  %v2515_v21 = vld [vmem:[#allocation2 + $0x140] sm:$0xff]  ;;  %v3503_v30 = vld [vmem:[#allocation3 + $0x448] sm:$0xff] }
 0x366   : > { %2621 = vmatmul.f32.gmra.mxu0 %v2512_v28  ;;  %3516 = vmatpush.msra.mxu1 %v3503_v30  ;;  %v2916_v30 = vld [vmem:[#allocation3 + $0x2a8] sm:$0xff] }
 0x367   : > { %2265 = vmatmul.f32.gmra.mxu2 %v2510_v6  ;;  %2427 = vmatmul.f32.gmra.mxu3 %v2318_v18  ;;  %v5766_v9 = vadd.f32 %v2571_v57, %v2463_v40  ;;  %v5778_v6 = vld [vmem:[#allocation2 + $0x79] sm:$0xff]  ;;  %v2919_v40 = vld [vmem:[#allocation3 + $0x2c0] sm:$0xff] }
 0x368   : > { %v5768_v59 = vpop.f32.mrf.mxu1  ;;  %v3309_v57 = vld [vmem:[#allocation3 + $0x3c8] sm:$0xff]  ;;  %2934 = vmatpush.msra.mxu2 %v2919_v40  ;;  %v2323_v40 = vld [vmem:[#allocation2 + $0x142] sm:$0xff] }
 0x369   : > { %3322 = vmatpush.msra.mxu0 %v3309_v57 }
 0x36a   : > { %v2218_v53 = vpop.f32.mrf.mxu2  ;;  %v2380_v12 = vpop.f32.mrf.mxu3  ;;  %2935 = vmatpush.msra.mxu2 %v2918_v29 }
 0x36b   : > { %v2219_v39 = vadd.f32 %v2218_v53, %v5679_v22  ;;  %v2577_v63 = vpop.f32.mrf.mxu0  ;;  %2770 = vmatmul.f32.gmra.mxu1 %v5770_v26  ;;  %3323 = vmatpush.msra.mxu0 %v3308_v42  ;;  %v2914_v42 = vld [vmem:[#allocation3 + $0x298] sm:$0xff] }
 0x36d   : > { %v2464_v41 = vadd.f32 %v2380_v12, %v2219_v39  ;;  %v5794_v12 = vld [vmem:[#allocation2 + $0x91] sm:$0xff] }
 0x36e   : > { %2624 = vmatmul.f32.gmra.mxu0 %v2513_v0 }
 0x36f   : > { %2268 = vmatmul.f32.gmra.mxu2 %v2511_v36  ;;  %2430 = vmatmul.f32.gmra.mxu3 %v2319_v4  ;;  %v5774_v31 = vadd.f32 %v2574_v27, %v2464_v41  ;;  %v2321_v27 = vld [vmem:[#allocation2 + $0x12a] sm:$0xff]  ;;  %v2322_v4 = vld [vmem:[#allocation2 + $0x13a] sm:$0xff] }
 0x370   : > { %v5776_v60 = vpop.f32.mrf.mxu1 }
 0x372   : > { %v2221_v22 = vpop.f32.mrf.mxu2  ;;  %v2383_v8 = vpop.f32.mrf.mxu3 }
 0x373   : > { %v2222_v19 = vadd.f32 %v2221_v22, %v5683_v17  ;;  %v2580_v11 = vpop.f32.mrf.mxu0  ;;  %2773 = vmatmul.f32.gmra.mxu1 %v5778_v6  ;;  %v3307_v22 = vld [vmem:[#allocation3 + $0x3b8] sm:$0xff] }
 0x374   : > { %3324 = vmatpush.msra.mxu0 %v3307_v22  ;;  %v5816_v22 = vld [vmem:[#allocation2 + $0xa9] sm:$0xff] }
 0x375   : > { %v2465_v54 = vadd.f32 %v2383_v8, %v2222_v19 }
 0x376   : > { %2627 = vmatmul.f32.gmra.mxu0 %v2514_v46 }
 0x377   : > { %2271 = vmatmul.f32.gmra.mxu2 %v2512_v28  ;;  %2433 = vmatmul.f32.gmra.mxu3 %v2320_v45  ;;  %v5782_v7 = vadd.f32 %v2577_v63, %v2465_v54  ;;  %v3114_v28 = vld [vmem:[#allocation3 + $0x340] sm:$0xff]  ;;  %v5805_v54 = vld [vmem:[#allocation2 + $0x99] sm:$0xff] }
 0x378   : > { %v5784_v36 = vpop.f32.mrf.mxu1  ;;  %3129 = vmatpush.msra.mxu3 %v3114_v28  ;;  %v2915_v28 = vld [vmem:[#allocation3 + $0x2a0] sm:$0xff] }
 0x37a   : > { %v2224_v15 = vpop.f32.mrf.mxu2  ;;  %v2386_v13 = vpop.f32.mrf.mxu3  ;;  %3130 = vmatpush.msra.mxu3 %v3113_v5 }
 0x37b   : > { %v2225_v17 = vadd.f32 %v2224_v15, %v5687_v48  ;;  %v2583_v52 = vpop.f32.mrf.mxu0  ;;  %2776 = vmatmul.f32.gmra.mxu1 %v5786_v55  ;;  %v3112_v15 = vld [vmem:[#allocation3 + $0x330] sm:$0xff] }
 0x37c   : > { %3131 = vmatpush.msra.mxu3 %v3112_v15  ;;  %v3108_v15 = vld [vmem:[#allocation3 + $0x310] sm:$0xff] }
 0x37d   : > { %v2466_v2 = vadd.f32 %v2386_v13, %v2225_v17  ;;  %v3306_v13 = vld [vmem:[#allocation3 + $0x3b0] sm:$0xff]  ;;  %v5809_v17 = vld [vmem:[#allocation2 + $0x158] sm:$0xff] }
 0x37e   : > { %2630 = vmatmul.f32.gmra.mxu0 %v2515_v21 }
 0x37f   : > { %2274 = vmatmul.f32.gmra.mxu2 %v2513_v0  ;;  %2436 = vmatmul.f32.gmra.mxu3 %v2321_v27  ;;  %v5790_v18 = vadd.f32 %v2580_v11, %v2466_v2  ;;  %v5798_v0 = vld [vmem:[#allocation2 + $0x150] sm:$0xff]  ;;  %v3111_v27 = vld [vmem:[#allocation3 + $0x328] sm:$0xff] }
 0x380   : > { %v5792_v51 = vpop.f32.mrf.mxu1  ;;  %3325 = vmatpush.msra.mxu0 %v3306_v13  ;;  %v3502_v2 = vld [vmem:[#allocation3 + $0x440] sm:$0xff]  ;;  %3132 = vmatpush.msra.mxu3 %v3111_v27  ;;  %v3302_v13 = vld [vmem:[#allocation3 + $0x390] sm:$0xff] }
 0x381   : > { %3517 = vmatpush.msra.mxu1 %v3502_v2  ;;  %v2912_v2 = vld [vmem:[#allocation3 + $0x288] sm:$0xff] }
 0x382   : > { %v2227_v48 = vpop.f32.mrf.mxu2  ;;  %v2389_v53 = vpop.f32.mrf.mxu3 }
 0x383   : > { %v2228_v39 = vadd.f32 %v2227_v48, %v5691_v49  ;;  %v2586_v63 = vpop.f32.mrf.mxu0  ;;  %2779 = vmatmul.f32.gmra.mxu1 %v5794_v12  ;;  %v3110_v48 = vld [vmem:[#allocation3 + $0x320] sm:$0xff] }
 0x384   : > { %3133 = vmatpush.msra.mxu3 %v3110_v48  ;;  %v3300_v48 = vld [vmem:[#allocation3 + $0x380] sm:$0xff] }
 0x385   : > { %v2467_v41 = vadd.f32 %v2389_v53, %v2228_v39 }
 0x386   : > { %2633 = vmatmul.f32.gmra.mxu0 %v5798_v0 }
 0x387   : > { %2277 = vmatmul.f32.gmra.mxu2 %v2514_v46  ;;  %2439 = vmatmul.f32.gmra.mxu3 %v2322_v4  ;;  %v5801_v8 = vadd.f32 %v2583_v52, %v2467_v41  ;;  %v2917_v46 = vld [vmem:[#allocation3 + $0x2b0] sm:$0xff]  ;;  %v3304_v41 = vld [vmem:[#allocation3 + $0x3a0] sm:$0xff]  ;;  %v3109_v4 = vld [vmem:[#allocation3 + $0x318] sm:$0xff] }
 0x388   : > { %v5803_v19 = vpop.f32.mrf.mxu1  ;;  %2936 = vmatpush.msra.mxu2 %v2917_v46  ;;  %3134 = vmatpush.msra.mxu3 %v3109_v4  ;;  %v2518_v46 = vld [vmem:[#allocation2 + $0x168] sm:$0xff]  ;;  %v5825_v4 = vld [vmem:[#allocation2 + $0xb1] sm:$0xff] }
 0x38a   : > { %v2230_v49 = vpop.f32.mrf.mxu2  ;;  %v2392_v11 = vpop.f32.mrf.mxu3  ;;  %2937 = vmatpush.msra.mxu2 %v2916_v30  ;;  %v3301_v30 = vld [vmem:[#allocation3 + $0x388] sm:$0xff]  ;;  %3135 = vmatpush.msra.mxu3 %v3108_v15 }
 0x38b   : > { %v2231_v45 = vadd.f32 %v2230_v49, %v5695_v58  ;;  %v2589_v57 = vpop.f32.mrf.mxu0  ;;  %2782 = vmatmul.f32.gmra.mxu1 %v5805_v54  ;;  %v3305_v58 = vld [vmem:[#allocation3 + $0x3a8] sm:$0xff] }
 0x38c   : > { %3326 = vmatpush.msra.mxu0 %v3305_v58  ;;  %2938 = vmatpush.msra.mxu2 %v2915_v28  ;;  %v2911_v58 = vld [vmem:[#allocation3 + $0x280] sm:$0xff] }
 0x38d   : > { %v2468_v52 = vadd.f32 %v2392_v11, %v2231_v45  ;;  %v3106_v28 = vld [vmem:[#allocation3 + $0x300] sm:$0xff] }
 0x38e   : > { %2636 = vmatmul.f32.gmra.mxu0 %v5809_v17  ;;  %2939 = vmatpush.msra.mxu2 %v2914_v42 }
 0x38f   : > { %2280 = vmatmul.f32.gmra.mxu2 %v2515_v21  ;;  %2442 = vmatmul.f32.gmra.mxu3 %v2323_v40  ;;  %v5812_v53 = vadd.f32 %v2586_v63, %v2468_v52  ;;  %v3303_v21 = vld [vmem:[#allocation3 + $0x398] sm:$0xff]  ;;  %v2913_v63 = vld [vmem:[#allocation3 + $0x290] sm:$0xff]  ;;  %v2324_v52 = vld [vmem:[#allocation2 + $0x152] sm:$0xff] }
 0x390   : > { %v5814_v39 = vpop.f32.mrf.mxu1  ;;  %3327 = vmatpush.msra.mxu0 %v3304_v41  ;;  %2940 = vmatpush.msra.mxu2 %v2913_v63 }
 0x391   : > { %6465 = vst [vmem:[#allocation9_spill] sm:$0xff] %v5812_v53  ;;  %v5968_v53 = vld [vmem:[#allocation2 + $0x92] sm:$0xff] }
 0x392   : > { %v2233_v29 = vpop.f32.mrf.mxu2  ;;  %v2395_v5 = vpop.f32.mrf.mxu3  ;;  %3328 = vmatpush.msra.mxu0 %v3303_v21  ;;  %2941 = vmatpush.msra.mxu2 %v2912_v2  ;;  %v3501_v21 = vld [vmem:[#allocation3 + $0x438] sm:$0xff] }
 0x393   : > { %v2234_v49 = vadd.f32 %v2233_v29, %v5699_v20  ;;  %v2592_v11 = vpop.f32.mrf.mxu0  ;;  %2785 = vmatmul.f32.gmra.mxu1 %v5816_v22  ;;  %v3107_v20 = vld [vmem:[#allocation3 + $0x308] sm:$0xff] }
 0x394   : > { %3329 = vmatpush.msra.mxu0 %v3302_v13  ;;  %3136 = vmatpush.msra.mxu3 %v3107_v20  ;;  %v5834_v13 = vld [vmem:[#allocation2 + $0xc1] sm:$0xff] }
 0x395   : > { %v2469_v45 = vadd.f32 %v2395_v5, %v2234_v49  ;;  %2942 = vmatpush.msra.mxu2 %v2911_v58  ;;  %v2519_v5 = vld [vmem:[#allocation2 + $0x170] sm:$0xff]  ;;  %v2325_v49 = vld [vmem:[#allocation2 + $0x15a] sm:$0xff]  ;;  %3518 = vmatpush.msra.mxu1 %v3501_v21 }
 0x396   : > { %2639 = vmatmul.f32.gmra.mxu0 %v2518_v46  ;;  %3137 = vmatpush.msra.mxu3 %v3106_v28  ;;  %v2326_v58 = vld [vmem:[#allocation2 + $0x16a] sm:$0xff]  ;;  %v3500_v21 = vld [vmem:[#allocation3 + $0x430] sm:$0xff] }
 0x397   : > { %2283 = vmatmul.f32.gmra.mxu2 %v5798_v0  ;;  %2445 = vmatmul.f32.gmra.mxu3 %v2324_v52  ;;  %v5821_v27 = vadd.f32 %v2589_v57, %v2469_v45 }
 0x398   : > { %v5823_v40 = vpop.f32.mrf.mxu1  ;;  %3330 = vmatpush.msra.mxu0 %v3301_v30  ;;  %v2520_v30 = vld [vmem:[#allocation2 + $0x180] sm:$0xff]  ;;  %3519 = vmatpush.msra.mxu1 %v3500_v21 }
 0x399   : > { %6466 = vst [vmem:[#allocation10_spill] sm:$0xff] %v5821_v27  ;;  %v5956_v27 = vld [vmem:[#allocation2 + $0x82] sm:$0xff] }
 0x39a   : > { %v2236_v41 = vpop.f32.mrf.mxu2  ;;  %v2398_v42 = vpop.f32.mrf.mxu3  ;;  %3331 = vmatpush.msra.mxu0 %v3300_v48 }
 0x39b   : > { %v2237_v0 = vadd.f32 %v2236_v41, %v5703_v35  ;;  %v2595_v29 = vpop.f32.mrf.mxu0  ;;  %2788 = vmatmul.f32.gmra.mxu1 %v5825_v4  ;;  %v5842_v41 = vld [vmem:[#allocation2 + $0xc9] sm:$0xff] }
 0x39d   : > { %v2470_v57 = vadd.f32 %v2398_v42, %v2237_v0 }
 0x39e   : > { %2642 = vmatmul.f32.gmra.mxu0 %v2519_v5 }
 0x39f   : > { %2286 = vmatmul.f32.gmra.mxu2 %v5809_v17  ;;  %2448 = vmatmul.f32.gmra.mxu3 %v2325_v49  ;;  %v5830_v63 = vadd.f32 %v2592_v11, %v2470_v57  ;;  %v2521_v57 = vld [vmem:[#allocation2 + $0x188] sm:$0xff]  ;;  %v2327_v49 = vld [vmem:[#allocation2 + $0x172] sm:$0xff] }
 0x3a0   : > { %v5832_v45 = vpop.f32.mrf.mxu1 }
 0x3a1   : > { %6467 = vst [vmem:[#allocation11_spill] sm:$0xff] %v5830_v63  ;;  %v5944_v63 = vld [vmem:[#allocation2 + $0x7a] sm:$0xff] }
 0x3a2   : > { %v2239_v35 = vpop.f32.mrf.mxu2  ;;  %v2401_v15 = vpop.f32.mrf.mxu3 }
 0x3a3   : > { %v2240_v52 = vadd.f32 %v2239_v35, %v5707_v32  ;;  %v2598_v2 = vpop.f32.mrf.mxu0  ;;  %2791 = vmatmul.f32.gmra.mxu1 %v5834_v13 }
 0x3a5   : > { %v2471_v20 = vadd.f32 %v2401_v15, %v2240_v52  ;;  %v5850_v52 = vld [vmem:[#allocation2 + $0xd9] sm:$0xff] }
 0x3a6   : > { %2645 = vmatmul.f32.gmra.mxu0 %v2520_v30 }
 0x3a7   : > { %2289 = vmatmul.f32.gmra.mxu2 %v2518_v46  ;;  %2451 = vmatmul.f32.gmra.mxu3 %v2326_v58  ;;  %v5838_v17 = vadd.f32 %v2595_v29, %v2471_v20  ;;  %v2878_v58 = vld [vmem:[#allocation2 + $0x1a] sm:$0xff] }
 0x3a8   : > { %v5840_v11 = vpop.f32.mrf.mxu1 }
 0x3a9   : > { %6468 = vst [vmem:[#allocation12_spill] sm:$0xff] %v5838_v17  ;;  %v5932_v17 = vld [vmem:[#allocation2 + $0x6a] sm:$0xff] }
 0x3aa   : > { %v2242_v28 = vpop.f32.mrf.mxu2  ;;  %v2404_v48 = vpop.f32.mrf.mxu3 }
 0x3ab   : > { %v2243_v42 = vadd.f32 %v2242_v28, %v5711_v25  ;;  %v2601_v32 = vpop.f32.mrf.mxu0  ;;  %2794 = vmatmul.f32.gmra.mxu1 %v5842_v41  ;;  %v3073_v28 = vld [vmem:[#allocation2 + $0x30] sm:$0xff] }
 0x3ad   : > { %v2472_v0 = vadd.f32 %v2404_v48, %v2243_v42 }
 0x3ae   : > { %2648 = vmatmul.f32.gmra.mxu0 %v2521_v57 }
 0x3af   : > { %2292 = vmatmul.f32.gmra.mxu2 %v2519_v5  ;;  %2454 = vmatmul.f32.gmra.mxu3 %v2327_v49  ;;  %v5846_v46 = vadd.f32 %v2598_v2, %v2472_v0  ;;  %v5859_v0 = vld [vmem:[#allocation2 + $0xe1] sm:$0xff]  ;;  %v3499_v49 = vld [vmem:[#allocation3 + $0x428] sm:$0xff] }
 0x3b0   : > { %v5848_v29 = vpop.f32.mrf.mxu1  ;;  %3520 = vmatpush.msra.mxu1 %v3499_v49 }
 0x3b1   : > { %6469 = vst [vmem:[#allocation13_spill] sm:$0xff] %v5846_v46  ;;  %v5920_v46 = vld [vmem:[#allocation2 + $0x62] sm:$0xff] }
 0x3b2   : > { %v2245_v35 = vpop.f32.mrf.mxu2  ;;  %v2407_v15 = vpop.f32.mrf.mxu3 }
 0x3b3   : > { %v2246_v25 = vadd.f32 %v2245_v35, %v5715_v43  ;;  %v2604_v20 = vpop.f32.mrf.mxu0  ;;  %2797 = vmatmul.f32.gmra.mxu1 %v5850_v52  ;;  %v2879_v35 = vld [vmem:[#allocation2 + $0x22] sm:$0xff] }
 0x3b5   : > { %v2473_v30 = vadd.f32 %v2407_v15, %v2246_v25  ;;  %v3074_v15 = vld [vmem:[#allocation2 + $0x38] sm:$0xff] }
 0x3b6   : > { %3332 = vmatmul.f32.vlgmr.msra.gmra.mxu0 %v5730_v38 }
 0x3b7   : > { %2943 = vmatmul.f32.vlgmr.msra.gmra.mxu2 %v2878_v58  ;;  %3138 = vmatmul.f32.vlgmr.msra.gmra.mxu3 %v3073_v28  ;;  %v5855_v5 = vadd.f32 %v2601_v32, %v2473_v30  ;;  %v5868_v58 = vld [vmem:[#allocation2 + $0xf1] sm:$0xff] }
 0x3b8   : > { %v5857_v2 = vpop.f32.mrf.mxu1 }
 0x3b9   : > { %6470 = vst [vmem:[#allocation14_spill] sm:$0xff] %v5855_v5  ;;  %v5908_v5 = vld [vmem:[#allocation2 + $0x52] sm:$0xff] }
 0x3ba   : > { %v2248_v48 = vpop.f32.mrf.mxu2  ;;  %v2410_v42 = vpop.f32.mrf.mxu3 }
 0x3bb   : > { %v2249_v43 = vadd.f32 %v2248_v48, %v5719_v33  ;;  %v2607_v57 = vpop.f32.mrf.mxu0  ;;  %2800 = vmatmul.f32.gmra.mxu1 %v5859_v0 }
 0x3bd   : > { %v2474_v21 = vadd.f32 %v2410_v42, %v2249_v43  ;;  %v5872_v42 = vld [vmem:[#allocation2 + $0x32] sm:$0xff] }
 0x3be   : > { %3335 = vmatmul.f32.gmra.mxu0 %v5738_v61  ;;  %v3075_v61 = vld [vmem:[#allocation2 + $0x48] sm:$0xff] }
 0x3bf   : > { %2946 = vmatmul.f32.gmra.mxu2 %v2879_v35  ;;  %3141 = vmatmul.f32.gmra.mxu3 %v3074_v15  ;;  %v5864_v38 = vadd.f32 %v2604_v20, %v2474_v21  ;;  %v5880_v35 = vld [vmem:[#allocation2 + $0xf9] sm:$0xff] }
 0x3c0   : > { %v5866_v32 = vpop.f32.mrf.mxu1 }
 0x3c1   : > { %6471 = vst [vmem:[#allocation15_spill] sm:$0xff] %v5864_v38  ;;  %v5896_v38 = vld [vmem:[#allocation2 + $0x4a] sm:$0xff] }
 0x3c2   : > { %v2251_v25 = vpop.f32.mrf.mxu2  ;;  %v2413_v30 = vpop.f32.mrf.mxu3 }
 0x3c3   : > { %v2252_v33 = vadd.f32 %v2251_v25, %v5723_v10  ;;  %v2610_v28 = vpop.f32.mrf.mxu0  ;;  %2803 = vmatmul.f32.gmra.mxu1 %v5868_v58 }
 0x3c5   : > { %v2475_v48 = vadd.f32 %v2413_v30, %v2252_v33  ;;  %v3498_v30 = vld [vmem:[#allocation3 + $0x420] sm:$0xff]  ;;  %v5884_v33 = vld [vmem:[#allocation2 + $0x3a] sm:$0xff] }
 0x3c6   : > { %3338 = vmatmul.f32.gmra.mxu0 %v5746_v37  ;;  %v3076_v37 = vld [vmem:[#allocation2 + $0x50] sm:$0xff]  ;;  %3521 = vmatpush.msra.mxu1 %v3498_v30 }
 0x3c7   : > { %2949 = vmatmul.f32.gmra.mxu2 %v5872_v42  ;;  %3144 = vmatmul.f32.gmra.mxu3 %v3075_v61  ;;  %v5876_v20 = vadd.f32 %v2607_v57, %v2475_v48 }
 0x3c8   : > { %v5878_v43 = vpop.f32.mrf.mxu1 }
 0x3c9   : > { %6472 = vst [vmem:[#allocation16_spill] sm:$0xff] %v5876_v20 }
 0x3ca   : > { %v2254_v21 = vpop.f32.mrf.mxu2  ;;  %v2416_v49 = vpop.f32.mrf.mxu3 }
 0x3cb   : > { %v2255_v10 = vadd.f32 %v2254_v21, %v5728_v14  ;;  %v2613_v15 = vpop.f32.mrf.mxu0  ;;  %2806 = vmatmul.f32.gmra.mxu1 %v5880_v35  ;;  %v5892_v21 = vld [vmem:[#allocation2 + $0x109] sm:$0xff] }
 0x3cd   : > { %v2476_v25 = vadd.f32 %v2416_v49, %v2255_v10 }
 0x3ce   : > { %3341 = vmatmul.f32.gmra.mxu0 %v5754_v3  ;;  %v3077_v3 = vld [vmem:[#allocation2 + $0x60] sm:$0xff] }
 0x3cf   : > { %2952 = vmatmul.f32.gmra.mxu2 %v5884_v33  ;;  %3147 = vmatmul.f32.gmra.mxu3 %v3076_v37  ;;  %v5888_v57 = vadd.f32 %v2610_v28, %v2476_v25 }
 0x3d0   : > { %v5890_v48 = vpop.f32.mrf.mxu1 }
 0x3d1   : > { %6473 = vst [vmem:[#allocation17_spill] sm:$0xff] %v5888_v57  ;;  %v5904_v57 = vld [vmem:[#allocation2 + $0x111] sm:$0xff] }
 0x3d2   : > { %v2257_v61 = vpop.f32.mrf.mxu2  ;;  %v2419_v14 = vpop.f32.mrf.mxu3 }
 0x3d3   : > { %v2258_v49 = vadd.f32 %v2257_v61, %v5736_v23  ;;  %v2616_v10 = vpop.f32.mrf.mxu0  ;;  %2809 = vmatmul.f32.gmra.mxu1 %v5892_v21 }
 0x3d5   : > { %v2477_v20 = vadd.f32 %v2419_v14, %v2258_v49  ;;  %v3497_v49 = vld [vmem:[#allocation3 + $0x418] sm:$0xff] }
 0x3d6   : > { %3344 = vmatmul.f32.gmra.mxu0 %v5762_v47  ;;  %v3078_v47 = vld [vmem:[#allocation2 + $0x68] sm:$0xff]  ;;  %3522 = vmatpush.msra.mxu1 %v3497_v49 }
 0x3d7   : > { %2955 = vmatmul.f32.gmra.mxu2 %v5896_v38  ;;  %3150 = vmatmul.f32.gmra.mxu3 %v3077_v3  ;;  %v5900_v28 = vadd.f32 %v2613_v15, %v2477_v20 }
 0x3d8   : > { %v5902_v25 = vpop.f32.mrf.mxu1 }
 0x3d9   : > { %6474 = vst [vmem:[#allocation18_spill] sm:$0xff] %v5900_v28 }
 0x3da   : > { %v2260_v30 = vpop.f32.mrf.mxu2  ;;  %v2422_v37 = vpop.f32.mrf.mxu3 }
 0x3db   : > { %v2261_v23 = vadd.f32 %v2260_v30, %v5744_v1  ;;  %v2619_v61 = vpop.f32.mrf.mxu0  ;;  %2812 = vmatmul.f32.gmra.mxu1 %v5904_v57  ;;  %v5916_v30 = vld [vmem:[#allocation2 + $0x121] sm:$0xff] }
 0x3dd   : > { %v2478_v14 = vadd.f32 %v2422_v37, %v2261_v23 }
 0x3de   : > { %3347 = vmatmul.f32.gmra.mxu0 %v5770_v26  ;;  %v3079_v26 = vld [vmem:[#allocation2 + $0x78] sm:$0xff] }
 0x3df   : > { %2958 = vmatmul.f32.gmra.mxu2 %v5908_v5  ;;  %3153 = vmatmul.f32.gmra.mxu3 %v3078_v47  ;;  %v5912_v20 = vadd.f32 %v2616_v10, %v2478_v14 }
 0x3e0   : > { %v5914_v15 = vpop.f32.mrf.mxu1 }
 0x3e1   : > { %6475 = vst [vmem:[#allocation19_spill] sm:$0xff] %v5912_v20  ;;  %v5928_v20 = vld [vmem:[#allocation2 + $0x129] sm:$0xff] }
 0x3e2   : > { %v2263_v3 = vpop.f32.mrf.mxu2  ;;  %v2425_v1 = vpop.f32.mrf.mxu3 }
 0x3e3   : > { %v2264_v37 = vadd.f32 %v2263_v3, %v5752_v56  ;;  %v2622_v23 = vpop.f32.mrf.mxu0  ;;  %2815 = vmatmul.f32.gmra.mxu1 %v5916_v30 }
 0x3e5   : > { %v2479_v28 = vadd.f32 %v2425_v1, %v2264_v37  ;;  %v3496_v37 = vld [vmem:[#allocation3 + $0x410] sm:$0xff] }
 0x3e6   : > { %3350 = vmatmul.f32.gmra.mxu0 %v5778_v6  ;;  %v3080_v6 = vld [vmem:[#allocation2 + $0x80] sm:$0xff]  ;;  %3523 = vmatpush.msra.mxu1 %v3496_v37 }
 0x3e7   : > { %2961 = vmatmul.f32.gmra.mxu2 %v5920_v46  ;;  %3156 = vmatmul.f32.gmra.mxu3 %v3079_v26  ;;  %v5924_v10 = vadd.f32 %v2619_v61, %v2479_v28 }
 0x3e8   : > { %v5926_v14 = vpop.f32.mrf.mxu1 }
 0x3e9   : > { %6476 = vst [vmem:[#allocation20_spill] sm:$0xff] %v5924_v10 }
 0x3ea   : > { %v2266_v49 = vpop.f32.mrf.mxu2  ;;  %v2428_v47 = vpop.f32.mrf.mxu3 }
 0x3eb   : > { %v2267_v56 = vadd.f32 %v2266_v49, %v5760_v16  ;;  %v2625_v3 = vpop.f32.mrf.mxu0  ;;  %2818 = vmatmul.f32.gmra.mxu1 %v5928_v20  ;;  %v5940_v49 = vld [vmem:[#allocation2 + $0x139] sm:$0xff] }
 0x3ed   : > { %v2480_v1 = vadd.f32 %v2428_v47, %v2267_v56 }
 0x3ee   : > { %3353 = vmatmul.f32.gmra.mxu0 %v5786_v55  ;;  %v3081_v55 = vld [vmem:[#allocation2 + $0x90] sm:$0xff] }
 0x3ef   : > { %2964 = vmatmul.f32.gmra.mxu2 %v5932_v17  ;;  %3159 = vmatmul.f32.gmra.mxu3 %v3080_v6  ;;  %v5936_v28 = vadd.f32 %v2622_v23, %v2480_v1 }
 0x3f0   : > { %v5938_v61 = vpop.f32.mrf.mxu1 }
 0x3f1   : > { %6477 = vst [vmem:[#allocation21_spill] sm:$0xff] %v5936_v28  ;;  %v5952_v28 = vld [vmem:[#allocation2 + $0x141] sm:$0xff] }
 0x3f2   : > { %v2269_v26 = vpop.f32.mrf.mxu2  ;;  %v2431_v16 = vpop.f32.mrf.mxu3 }
 0x3f3   : > { %v2270_v47 = vadd.f32 %v2269_v26, %v5768_v59  ;;  %v2628_v56 = vpop.f32.mrf.mxu0  ;;  %2821 = vmatmul.f32.gmra.mxu1 %v5940_v49 }
 0x3f5   : > { %v2481_v10 = vadd.f32 %v2431_v16, %v2270_v47  ;;  %v3495_v47 = vld [vmem:[#allocation3 + $0x408] sm:$0xff] }
 0x3f6   : > { %3356 = vmatmul.f32.gmra.mxu0 %v5794_v12  ;;  %v3082_v12 = vld [vmem:[#allocation2 + $0x98] sm:$0xff]  ;;  %3524 = vmatpush.msra.mxu1 %v3495_v47 }
 0x3f7   : > { %2967 = vmatmul.f32.gmra.mxu2 %v5944_v63  ;;  %3162 = vmatmul.f32.gmra.mxu3 %v3081_v55  ;;  %v5948_v23 = vadd.f32 %v2625_v3, %v2481_v10 }
 0x3f8   : > { %v5950_v1 = vpop.f32.mrf.mxu1 }
 0x3f9   : > { %6478 = vst [vmem:[#allocation22_spill] sm:$0xff] %v5948_v23 }
 0x3fa   : > { %v2272_v37 = vpop.f32.mrf.mxu2  ;;  %v2434_v6 = vpop.f32.mrf.mxu3 }
 0x3fb   : > { %v2273_v59 = vadd.f32 %v2272_v37, %v5776_v60  ;;  %v2631_v26 = vpop.f32.mrf.mxu0  ;;  %2824 = vmatmul.f32.gmra.mxu1 %v5952_v28  ;;  %v5964_v37 = vld [vmem:[#allocation2 + $0x151] sm:$0xff] }
 0x3fd   : > { %v2482_v16 = vadd.f32 %v2434_v6, %v2273_v59 }
 0x3fe   : > { %3359 = vmatmul.f32.gmra.mxu0 %v5805_v54  ;;  %v3083_v54 = vld [vmem:[#allocation2 + $0xa8] sm:$0xff] }
 0x3ff   : > { %2970 = vmatmul.f32.gmra.mxu2 %v5956_v27  ;;  %3165 = vmatmul.f32.gmra.mxu3 %v3082_v12  ;;  %v5960_v10 = vadd.f32 %v2628_v56, %v2482_v16 }
 0x400   : > { %v5962_v3 = vpop.f32.mrf.mxu1 }
 0x401   : > { %6479 = vst [vmem:[#allocation23_spill] sm:$0xff] %v5960_v10  ;;  %v5976_v10 = vld [vmem:[#allocation2 + $0x159] sm:$0xff] }
 0x402   : > { %6480 = vst [vmem:[#allocation24_spill] sm:$0xff] %v5962_v3  ;;  %v2275_v55 = vpop.f32.mrf.mxu2  ;;  %v2437_v60 = vpop.f32.mrf.mxu3  ;;  %v5980_v3 = vld [vmem:[#allocation2 + $0x9a] sm:$0xff] }
 0x403   : > { %v2276_v6 = vadd.f32 %v2275_v55, %v5784_v36  ;;  %v2634_v59 = vpop.f32.mrf.mxu0  ;;  %2827 = vmatmul.f32.gmra.mxu1 %v5964_v37 }
 0x405   : > { %v2483_v23 = vadd.f32 %v2437_v60, %v2276_v6  ;;  %v3494_v6 = vld [vmem:[#allocation3 + $0x400] sm:$0xff] }
 0x406   : > { %3362 = vmatmul.f32.gmra.mxu0 %v5816_v22  ;;  %v3084_v22 = vld [vmem:[#allocation2 + $0xb0] sm:$0xff]  ;;  %3525 = vmatpush.msra.mxu1 %v3494_v6 }
 0x407   : > { %2973 = vmatmul.f32.gmra.mxu2 %v5968_v53  ;;  %3168 = vmatmul.f32.gmra.mxu3 %v3083_v54  ;;  %v5972_v56 = vadd.f32 %v2631_v26, %v2483_v23 }
 0x408   : > { %v5974_v16 = vpop.f32.mrf.mxu1 }
 0x409   : > { %6481 = vst [vmem:[#allocation25_spill] sm:$0xff] %v5972_v56  ;;  %v5992_v56 = vld [vmem:[#allocation2 + $0xaa] sm:$0xff] }
 0x40a   : > { %v2278_v47 = vpop.f32.mrf.mxu2  ;;  %v2440_v12 = vpop.f32.mrf.mxu3 }
 0x40b   : > { %v2279_v36 = vadd.f32 %v2278_v47, %v5792_v51  ;;  %2830 = vmatmul.f32.gmra.mxu1 %v5976_v10  ;;  %v2637_v60 = vpop.f32.mrf.mxu0  ;;  %v5988_v47 = vld [vmem:[#allocation2 + $0x169] sm:$0xff] }
 0x40d   : > { %v2484_v55 = vadd.f32 %v2440_v12, %v2279_v36 }
 0x40e   : > { %3365 = vmatmul.f32.gmra.mxu0 %v5825_v4  ;;  %v3085_v4 = vld [vmem:[#allocation2 + $0xc0] sm:$0xff] }
 0x40f   : > { %2976 = vmatmul.f32.gmra.mxu2 %v5980_v3  ;;  %3171 = vmatmul.f32.gmra.mxu3 %v3084_v22  ;;  %v5984_v23 = vadd.f32 %v2634_v59, %v2484_v55 }
 0x410   : > { %v5986_v26 = vpop.f32.mrf.mxu1 }
 0x411   : > { %6482 = vst [vmem:[#allocation26_spill] sm:$0xff] %v5984_v23 }
 0x412   : > { %6483 = vst [vmem:[#allocation27_spill] sm:$0xff] %v5986_v26  ;;  %v2281_v54 = vpop.f32.mrf.mxu2  ;;  %v2443_v51 = vpop.f32.mrf.mxu3  ;;  %v6000_v26 = vld [vmem:[#allocation2 + $0x171] sm:$0xff] }
 0x413   : > { %v2282_v12 = vadd.f32 %v2281_v54, %v5803_v19  ;;  %2833 = vmatmul.f32.gmra.mxu1 %v5988_v47  ;;  %v2640_v6 = vpop.f32.mrf.mxu0 }
 0x415   : > { %v2485_v36 = vadd.f32 %v2443_v51, %v2282_v12  ;;  %v6004_v51 = vld [vmem:[#allocation2 + $0xb2] sm:$0xff] }
 0x416   : > { %3368 = vmatmul.f32.gmra.mxu0 %v5834_v13  ;;  %v3086_v13 = vld [vmem:[#allocation2 + $0xc8] sm:$0xff] }
 0x417   : > { %2979 = vmatmul.f32.gmra.mxu2 %v5992_v56  ;;  %3174 = vmatmul.f32.gmra.mxu3 %v3085_v4  ;;  %v5996_v59 = vadd.f32 %v2637_v60, %v2485_v36 }
 0x418   : > { %v5998_v55 = vpop.f32.mrf.mxu1 }
 0x419   : > { %6484 = vst [vmem:[#allocation28_spill] sm:$0xff] %v5996_v59 }
 0x41a   : > { %6485 = vst [vmem:[#allocation29_spill] sm:$0xff] %v5998_v55  ;;  %v2284_v22 = vpop.f32.mrf.mxu2  ;;  %v2446_v23 = vpop.f32.mrf.mxu3  ;;  %v6012_v55 = vld [vmem:[#allocation2 + $0x181] sm:$0xff] }
 0x41b   : > { %v2285_v19 = vadd.f32 %v2284_v22, %v5814_v39  ;;  %2836 = vmatmul.f32.gmra.mxu1 %v6000_v26  ;;  %v2643_v36 = vpop.f32.mrf.mxu0  ;;  %v6016_v22 = vld [vmem:[#allocation2 + $0xc2] sm:$0xff] }
 0x41d   : > { %v2486_v54 = vadd.f32 %v2446_v23, %v2285_v19 }
 0x41e   : > { %3371 = vmatmul.f32.gmra.mxu0 %v5842_v41  ;;  %v3087_v41 = vld [vmem:[#allocation2 + $0xd8] sm:$0xff] }
 0x41f   : > { %2982 = vmatmul.f32.gmra.mxu2 %v6004_v51  ;;  %3177 = vmatmul.f32.gmra.mxu3 %v3086_v13  ;;  %v6008_v60 = vadd.f32 %v2640_v6, %v2486_v54 }
 0x420   : > { %v6010_v12 = vpop.f32.mrf.mxu1 }
 0x421   : > { %6486 = vst [vmem:[#allocation30_spill] sm:$0xff] %v6008_v60  ;;  %v6024_v60 = vld [vmem:[#allocation2 + $0x189] sm:$0xff] }
 0x422   : > { %6487 = vst [vmem:[#allocation31_spill] sm:$0xff] %v6010_v12  ;;  %v2287_v4 = vpop.f32.mrf.mxu2  ;;  %v2449_v59 = vpop.f32.mrf.mxu3 }
 0x423   : > { %v2288_v39 = vadd.f32 %v2287_v4, %v5823_v40  ;;  %2839 = vmatmul.f32.gmra.mxu1 %v6012_v55 }
 0x425   : > { %v2487_v23 = vadd.f32 %v2449_v59, %v2288_v39  ;;  %v2646_v59 = vpop.f32.mrf.mxu0  ;;  %v6028_v39 = vld [vmem:[#allocation2 + $0xca] sm:$0xff] }
 0x426   : > { %3374 = vmatmul.f32.gmra.mxu0 %v5850_v52  ;;  %v3088_v52 = vld [vmem:[#allocation2 + $0xe0] sm:$0xff] }
 0x427   : > { %2985 = vmatmul.f32.gmra.mxu2 %v6016_v22  ;;  %3180 = vmatmul.f32.gmra.mxu3 %v3087_v41  ;;  %v6020_v6 = vadd.f32 %v2643_v36, %v2487_v23 }
 0x428   : > { %v6022_v19 = vpop.f32.mrf.mxu1 }
 0x429   : > { %6488 = vst [vmem:[#allocation32_spill] sm:$0xff] %v6020_v6 }
 0x42a   : > { %6489 = vst [vmem:[#allocation33_spill] sm:$0xff] %v6022_v19  ;;  %v2290_v54 = vpop.f32.mrf.mxu2  ;;  %v2452_v13 = vpop.f32.mrf.mxu3  ;;  %v3089_v19 = vld [vmem:[#allocation2 + $0xf0] sm:$0xff] }
 0x42b   : > { %v2291_v40 = vadd.f32 %v2290_v54, %v5832_v45  ;;  %2842 = vmatmul.f32.gmra.mxu1 %v6024_v60 }
 0x42d   : > { %v2488_v4 = vadd.f32 %v2452_v13, %v2291_v40  ;;  %v2649_v13 = vpop.f32.mrf.mxu0  ;;  %v6038_v40 = vld [vmem:[#allocation2 + $0xda] sm:$0xff] }
 0x42e   : > { %3377 = vmatmul.f32.gmra.mxu0 %v5859_v0 }
 0x42f   : > { %2988 = vmatmul.f32.gmra.mxu2 %v6028_v39  ;;  %3183 = vmatmul.f32.gmra.mxu3 %v3088_v52  ;;  %v6032_v36 = vadd.f32 %v2646_v59, %v2488_v4  ;;  %v3092_v4 = vld [vmem:[#allocation2 + $0x110] sm:$0xff]  ;;  %v3093_v52 = vld [vmem:[#allocation2 + $0x120] sm:$0xff] }
 0x430   : > { %v6034_v23 = vpop.f32.mrf.mxu1 }
 0x431   : > { %6490 = vst [vmem:[#allocation34_spill] sm:$0xff] %v6032_v36  ;;  %v6121_v36 = vld [vmem:[#allocation2 + $0x142] sm:$0xff] }
 0x432   : > { %6491 = vst [vmem:[#allocation35_spill] sm:$0xff] %v6034_v23  ;;  %v2293_v41 = vpop.f32.mrf.mxu2  ;;  %v2455_v45 = vpop.f32.mrf.mxu3 }
 0x433   : > { %v2294_v6 = vadd.f32 %v2293_v41, %v5840_v11  ;;  %3526 = vmatmul.f32.vlgmr.msra.gmra.mxu1 %v5872_v42  ;;  %v6047_v11 = vld [vmem:[#allocation2 + $0xe2] sm:$0xff]  ;;  %v3090_v42 = vld [vmem:[#allocation2 + $0xf8] sm:$0xff] }
 0x434   : > { %v3094_v41 = vld [vmem:[#allocation2 + $0x128] sm:$0xff] }
 0x435   : > { %v2489_v54 = vadd.f32 %v2455_v45, %v2294_v6  ;;  %v6084_v45 = vld [vmem:[#allocation2 + $0x122] sm:$0xff] }
 0x436   : > { %3380 = vmatmul.f32.gmra.mxu0 %v5868_v58  ;;  %v6054_v58 = vld [vmem:[#allocation2 + $0xf2] sm:$0xff] }
 0x437   : > { %2991 = vmatmul.f32.gmra.mxu2 %v6038_v40  ;;  %3186 = vmatmul.f32.gmra.mxu3 %v3089_v19  ;;  %v6042_v0 = vadd.f32 %v2649_v13, %v2489_v54  ;;  %v3091_v19 = vld [vmem:[#allocation2 + $0x108] sm:$0xff]  ;;  %v3095_v54 = vld [vmem:[#allocation2 + $0x138] sm:$0xff] }
 0x438   : > { %v6044_v59 = vpop.f32.mrf.mxu1 }
 0x439   : > { %6492 = vst [vmem:[#allocation36_spill] sm:$0xff] %v6042_v0 }
 0x43a   : > { %6493 = vst [vmem:[#allocation37_spill] sm:$0xff] %v6044_v59  ;;  %v6092_v13 = vpop.f32.mrf.mxu3  ;;  %v6182_v59 = vld [vmem:[#allocation2 + $0x182] sm:$0xff] }
 0x43b   : > { %3529 = vmatmul.f32.gmra.mxu1 %v5884_v33 }
 0x43e   : > { %3383 = vmatmul.f32.gmra.mxu0 %v5880_v35  ;;  %v6061_v35 = vld [vmem:[#allocation2 + $0xfa] sm:$0xff] }
 0x43f   : > { %2994 = vmatmul.f32.gmra.mxu2 %v6047_v11  ;;  %3189 = vmatmul.f32.gmra.mxu3 %v3090_v42  ;;  %v6095_v42 = vld [vmem:[#allocation2 + $0x12a] sm:$0xff] }
 0x440   : > { %v6051_v6 = vpop.f32.mrf.mxu1 }
 0x441   : > { %6494 = vst [vmem:[#allocation38_spill] sm:$0xff] %v6051_v6 }
 0x443   : > { %3532 = vmatmul.f32.gmra.mxu1 %v5896_v38 }
 0x446   : > { %3386 = vmatmul.f32.gmra.mxu0 %v5892_v21  ;;  %v6068_v21 = vld [vmem:[#allocation2 + $0x10a] sm:$0xff] }
 0x447   : > { %2997 = vmatmul.f32.gmra.mxu2 %v6054_v58  ;;  %3192 = vmatmul.f32.gmra.mxu3 %v3091_v19 }
 0x448   : > { %v6058_v33 = vpop.f32.mrf.mxu1 }
 0x449   : > { %6495 = vst [vmem:[#allocation39_spill] sm:$0xff] %v6058_v33 }
 0x44b   : > { %3535 = vmatmul.f32.gmra.mxu1 %v5908_v5 }
 0x44e   : > { %3389 = vmatmul.f32.gmra.mxu0 %v5904_v57  ;;  %v6075_v57 = vld [vmem:[#allocation2 + $0x112] sm:$0xff] }
 0x44f   : > { %3000 = vmatmul.f32.gmra.mxu2 %v6061_v35  ;;  %3195 = vmatmul.f32.gmra.mxu3 %v3092_v4 }
 0x450   : > { %v6065_v38 = vpop.f32.mrf.mxu1 }
 0x451   : > { %6496 = vst [vmem:[#allocation40_spill] sm:$0xff] %v6065_v38 }
 0x453   : > { %3538 = vmatmul.f32.gmra.mxu1 %v5920_v46 }
 0x456   : > { %3392 = vmatmul.f32.gmra.mxu0 %v5916_v30  ;;  %v6082_v30 = vpop.f32.mrf.mxu2 }
 0x457   : > { %3003 = vmatmul.f32.gmra.mxu2 %v6068_v21  ;;  %3198 = vmatmul.f32.gmra.mxu3 %v3093_v52  ;;  %v6105_v52 = vpop.f32.mrf.mxu3 }
 0x458   : > { %v6072_v5 = vpop.f32.mrf.mxu1 }
 0x459   : > { %6497 = vst [vmem:[#allocation41_spill] sm:$0xff] %v6072_v5 }
 0x45b   : > { %3541 = vmatmul.f32.gmra.mxu1 %v5932_v17  ;;  %v6088_v17 = vpop.f32.mrf.mxu0 }
 0x45e   : > { %3395 = vmatmul.f32.gmra.mxu0 %v5928_v20 }
 0x45f   : > { %3006 = vmatmul.f32.gmra.mxu2 %v6075_v57  ;;  %3201 = vmatmul.f32.gmra.mxu3 %v3094_v41  ;;  %v6108_v41 = vld [vmem:[#allocation2 + $0x13a] sm:$0xff]  ;;  %v6119_v0 = vpop.f32.mrf.mxu3 }
 0x460   : > { %v6079_v46 = vpop.f32.mrf.mxu1 }
 0x461   : > { %6498 = vst [vmem:[#allocation42_spill] sm:$0xff] %v6079_v46 }
 0x463   : > { %3544 = vmatmul.f32.gmra.mxu1 %v5944_v63  ;;  %v3096_v63 = vld [vmem:[#allocation2 + $0x140] sm:$0xff]  ;;  %v6103_v4 = vpop.f32.mrf.mxu0 }
 0x466   : > { %3398 = vmatmul.f32.gmra.mxu0 %v5940_v49  ;;  %v6099_v49 = vpop.f32.mrf.mxu2 }
 0x467   : > { %3009 = vmatmul.f32.gmra.mxu2 %v6084_v45  ;;  %3204 = vmatmul.f32.gmra.mxu3 %v3095_v54 }
 0x468   : > { %v6090_v20 = vpop.f32.mrf.mxu1 }
 0x469   : > { %6499 = vst [vmem:[#allocation43_spill] sm:$0xff] %v6090_v20  ;;  %v6135_v20 = vpop.f32.mrf.mxu3 }
 0x46b   : > { %3547 = vmatmul.f32.gmra.mxu1 %v5956_v27  ;;  %v3097_v27 = vld [vmem:[#allocation2 + $0x150] sm:$0xff] }
 0x46e   : > { %3401 = vmatmul.f32.gmra.mxu0 %v5952_v28  ;;  %v6114_v54 = vpop.f32.mrf.mxu2 }
 0x46f   : > { %3012 = vmatmul.f32.gmra.mxu2 %v6095_v42  ;;  %3207 = vmatmul.f32.gmra.mxu3 %v3096_v63  ;;  %v6117_v63 = vpop.f32.mrf.mxu0 }
 0x470   : > { %v6101_v19 = vpop.f32.mrf.mxu1 }
 0x471   : > { %6500 = vst [vmem:[#allocation44_spill] sm:$0xff] %v6101_v19  ;;  %v3099_v19 = vld [vmem:[#allocation2 + $0x168] sm:$0xff]  ;;  %v6151_v5 = vpop.f32.mrf.mxu3 }
 0x473   : > { %3550 = vmatmul.f32.gmra.mxu1 %v5968_v53  ;;  %v3098_v53 = vld [vmem:[#allocation2 + $0x158] sm:$0xff] }
 0x476   : > { %3404 = vmatmul.f32.gmra.mxu0 %v5964_v37 }
 0x477   : > { %3015 = vmatmul.f32.gmra.mxu2 %v6108_v41  ;;  %3210 = vmatmul.f32.gmra.mxu3 %v3097_v27  ;;  %v6128_v27 = vpop.f32.mrf.mxu2 }
 0x478   : > { %v6112_v28 = vpop.f32.mrf.mxu1 }
 0x479   : > { %6501 = vst [vmem:[#allocation45_spill] sm:$0xff] %v6112_v28  ;;  %v6130_v28 = vpop.f32.mrf.mxu0  ;;  %v6164_v38 = vpop.f32.mrf.mxu3 }
 0x47b   : > { %3553 = vmatmul.f32.gmra.mxu1 %v5980_v3  ;;  %v6132_v3 = vld [vmem:[#allocation2 + $0x152] sm:$0xff] }
 0x47e   : > { %3407 = vmatmul.f32.gmra.mxu0 %v5976_v10 }
 0x47f   : > { %3018 = vmatmul.f32.gmra.mxu2 %v6121_v36  ;;  %3213 = vmatmul.f32.gmra.mxu3 %v3098_v53  ;;  %v6141_v53 = vpop.f32.mrf.mxu2 }
 0x480   : > { %v6125_v37 = vpop.f32.mrf.mxu1 }
 0x481   : > { %6502 = vst [vmem:[#allocation46_spill] sm:$0xff] %v6125_v37  ;;  %v3100_v37 = vld [vmem:[#allocation2 + $0x170] sm:$0xff]  ;;  %v6180_v6 = vpop.f32.mrf.mxu3 }
 0x483   : > { %3556 = vmatmul.f32.gmra.mxu1 %v5992_v56  ;;  %v6143_v56 = vld [vmem:[#allocation2 + $0x15a] sm:$0xff] }
 0x486   : > { %3410 = vmatmul.f32.gmra.mxu0 %v5988_v47  ;;  %v6147_v47 = vpop.f32.mrf.mxu0 }
 0x487   : > { %3021 = vmatmul.f32.gmra.mxu2 %v6132_v3  ;;  %3216 = vmatmul.f32.gmra.mxu3 %v3099_v19  ;;  %v6154_v19 = vld [vmem:[#allocation2 + $0x16a] sm:$0xff] }
 0x488   : > { %v6138_v10 = vpop.f32.mrf.mxu1 }
 0x489   : > { %6503 = vst [vmem:[#allocation47_spill] sm:$0xff] %v6138_v10 }
 0x48b   : > { %3559 = vmatmul.f32.gmra.mxu1 %v6004_v51  ;;  %v3101_v51 = vld [vmem:[#allocation2 + $0x180] sm:$0xff] }
 0x48e   : > { %3413 = vmatmul.f32.gmra.mxu0 %v6000_v26  ;;  %v6158_v26 = vpop.f32.mrf.mxu2 }
 0x48f   : > { %3024 = vmatmul.f32.gmra.mxu2 %v6143_v56  ;;  %3219 = vmatmul.f32.gmra.mxu3 %v3100_v37  ;;  %v6162_v37 = vpop.f32.mrf.mxu0 }
 0x490   : > { %v6149_v46 = vpop.f32.mrf.mxu1 }
 0x491   : > { %6504 = vst [vmem:[#allocation48_spill] sm:$0xff] %v6149_v46  ;;  %v6167_v46 = vld [vmem:[#allocation2 + $0x172] sm:$0xff] }
 0x493   : > { %3562 = vmatmul.f32.gmra.mxu1 %v6016_v22  ;;  %v3102_v22 = vld [vmem:[#allocation2 + $0x188] sm:$0xff] }
 0x496   : > { %3416 = vmatmul.f32.gmra.mxu0 %v6012_v55 }
 0x497   : > { %3027 = vmatmul.f32.gmra.mxu2 %v6154_v19  ;;  %3222 = vmatmul.f32.gmra.mxu3 %v3101_v51  ;;  %v6173_v51 = vpop.f32.mrf.mxu2  ;;  %v6176_v33 = vpop.f32.mrf.mxu0 }
 0x498   : > { %v6160_v10 = vpop.f32.mrf.mxu1 }
 0x499   : > { %6505 = vst [vmem:[#allocation49_spill] sm:$0xff] %v6160_v10  ;;  %v3297_v10 = vld [vmem:[#allocation2 + $0x199] sm:$0xff] }
 0x49b   : > { %3565 = vmatmul.f32.gmra.mxu1 %v6028_v39  ;;  %v2846_v39 = vadd.f32 %v5848_v29, %v5726_v44  ;;  %v3298_v44 = vld [vmem:[#allocation2 + $0x1a1] sm:$0xff] }
 0x49e   : > { %3419 = vmatmul.f32.gmra.mxu0 %v6024_v60  ;;  %v3040_v60 = vadd.f32 %v6082_v30, %v2846_v39  ;;  %v6196_v30 = vld [vmem:[#allocation2 + $0x18a] sm:$0xff] }
 0x49f   : > { %3030 = vmatmul.f32.gmra.mxu2 %v6167_v46  ;;  %3225 = vmatmul.f32.gmra.mxu3 %v3102_v22  ;;  %v4330_v22 = vld [vmem:[#allocation2] sm:$0xff]  ;;  %v6190_v29 = vpop.f32.mrf.mxu2  ;;  %v6194_v23 = vpop.f32.mrf.mxu0 }
 0x4a0   : > { %v6171_v55 = vpop.f32.mrf.mxu1 }
 0x4a1   : > { %6506 = vst [vmem:[#allocation50_spill] sm:$0xff] %v6171_v55 }
 0x4a3   : > { %3568 = vmatmul.f32.gmra.mxu1 %v6038_v40  ;;  %v3235_v40 = vadd.f32 %v6092_v13, %v3040_v60  ;;  %v4201_v60 = vld [vmem:[%s4605_s17 + $0x19] sm:$0xff] }
 0x4a6   : > { %3422 = vmatmul.f32.gmra.mxu0 %v3297_v10  ;;  %v2847_v10 = vadd.f32 %v5857_v2, %v5734_v24 }
 0x4a7   : > { %3033 = vmatmul.f32.gmra.mxu2 %v6182_v59  ;;  %3228 = vmatmul.f32.gmra.mxu3 %v4330_v22 }
 0x4a8   : > { %v6186_v55 = vpop.f32.mrf.mxu1  ;;  %v3041_v39 = vadd.f32 %v6099_v49, %v2847_v10  ;;  %v2848_v49 = vadd.f32 %v5866_v32, %v5742_v50  ;;  %v6211_v10 = vpop.f32.mrf.mxu2  ;;  %v2849_v32 = vadd.f32 %v5878_v43, %v5750_v34  ;;  %v2850_v34 = vadd.f32 %v5890_v48, %v5758_v62 }
 0x4a9   : > { %6507 = vst [vmem:[#allocation51_spill] sm:$0xff] %v6186_v55  ;;  %v6200_v55 = vpop.f32.mrf.mxu3  ;;  %v2851_v48 = vadd.f32 %v5902_v25, %v5766_v9  ;;  %v2852_v25 = vadd.f32 %v5914_v15, %v5774_v31  ;;  %v2853_v31 = vadd.f32 %v5926_v14, %v5782_v7  ;;  %v2854_v14 = vadd.f32 %v5938_v61, %v5790_v18 }
 0x4aa   : > { %v3236_v2 = vadd.f32 %v6105_v52, %v3041_v39  ;;  %v2855_v18 = vadd.f32 %v5950_v1, %v5801_v8  ;;  %v6508_v8 = vld [vmem:[#allocation9_spill] sm:$0xff]  ;;  %v6509_v1 = vld [vmem:[#allocation24_spill] sm:$0xff] }
 0x4ab   : > { %3571 = vmatmul.f32.gmra.mxu1 %v6047_v11  ;;  %v3429_v11 = vadd.f32 %v6088_v17, %v3235_v40  ;;  %v4202_v40 = vld [vmem:[%s4605_s17 + $0x21] sm:$0xff] }
 0x4ac   : > { %v3430_v17 = vadd.f32 %v6103_v4, %v3236_v2 }
 0x4ae   : > { %3425 = vmatmul.f32.gmra.mxu0 %v3298_v44 }
 0x4af   : > { %3036 = vmatmul.f32.gmra.mxu2 %v6196_v30  ;;  %3231 = vmatmul.f32.gmra.mxu3 %v4330_v22  ;;  %v3042_v22 = vadd.f32 %v6114_v54, %v2848_v49  ;;  %v3043_v54 = vadd.f32 %v6128_v27, %v2849_v32  ;;  %v4205_v32 = vld [vmem:[%s4605_s17 + $0x49] sm:$0xff] }
 0x4b0   : > { %v3527_v13 = vpop.f32.mrf.mxu1 }
 0x4b1   : > { %v3623_v24 = vadd.f32 %v3527_v13, %v3429_v11  ;;  %v6221_v50 = vpop.f32.mrf.mxu3  ;;  %v6226_v13 = vpop.f32.mrf.mxu0  ;;  %v3238_v2 = vadd.f32 %v6135_v20, %v3043_v54 }
 0x4b3   : > { %v3687_v12 = vadd.f32 %v4201_v60, %v3623_v24  ;;  %3574 = vmatmul.f32.gmra.mxu1 %v6054_v58  ;;  %v3237_v58 = vadd.f32 %v6119_v0, %v3042_v22  ;;  %v6230_v60 = vpop.f32.mrf.mxu2  ;;  %v4203_v24 = vld [vmem:[%s4605_s17 + $0x31] sm:$0xff] }
 0x4b5   : > { %v3719_v44 = vmax.f32 %v3687_v12, 0.0  ;;  %v3431_v4 = vadd.f32 %v6117_v63, %v3237_v58  ;;  %v3432_v63 = vadd.f32 %v6130_v28, %v3238_v2  ;;  %v3045_v28 = vadd.f32 %v6158_v26, %v2851_v48 }
 0x4b7   : > { %3751 = vst [vmem:[%s6214_s6] sm:$0xff] %v3719_v44  ;;  %v3044_v44 = vadd.f32 %v6141_v53, %v2850_v34 }
 0x4b8   : > { %v3530_v52 = vpop.f32.mrf.mxu1 }
 0x4b9   : > { %v3624_v39 = vadd.f32 %v3530_v52, %v3430_v17  ;;  %v6237_v27 = vpop.f32.mrf.mxu3  ;;  %v4204_v17 = vld [vmem:[%s4605_s17 + $0x39] sm:$0xff]  ;;  %v6243_v52 = vpop.f32.mrf.mxu0 }
 0x4bb   : > { %v3688_v11 = vadd.f32 %v4202_v40, %v3624_v39  ;;  %3577 = vmatmul.f32.gmra.mxu1 %v6061_v35  ;;  %v6245_v40 = vpop.f32.mrf.mxu2 }
 0x4bd   : > { %v3720_v12 = vmax.f32 %v3688_v11, 0.0 }
 0x4bf   : > { %3752 = vst [vmem:[%s6214_s6 + $0x8] sm:$0xff] %v3720_v12 }
 0x4c0   : > { %v3533_v0 = vpop.f32.mrf.mxu1 }
 0x4c1   : > { %v3625_v35 = vadd.f32 %v3533_v0, %v3431_v4  ;;  %v6254_v58 = vpop.f32.mrf.mxu3  ;;  %v6258_v54 = vpop.f32.mrf.mxu0 }
 0x4c3   : > { %v3689_v49 = vadd.f32 %v4203_v24, %v3625_v35  ;;  %3580 = vmatmul.f32.gmra.mxu1 %v6068_v21  ;;  %v3239_v21 = vadd.f32 %v6151_v5, %v3044_v44  ;;  %v3240_v5 = vadd.f32 %v6164_v38, %v3045_v28  ;;  %v6261_v9 = vpop.f32.mrf.mxu2  ;;  %v4206_v38 = vld [vmem:[%s4605_s17 + $0x51] sm:$0xff] }
 0x4c5   : > { %v3721_v43 = vmax.f32 %v3689_v49, 0.0  ;;  %v3433_v39 = vadd.f32 %v6147_v47, %v3239_v21  ;;  %v3046_v47 = vadd.f32 %v6173_v51, %v2852_v25  ;;  %v3434_v4 = vadd.f32 %v6162_v37, %v3240_v5  ;;  %v4208_v21 = vld [vmem:[%s4605_s17 + $0x69] sm:$0xff] }
 0x4c6   : > { %v3047_v37 = vadd.f32 %v6190_v29, %v2853_v31  ;;  %v3048_v29 = vadd.f32 %v6211_v10, %v2854_v14  ;;  %v2856_v5 = vadd.f32 %v6509_v1, %v6508_v8  ;;  %v4214_v1 = vld [vmem:[%s4605_s17 + $0xb1] sm:$0xff] }
 0x4c7   : > { %3753 = vst [vmem:[%s6214_s6 + $0x10] sm:$0xff] %v3721_v43 }
 0x4c8   : > { %v3536_v22 = vpop.f32.mrf.mxu1 }
 0x4c9   : > { %v3626_v20 = vadd.f32 %v3536_v22, %v3432_v63  ;;  %v6269_v35 = vpop.f32.mrf.mxu3  ;;  %v6275_v15 = vpop.f32.mrf.mxu0 }
 0x4cb   : > { %v3690_v62 = vadd.f32 %v4204_v17, %v3626_v20  ;;  %3583 = vmatmul.f32.gmra.mxu1 %v6075_v57  ;;  %v6277_v49 = vpop.f32.mrf.mxu2 }
 0x4cd   : > { %v3722_v53 = vmax.f32 %v3690_v62, 0.0  ;;  %v3243_v62 = vadd.f32 %v6221_v50, %v3048_v29 }
 0x4cf   : > { %3754 = vst [vmem:[%s6214_s6 + $0x18] sm:$0xff] %v3722_v53  ;;  %v3049_v53 = vadd.f32 %v6230_v60, %v2855_v18  ;;  %v3050_v60 = vadd.f32 %v6245_v40, %v2856_v5 }
 0x4d0   : > { %v3539_v11 = vpop.f32.mrf.mxu1 }
 0x4d1   : > { %v3627_v12 = vadd.f32 %v3539_v11, %v3433_v39  ;;  %v6285_v7 = vpop.f32.mrf.mxu3  ;;  %v6290_v17 = vpop.f32.mrf.mxu0  ;;  %v4209_v39 = vld [vmem:[%s4605_s17 + $0x79] sm:$0xff] }
 0x4d3   : > { %v3691_v57 = vadd.f32 %v4205_v32, %v3627_v12  ;;  %3586 = vmatmul.f32.gmra.mxu1 %v6084_v45  ;;  %v3241_v45 = vadd.f32 %v6180_v6, %v3046_v47  ;;  %v4207_v6 = vld [vmem:[%s4605_s17 + $0x61] sm:$0xff]  ;;  %v6294_v20 = vpop.f32.mrf.mxu2 }
 0x4d4   : > { %v4210_v47 = vld [vmem:[%s4605_s17 + $0x81] sm:$0xff] }
 0x4d5   : > { %v3723_v26 = vmax.f32 %v3691_v57, 0.0  ;;  %v3435_v34 = vadd.f32 %v6176_v33, %v3241_v45 }
 0x4d7   : > { %3755 = vst [vmem:[%s6214_s6 + $0x20] sm:$0xff] %v3723_v26 }
 0x4d8   : > { %v3542_v0 = vpop.f32.mrf.mxu1 }
 0x4d9   : > { %v3628_v24 = vadd.f32 %v3542_v0, %v3434_v4  ;;  %v3178_v10 = vpop.f32.mrf.mxu3  ;;  %v6305_v11 = vpop.f32.mrf.mxu0 }
 0x4db   : > { %v3692_v2 = vadd.f32 %v4206_v38, %v3628_v24  ;;  %3589 = vmatmul.f32.gmra.mxu1 %v6095_v42  ;;  %v3242_v42 = vadd.f32 %v6200_v55, %v3047_v37  ;;  %v2986_v32 = vpop.f32.mrf.mxu2  ;;  %v6510_v24 = vld [vmem:[#allocation10_spill] sm:$0xff] }
 0x4dc   : > { %v2857_v45 = vadd.f32 %v5974_v16, %v6510_v24  ;;  %v4215_v24 = vld [vmem:[%s4605_s17 + $0xc1] sm:$0xff] }
 0x4dd   : > { %v3724_v51 = vmax.f32 %v3692_v2, 0.0  ;;  %v3436_v33 = vadd.f32 %v6194_v23, %v3242_v42  ;;  %v3437_v23 = vadd.f32 %v6226_v13, %v3243_v62 }
 0x4de   : > { %v3051_v40 = vadd.f32 %v6261_v9, %v2857_v45  ;;  %v3491_v45 = vld [vmem:[#allocation2 + $0x19a] sm:$0xff] }
 0x4df   : > { %3756 = vst [vmem:[%s6214_s6 + $0x28] sm:$0xff] %v3724_v51  ;;  %v4211_v51 = vld [vmem:[%s4605_s17 + $0x91] sm:$0xff] }
 0x4e0   : > { %v3545_v43 = vpop.f32.mrf.mxu1 }
 0x4e1   : > { %v3629_v44 = vadd.f32 %v3545_v43, %v3435_v34  ;;  %v3181_v25 = vpop.f32.mrf.mxu3  ;;  %v3375_v0 = vpop.f32.mrf.mxu0  ;;  %v3246_v34 = vadd.f32 %v6269_v35, %v3051_v40 }
 0x4e3   : > { %v3693_v63 = vadd.f32 %v4207_v6, %v3629_v44  ;;  %3592 = vmatmul.f32.gmra.mxu1 %v6108_v41  ;;  %v6512_v6 = vld [vmem:[#allocation27_spill] sm:$0xff] }
 0x4e5   : > { %v3725_v22 = vmax.f32 %v3693_v63, 0.0 }
 0x4e7   : > { %3757 = vst [vmem:[%s6214_s6 + $0x30] sm:$0xff] %v3725_v22  ;;  %v4212_v22 = vld [vmem:[%s4605_s17 + $0x99] sm:$0xff] }
 0x4e8   : > { %v3548_v55 = vpop.f32.mrf.mxu1 }
 0x4e9   : > { %v3630_v41 = vadd.f32 %v3548_v55, %v3436_v33  ;;  %v3378_v44 = vpop.f32.mrf.mxu0  ;;  %v6513_v55 = vld [vmem:[#allocation12_spill] sm:$0xff] }
 0x4eb   : > { %v3694_v48 = vadd.f32 %v4208_v21, %v3630_v41  ;;  %3595 = vmatmul.f32.gmra.mxu1 %v6121_v36  ;;  %v3244_v36 = vadd.f32 %v6237_v27, %v3049_v53  ;;  %v3245_v27 = vadd.f32 %v6254_v58, %v3050_v60  ;;  %v3184_v58 = vpop.f32.mrf.mxu3  ;;  %v6514_v21 = vld [vmem:[#allocation29_spill] sm:$0xff] }
 0x4ec   : > { %v2859_v41 = vadd.f32 %v6514_v21, %v6513_v55  ;;  %v4213_v53 = vld [vmem:[%s4605_s17 + $0xa9] sm:$0xff]  ;;  %v4217_v21 = vld [vmem:[%s4605_s17 + $0xd9] sm:$0xff] }
 0x4ed   : > { %v3726_v61 = vmax.f32 %v3694_v48, 0.0  ;;  %v3438_v13 = vadd.f32 %v6243_v52, %v3244_v36  ;;  %v3439_v52 = vadd.f32 %v6258_v54, %v3245_v27  ;;  %v3440_v54 = vadd.f32 %v6275_v15, %v3246_v34 }
 0x4ef   : > { %3758 = vst [vmem:[%s6214_s6 + $0x38] sm:$0xff] %v3726_v61 }
 0x4f0   : > { %v3551_v28 = vpop.f32.mrf.mxu1 }
 0x4f1   : > { %v3631_v50 = vadd.f32 %v3551_v28, %v3437_v23  ;;  %v3381_v48 = vpop.f32.mrf.mxu0 }
 0x4f3   : > { %v3695_v12 = vadd.f32 %v4209_v39, %v3631_v50  ;;  %3598 = vmatmul.f32.gmra.mxu1 %v6132_v3  ;;  %v2989_v3 = vpop.f32.mrf.mxu2  ;;  %v6516_v39 = vld [vmem:[#allocation31_spill] sm:$0xff] }
 0x4f5   : > { %v3727_v57 = vmax.f32 %v3695_v12, 0.0 }
 0x4f7   : > { %3759 = vst [vmem:[%s6214_s6 + $0x40] sm:$0xff] %v3727_v57 }
 0x4f8   : > { %v3554_v26 = vpop.f32.mrf.mxu1 }
 0x4f9   : > { %v3632_v4 = vadd.f32 %v3554_v26, %v3438_v13  ;;  %v3384_v5 = vpop.f32.mrf.mxu0  ;;  %v6518_v26 = vld [vmem:[#allocation33_spill] sm:$0xff] }
 0x4fb   : > { %v3696_v38 = vadd.f32 %v4210_v47, %v3632_v4  ;;  %3601 = vmatmul.f32.gmra.mxu1 %v6143_v56  ;;  %v6511_v56 = vld [vmem:[#allocation11_spill] sm:$0xff]  ;;  %v2992_v9 = vpop.f32.mrf.mxu2 }
 0x4fc   : > { %v2858_v16 = vadd.f32 %v6512_v6, %v6511_v56  ;;  %v4216_v56 = vld [vmem:[%s4605_s17 + $0xc9] sm:$0xff] }
 0x4fd   : > { %v3728_v2 = vmax.f32 %v3696_v38, 0.0  ;;  %v3492_v6 = vld [vmem:[#allocation2 + $0x1a2] sm:$0xff] }
 0x4fe   : > { %v3052_v63 = vadd.f32 %v6277_v49, %v2858_v16  ;;  %v3053_v49 = vadd.f32 %v6294_v20, %v2859_v41 }
 0x4ff   : > { %3760 = vst [vmem:[%s6214_s6 + $0x48] sm:$0xff] %v3728_v2 }
 0x500   : > { %v3557_v31 = vpop.f32.mrf.mxu1  ;;  %v3247_v35 = vadd.f32 %v6285_v7, %v3052_v63  ;;  %v3248_v23 = vadd.f32 %v3178_v10, %v3053_v49 }
 0x501   : > { %v3633_v37 = vadd.f32 %v3557_v31, %v3439_v52  ;;  %v3387_v52 = vpop.f32.mrf.mxu0 }
 0x502   : > { %v3441_v15 = vadd.f32 %v6290_v17, %v3247_v35  ;;  %v3442_v8 = vadd.f32 %v6305_v11, %v3248_v23 }
 0x503   : > { %v3697_v43 = vadd.f32 %v4211_v51, %v3633_v37  ;;  %3604 = vmatmul.f32.gmra.mxu1 %v6154_v19  ;;  %v3187_v19 = vpop.f32.mrf.mxu3  ;;  %v2995_v18 = vpop.f32.mrf.mxu2  ;;  %v6520_v51 = vld [vmem:[#allocation35_spill] sm:$0xff] }
 0x505   : > { %v3729_v42 = vmax.f32 %v3697_v43, 0.0 }
 0x507   : > { %3761 = vst [vmem:[%s6214_s6 + $0x50] sm:$0xff] %v3729_v42 }
 0x508   : > { %v3560_v14 = vpop.f32.mrf.mxu1 }
 0x509   : > { %v3634_v29 = vadd.f32 %v3560_v14, %v3440_v54  ;;  %v6521_v54 = vld [vmem:[#allocation16_spill] sm:$0xff]  ;;  %v6522_v14 = vld [vmem:[#allocation37_spill] sm:$0xff] }
 0x50b   : > { %v3698_v33 = vadd.f32 %v4212_v22, %v3634_v29  ;;  %3607 = vmatmul.f32.gmra.mxu1 %v6167_v46  ;;  %v6515_v46 = vld [vmem:[#allocation13_spill] sm:$0xff]  ;;  %v3190_v12 = vpop.f32.mrf.mxu3  ;;  %v2998_v60 = vpop.f32.mrf.mxu2  ;;  %v2863_v22 = vadd.f32 %v6522_v14, %v6521_v54 }
 0x50c   : > { %v2860_v50 = vadd.f32 %v6516_v39, %v6515_v46  ;;  %v3390_v29 = vpop.f32.mrf.mxu0 }
 0x50d   : > { %v3730_v62 = vmax.f32 %v3698_v33, 0.0 }
 0x50e   : > { %v3054_v20 = vadd.f32 %v2986_v32, %v2860_v50  ;;  %v4218_v50 = vld [vmem:[%s4605_s17 + $0xe1] sm:$0xff] }
 0x50f   : > { %3762 = vst [vmem:[%s6214_s6 + $0x58] sm:$0xff] %v3730_v62 }
 0x510   : > { %v3563_v61 = vpop.f32.mrf.mxu1  ;;  %v3249_v10 = vadd.f32 %v3181_v25, %v3054_v20 }
 0x511   : > { %v3635_v7 = vadd.f32 %v3563_v61, %v3441_v15  ;;  %v6524_v61 = vld [vmem:[#allocation38_spill] sm:$0xff] }
 0x512   : > { %v3443_v32 = vadd.f32 %v3375_v0, %v3249_v10 }
 0x513   : > { %v3699_v28 = vadd.f32 %v4213_v53, %v3635_v7  ;;  %3610 = vmatmul.f32.gmra.mxu1 %v6182_v59  ;;  %v6517_v59 = vld [vmem:[#allocation14_spill] sm:$0xff]  ;;  %v3193_v38 = vpop.f32.mrf.mxu3  ;;  %v3001_v31 = vpop.f32.mrf.mxu2 }
 0x514   : > { %v2861_v47 = vadd.f32 %v6518_v26, %v6517_v59  ;;  %v4219_v59 = vld [vmem:[%s4605_s17 + $0xf1] sm:$0xff] }
 0x515   : > { %v3731_v36 = vmax.f32 %v3699_v28, 0.0  ;;  %v3393_v28 = vpop.f32.mrf.mxu0 }
 0x516   : > { %v3055_v27 = vadd.f32 %v2989_v3, %v2861_v47 }
 0x517   : > { %3763 = vst [vmem:[%s6214_s6 + $0x60] sm:$0xff] %v3731_v36 }
 0x518   : > { %v3566_v17 = vpop.f32.mrf.mxu1  ;;  %v3250_v40 = vadd.f32 %v3184_v58, %v3055_v27 }
 0x519   : > { %v3636_v57 = vadd.f32 %v3566_v17, %v3442_v8  ;;  %v6525_v8 = vld [vmem:[#allocation18_spill] sm:$0xff] }
 0x51a   : > { %v3444_v3 = vadd.f32 %v3378_v44, %v3250_v40 }
 0x51b   : > { %v3700_v13 = vadd.f32 %v4214_v1, %v3636_v57  ;;  %3613 = vmatmul.f32.gmra.mxu1 %v6196_v30  ;;  %v6519_v30 = vld [vmem:[#allocation15_spill] sm:$0xff]  ;;  %v3196_v42 = vpop.f32.mrf.mxu3  ;;  %v3004_v33 = vpop.f32.mrf.mxu2 }
 0x51c   : > { %v2862_v37 = vadd.f32 %v6520_v51, %v6519_v30 }
 0x51d   : > { %v3732_v4 = vmax.f32 %v3700_v13, 0.0  ;;  %v3396_v26 = vpop.f32.mrf.mxu0 }
 0x51e   : > { %v3056_v43 = vadd.f32 %v2992_v9, %v2862_v37  ;;  %v3057_v9 = vadd.f32 %v2995_v18, %v2863_v22 }
 0x51f   : > { %3764 = vst [vmem:[%s6214_s6 + $0x68] sm:$0xff] %v3732_v4 }
 0x520   : > { %v3569_v11 = vpop.f32.mrf.mxu1  ;;  %v3251_v63 = vadd.f32 %v3187_v19, %v3056_v43  ;;  %v3252_v62 = vadd.f32 %v3190_v12, %v3057_v9  ;;  %v6523_v19 = vld [vmem:[#allocation17_spill] sm:$0xff]  ;;  %v6526_v12 = vld [vmem:[#allocation39_spill] sm:$0xff]  ;;  %v6529_v43 = vld [vmem:[#allocation20_spill] sm:$0xff] }
 0x521   : > { %v3637_v2 = vadd.f32 %v3569_v11, %v3443_v32  ;;  %v2864_v53 = vadd.f32 %v6524_v61, %v6523_v19  ;;  %v2865_v17 = vadd.f32 %v6526_v12, %v6525_v8  ;;  %v6527_v32 = vld [vmem:[#allocation19_spill] sm:$0xff] }
 0x522   : > { %v3445_v44 = vadd.f32 %v3381_v48, %v3251_v63  ;;  %v3446_v46 = vadd.f32 %v3384_v5, %v3252_v62  ;;  %v4221_v63 = vld [vmem:[%s4605_s17 + $0x109] sm:$0xff] }
 0x523   : > { %v3701_v25 = vadd.f32 %v4215_v24, %v3637_v2  ;;  %3616 = vmatmul.f32.gmra.mxu1 %v3491_v45  ;;  %v3199_v15 = vpop.f32.mrf.mxu3  ;;  %v3058_v23 = vadd.f32 %v2998_v60, %v2864_v53  ;;  %v3007_v18 = vpop.f32.mrf.mxu2  ;;  %v3059_v10 = vadd.f32 %v3001_v31, %v2865_v17  ;;  %v4220_v31 = vld [vmem:[%s4605_s17 + $0xf9] sm:$0xff] }
 0x525   : > { %v3733_v34 = vmax.f32 %v3701_v25, 0.0  ;;  %v3253_v36 = vadd.f32 %v3193_v38, %v3058_v23  ;;  %v3254_v4 = vadd.f32 %v3196_v42, %v3059_v10  ;;  %v6528_v38 = vld [vmem:[#allocation40_spill] sm:$0xff]  ;;  %v3399_v51 = vpop.f32.mrf.mxu0  ;;  %v6534_v23 = vld [vmem:[#allocation43_spill] sm:$0xff] }
 0x526   : > { %v2866_v11 = vadd.f32 %v6528_v38, %v6527_v32 }
 0x527   : > { %3765 = vst [vmem:[%s6214_s6 + $0x70] sm:$0xff] %v3733_v34  ;;  %v3447_v60 = vadd.f32 %v3387_v52, %v3253_v36  ;;  %v3448_v2 = vadd.f32 %v3390_v29, %v3254_v4  ;;  %v6531_v29 = vld [vmem:[#allocation21_spill] sm:$0xff] }
 0x528   : > { %v3572_v0 = vpop.f32.mrf.mxu1  ;;  %v3060_v45 = vadd.f32 %v3004_v33, %v2866_v11 }
 0x529   : > { %v3638_v16 = vadd.f32 %v3572_v0, %v3444_v3  ;;  %v6530_v3 = vld [vmem:[#allocation41_spill] sm:$0xff] }
 0x52a   : > { %v3255_v30 = vadd.f32 %v3199_v15, %v3060_v45  ;;  %v2867_v0 = vadd.f32 %v6530_v3, %v6529_v43  ;;  %v6538_v45 = vld [vmem:[#allocation45_spill] sm:$0xff] }
 0x52b   : > { %v3702_v58 = vadd.f32 %v4216_v56, %v3638_v16  ;;  %3619 = vmatmul.f32.gmra.mxu1 %v3492_v6  ;;  %v3202_v57 = vpop.f32.mrf.mxu3  ;;  %v3010_v47 = vpop.f32.mrf.mxu2 }
 0x52c   : > { %v3061_v6 = vadd.f32 %v3007_v18, %v2867_v0  ;;  %v3449_v16 = vadd.f32 %v3393_v28, %v3255_v30 }
 0x52d   : > { %v3734_v35 = vmax.f32 %v3702_v58, 0.0  ;;  %v3402_v9 = vpop.f32.mrf.mxu0 }
 0x52e   : > { %v3256_v14 = vadd.f32 %v3202_v57, %v3061_v6  ;;  %v6536_v57 = vld [vmem:[#allocation44_spill] sm:$0xff]  ;;  %v6540_v6 = vld [vmem:[#allocation46_spill] sm:$0xff] }
 0x52f   : > { %3766 = vst [vmem:[%s6214_s6 + $0x78] sm:$0xff] %v3734_v35  ;;  %v6532_v35 = vld [vmem:[#allocation42_spill] sm:$0xff] }
 0x530   : > { %v3575_v55 = vpop.f32.mrf.mxu1  ;;  %v2868_v33 = vadd.f32 %v6532_v35, %v6531_v29 }
 0x531   : > { %v3639_v41 = vadd.f32 %v3575_v55, %v3445_v44 }
 0x533   : > { %v3703_v49 = vadd.f32 %v4217_v21, %v3639_v41  ;;  %v3205_v40 = vpop.f32.mrf.mxu3  ;;  %v3013_v34 = vpop.f32.mrf.mxu2  ;;  %v3062_v21 = vadd.f32 %v3010_v47, %v2868_v33  ;;  %v3450_v41 = vadd.f32 %v3396_v26, %v3256_v14  ;;  %v4224_v47 = vld [vmem:[%s4605_s17 + $0x129] sm:$0xff]  ;;  %v4226_v14 = vld [vmem:[%s4605_s17 + $0x141] sm:$0xff] }
 0x535   : > { %v3735_v7 = vmax.f32 %v3703_v49, 0.0  ;;  %v4222_v49 = vld [vmem:[%s4605_s17 + $0x111] sm:$0xff]  ;;  %v3257_v19 = vadd.f32 %v3205_v40, %v3062_v21 }
 0x537   : > { %3767 = vst [vmem:[%s6214_s6 + $0x80] sm:$0xff] %v3735_v7  ;;  %v6533_v7 = vld [vmem:[#allocation22_spill] sm:$0xff] }
 0x538   : > { %v3578_v39 = vpop.f32.mrf.mxu1  ;;  %v2869_v28 = vadd.f32 %v6534_v23, %v6533_v7 }
 0x539   : > { %v3640_v48 = vadd.f32 %v3578_v39, %v3446_v46  ;;  %v3405_v39 = vpop.f32.mrf.mxu0 }
 0x53a   : > { %v3063_v18 = vadd.f32 %v3013_v34, %v2869_v28 }
 0x53b   : > { %v3704_v20 = vadd.f32 %v4218_v50, %v3640_v48  ;;  %v3208_v54 = vpop.f32.mrf.mxu3  ;;  %v3016_v55 = vpop.f32.mrf.mxu2  ;;  %v3451_v50 = vadd.f32 %v3399_v51, %v3257_v19  ;;  %v4225_v51 = vld [vmem:[%s4605_s17 + $0x139] sm:$0xff] }
 0x53c   : > { %v3258_v12 = vadd.f32 %v3208_v54, %v3063_v18  ;;  %v6544_v18 = vld [vmem:[#allocation48_spill] sm:$0xff] }
 0x53d   : > { %v3736_v1 = vmax.f32 %v3704_v20, 0.0  ;;  %v4223_v20 = vld [vmem:[%s4605_s17 + $0x121] sm:$0xff] }
 0x53e   : > { %v3452_v26 = vadd.f32 %v3402_v9, %v3258_v12  ;;  %v6541_v9 = vld [vmem:[#allocation28_spill] sm:$0xff] }
 0x53f   : > { %3768 = vst [vmem:[%s6214_s6 + $0x88] sm:$0xff] %v3736_v1  ;;  %v6535_v1 = vld [vmem:[#allocation23_spill] sm:$0xff] }
 0x540   : > { %v3581_v13 = vpop.f32.mrf.mxu1  ;;  %v2870_v10 = vadd.f32 %v6536_v57, %v6535_v1 }
 0x541   : > { %v3641_v5 = vadd.f32 %v3581_v13, %v3447_v60  ;;  %v3408_v4 = vpop.f32.mrf.mxu0 }
 0x543   : > { %v3705_v27 = vadd.f32 %v4219_v59, %v3641_v5  ;;  %v3211_v53 = vpop.f32.mrf.mxu3  ;;  %v3019_v48 = vpop.f32.mrf.mxu2  ;;  %v3064_v59 = vadd.f32 %v3016_v55, %v2870_v10 }
 0x545   : > { %v3737_v24 = vmax.f32 %v3705_v27, 0.0  ;;  %v3259_v38 = vadd.f32 %v3211_v53, %v3064_v59 }
 0x547   : > { %3769 = vst [vmem:[%s6214_s6 + $0x90] sm:$0xff] %v3737_v24  ;;  %v6537_v24 = vld [vmem:[#allocation25_spill] sm:$0xff] }
 0x548   : > { %v3584_v25 = vpop.f32.mrf.mxu1 }
 0x549   : > { %v3642_v52 = vadd.f32 %v3584_v25, %v3448_v2  ;;  %v2871_v2 = vadd.f32 %v6538_v45, %v6537_v24  ;;  %v3411_v43 = vpop.f32.mrf.mxu0 }
 0x54b   : > { %v3706_v37 = vadd.f32 %v4220_v31, %v3642_v52  ;;  %v3214_v13 = vpop.f32.mrf.mxu3  ;;  %v3022_v32 = vpop.f32.mrf.mxu2  ;;  %v3065_v25 = vadd.f32 %v3019_v48, %v2871_v2  ;;  %v3453_v31 = vadd.f32 %v3405_v39, %v3259_v38 }
 0x54d   : > { %v3738_v56 = vmax.f32 %v3706_v37, 0.0  ;;  %v3260_v34 = vadd.f32 %v3214_v13, %v3065_v25  ;;  %v6546_v13 = vld [vmem:[#allocation49_spill] sm:$0xff]  ;;  %v6548_v25 = vld [vmem:[#allocation50_spill] sm:$0xff] }
 0x54f   : > { %3770 = vst [vmem:[%s6214_s6 + $0x98] sm:$0xff] %v3738_v56  ;;  %v6539_v56 = vld [vmem:[#allocation26_spill] sm:$0xff] }
 0x550   : > { %v3587_v42 = vpop.f32.mrf.mxu1 }
 0x551   : > { %v3643_v58 = vadd.f32 %v3587_v42, %v3449_v16  ;;  %v2872_v16 = vadd.f32 %v6540_v6, %v6539_v56  ;;  %v3414_v21 = vpop.f32.mrf.mxu0 }
 0x553   : > { %v3707_v22 = vadd.f32 %v4221_v63, %v3643_v58  ;;  %v3217_v52 = vpop.f32.mrf.mxu3  ;;  %v3025_v0 = vpop.f32.mrf.mxu2  ;;  %v3066_v63 = vadd.f32 %v3022_v32, %v2872_v16  ;;  %v3454_v58 = vadd.f32 %v3408_v4, %v3260_v34  ;;  %v4229_v32 = vld [vmem:[%s4605_s17 + $0x169] sm:$0xff] }
 0x555   : > { %v3739_v44 = vmax.f32 %v3707_v22, 0.0  ;;  %v3261_v35 = vadd.f32 %v3217_v52, %v3066_v63  ;;  %v6550_v63 = vld [vmem:[#allocation51_spill] sm:$0xff] }
 0x557   : > { %3771 = vst [vmem:[%s6214_s6 + $0xa0] sm:$0xff] %v3739_v44  ;;  %v6542_v44 = vld [vmem:[#allocation47_spill] sm:$0xff] }
 0x558   : > { %v3590_v62 = vpop.f32.mrf.mxu1  ;;  %v2873_v55 = vadd.f32 %v6542_v44, %v6541_v9 }
 0x559   : > { %v3644_v15 = vadd.f32 %v3590_v62, %v3450_v41  ;;  %v3417_v48 = vpop.f32.mrf.mxu0 }
 0x55b   : > { %v3708_v61 = vadd.f32 %v4222_v49, %v3644_v15  ;;  %v3220_v29 = vpop.f32.mrf.mxu3  ;;  %v3028_v62 = vpop.f32.mrf.mxu2  ;;  %v3067_v49 = vadd.f32 %v3025_v0, %v2873_v55  ;;  %v3455_v15 = vadd.f32 %v3411_v43, %v3261_v35  ;;  %v4230_v43 = vld [vmem:[%s4605_s17 + $0x171] sm:$0xff] }
 0x55d   : > { %v3740_v46 = vmax.f32 %v3708_v61, 0.0  ;;  %v4227_v61 = vld [vmem:[%s4605_s17 + $0x151] sm:$0xff]  ;;  %v3262_v7 = vadd.f32 %v3220_v29, %v3067_v49 }
 0x55f   : > { %3772 = vst [vmem:[%s6214_s6 + $0xa8] sm:$0xff] %v3740_v46  ;;  %v6543_v46 = vld [vmem:[#allocation30_spill] sm:$0xff] }
 0x560   : > { %v3593_v36 = vpop.f32.mrf.mxu1  ;;  %v2874_v39 = vadd.f32 %v6544_v18, %v6543_v46 }
 0x561   : > { %v3645_v8 = vadd.f32 %v3593_v36, %v3451_v50 }
 0x562   : > { %v3068_v36 = vadd.f32 %v3028_v62, %v2874_v39 }
 0x563   : > { %v3709_v17 = vadd.f32 %v4223_v20, %v3645_v8  ;;  %v3223_v28 = vpop.f32.mrf.mxu3  ;;  %v3456_v20 = vadd.f32 %v3414_v21, %v3262_v7  ;;  %v3031_v8 = vpop.f32.mrf.mxu2 }
 0x564   : > { %v3263_v57 = vadd.f32 %v3223_v28, %v3068_v36 }
 0x565   : > { %v3741_v60 = vmax.f32 %v3709_v17, 0.0  ;;  %v4228_v17 = vld [vmem:[%s4605_s17 + $0x159] sm:$0xff] }
 0x566   : > { %v3457_v4 = vadd.f32 %v3417_v48, %v3263_v57 }
 0x567   : > { %3773 = vst [vmem:[%s6214_s6 + $0xb0] sm:$0xff] %v3741_v60  ;;  %v6545_v60 = vld [vmem:[#allocation32_spill] sm:$0xff] }
 0x568   : > { %v3596_v5 = vpop.f32.mrf.mxu1  ;;  %v2875_v59 = vadd.f32 %v6546_v13, %v6545_v60 }
 0x569   : > { %v3646_v27 = vadd.f32 %v3596_v5, %v3452_v26 }
 0x56b   : > { %v3710_v11 = vadd.f32 %v4224_v47, %v3646_v27  ;;  %v3226_v5 = vpop.f32.mrf.mxu3  ;;  %v3069_v47 = vadd.f32 %v3031_v8, %v2875_v59  ;;  %v3034_v24 = vpop.f32.mrf.mxu2 }
 0x56d   : > { %v3742_v40 = vmax.f32 %v3710_v11, 0.0  ;;  %v3420_v11 = vpop.f32.mrf.mxu0  ;;  %v3264_v45 = vadd.f32 %v3226_v5, %v3069_v47 }
 0x56f   : > { %3774 = vst [vmem:[%s6214_s6 + $0xb8] sm:$0xff] %v3742_v40  ;;  %v6547_v40 = vld [vmem:[#allocation34_spill] sm:$0xff] }
 0x570   : > { %v3599_v30 = vpop.f32.mrf.mxu1 }
 0x571   : > { %v3647_v37 = vadd.f32 %v3599_v30, %v3453_v31  ;;  %v2876_v31 = vadd.f32 %v6548_v25, %v6547_v40 }
 0x573   : > { %v3711_v3 = vadd.f32 %v4225_v51, %v3647_v37  ;;  %v3229_v30 = vpop.f32.mrf.mxu3  ;;  %v3070_v51 = vadd.f32 %v3034_v24, %v2876_v31  ;;  %v3458_v37 = vadd.f32 %v3420_v11, %v3264_v45  ;;  %v3037_v16 = vpop.f32.mrf.mxu2 }
 0x575   : > { %v3743_v42 = vmax.f32 %v3711_v3, 0.0  ;;  %v3423_v0 = vpop.f32.mrf.mxu0  ;;  %v3265_v56 = vadd.f32 %v3229_v30, %v3070_v51 }
 0x577   : > { %3775 = vst [vmem:[%s6214_s6 + $0xc0] sm:$0xff] %v3743_v42  ;;  %v6549_v42 = vld [vmem:[#allocation36_spill] sm:$0xff] }
 0x578   : > { %v3602_v54 = vpop.f32.mrf.mxu1 }
 0x579   : > { %v3648_v22 = vadd.f32 %v3602_v54, %v3454_v58  ;;  %v2877_v58 = vadd.f32 %v6550_v63, %v6549_v42 }
 0x57b   : > { %v3712_v33 = vadd.f32 %v4226_v14, %v3648_v22  ;;  %v3459_v14 = vadd.f32 %v3423_v0, %v3265_v56  ;;  %v3071_v22 = vadd.f32 %v3037_v16, %v2877_v58  ;;  %v3232_v29 = vpop.f32.mrf.mxu3 }
 0x57d   : > { %v3744_v41 = vmax.f32 %v3712_v33, 0.0  ;;  %v4231_v33 = vld [vmem:[%s4605_s17 + $0x181] sm:$0xff]  ;;  %v3266_v44 = vadd.f32 %v3232_v29, %v3071_v22  ;;  %v3426_v21 = vpop.f32.mrf.mxu0 }
 0x57f   : > { %3776 = vst [vmem:[%s6214_s6 + $0xc8] sm:$0xff] %v3744_v41  ;;  %v3460_v62 = vadd.f32 %v3426_v21, %v3266_v44 }
 0x580   : > { %v3605_v19 = vpop.f32.mrf.mxu1 }
 0x581   : > { %v3649_v53 = vadd.f32 %v3605_v19, %v3455_v15  ;;  %v4232_v15 = vld [vmem:[%s4605_s17 + $0x189] sm:$0xff]  ;;  %s4381_s17 = scalar_lea.hbm %s6454_s3, 512 }
 0x582   : > { %p4383_p4 = scmp.lt.s32.totalorder %s4381_s17, %s4377_s24 }
 0x583   : > { %v3713_v23 = vadd.f32 %v4227_v61, %v3649_v53 }
 0x584   : > { %p4384_p7 = por %p4383_p4, %p4382_p3 }
 0x585   : > { %v3745_v50 = vmax.f32 %v3713_v23, 0.0 }
 0x586   : > { %p4385_p8 = pnand %p4384_p7, %p4380_p2 }
 0x587   : > { %3777 = vst [vmem:[%s6214_s6 + $0xd0] sm:$0xff] %v3745_v50 }
 0x588   : > { %v3608_v12 = vpop.f32.mrf.mxu1 }
 0x589   : > { %v3650_v1 = vadd.f32 %v3608_v12, %v3456_v20 }
 0x58b   : > { %v3714_v10 = vadd.f32 %v4228_v17, %v3650_v1 }
 0x58d   : > { %v3746_v26 = vmax.f32 %v3714_v10, 0.0 }
 0x58f   : > { %3778 = vst [vmem:[%s6214_s6 + $0xd8] sm:$0xff] %v3746_v26 }
 0x590   : > { %v3611_v27 = vpop.f32.mrf.mxu1 }
 0x591   : > { %v3651_v38 = vadd.f32 %v3611_v27, %v3457_v4 }
 0x593   : > { %v3715_v2 = vadd.f32 %v4229_v32, %v3651_v38 }
 0x595   : > { %v3747_v52 = vmax.f32 %v3715_v2, 0.0 }
 0x597   : > { %3779 = vst [vmem:[%s6214_s6 + $0xe0] sm:$0xff] %v3747_v52 }
 0x598   : > { %v3614_v34 = vpop.f32.mrf.mxu1 }
 0x599   : > { %v3652_v3 = vadd.f32 %v3614_v34, %v3458_v37 }
 0x59b   : > { %v3716_v6 = vadd.f32 %v4230_v43, %v3652_v3 }
 0x59d   : > { %v3748_v54 = vmax.f32 %v3716_v6, 0.0 }
 0x59f   : > { %3780 = vst [vmem:[%s6214_s6 + $0xe8] sm:$0xff] %v3748_v54 }
 0x5a0   : > { %v3617_v35 = vpop.f32.mrf.mxu1 }
 0x5a1   : > { %v3653_v9 = vadd.f32 %v3617_v35, %v3459_v14 }
 0x5a3   : > { %v3717_v55 = vadd.f32 %v4231_v33, %v3653_v9 }
 0x5a5   : > { %v3749_v41 = vmax.f32 %v3717_v55, 0.0 }
 0x5a7   : > { %3781 = vst [vmem:[%s6214_s6 + $0xf0] sm:$0xff] %v3749_v41 }
 0x5a8   : > { %v3620_v49 = vpop.f32.mrf.mxu1 }
 0x5a9   : > { %v3654_v19 = vadd.f32 %v3620_v49, %v3460_v62 }
 0x5ab   : > { %v3718_v61 = vadd.f32 %v4232_v15, %v3654_v19 }
 0x5ad   : > { %v3750_v53 = vmax.f32 %v3718_v61, 0.0 }
 0x5af   : > { %3782 = vst [vmem:[%s6214_s6 + $0xf8] sm:$0xff] %v3750_v53 }
 0x5b0   : > { %4388 = shalt.err (!%p4385_p8)
}
 0x5b1   : > { %s4433_s29 = smov 128   ;;  %s4434_s30 = smov 8  }
 0x5b2   : > { %4276 = dma.vmem_to_hbm [thread:$0]  (%p4493_p5), %s3797_s11, 4096, %s3799_s19, %s3784_s16, %s4433_s29, %s4433_s29, %s4434_s30  }
 0x5b3 PF: > { %p4288_p9 = scmp.ge.s32.totalorder %s4427_s15, 2  ;;  %s3813_s4 = sand.u32 1, %s4415_s12  }
 0x5b4   : > { %s3814_s5 = scalar_lea.sflag [#allocation5], %s3813_s4 }
 0x5b5   : > { %p4283_p10 = pnand %p4288_p9, %p4497_p6 }
 0x5b7   : > { %p4284_p11 = pneg %p4283_p10 }
 0x5b9   : > { %4410 = dma.done.wait (%p4284_p11), %s3814_s5, 4096  }
 0x5ba   : > { %4412 = vsyncadd (%p4284_p11), %s3814_s5, 4294963200  ;;  %p14_p12 = scmp.ge.s32.totalorder %s4480_s18, 4   ;;  %s6551_s12 = smov %s4419_s13 }
 0x5bb   : > { %s6552_s13 = smov %s4423_s14  ;;  %s6553_s14 = smov %s4491_s21 }
 0x5bc   : > { %s6554_s15 = smov %s4480_s18  ;;  %16 = sbr.rel (!%p14_p12) target bundleno = 4 (0x4), region = 93 }
 0x5c1   :  { %3820 = vsyncpa [#allocation4], 1 }
 0x5c2   :  { %3822 = vsyncpa [#allocation4 + $0x1], 1 }
 0x5c3   :  { %3823 = vsyncpa [#allocation5], 1 }
 0x5c4   :  { %3825 = vsyncpa [#allocation5 + $0x1], 1 }

</bundles_post_ra>
